<compile_context>
chip_gen: v7x
topology: tpu7x:2x2x1
jax: 0.10.0
libtpu: 0.0.40
codegen_flags: <defaults>
</compile_context>

<pallas_src>
import numpy as np
import jax
import jax.numpy as jnp
from jax import lax
from jax.experimental import pallas as pl
from jax.experimental.pallas import tpu as pltpu


# ----------------------- one-time weight layout preparation -----------------------

def _conv1_pool_toeplitz(w1):
    """(729, 864) stride-2 Toeplitz for conv1, shared by all four 2x2-pool quadrants.

    rows: flattened 27x27 shifted crop (a*27 + c)
    cols: oc*144 + i'*12 + j'   (i', j' are pooled output coords, 12x12)
    entry = w1[oc, 0, a - 2i', c - 2j'] when that offset is inside the 5x5 window.
    """
    w1 = np.asarray(w1, np.float32)
    w1s = w1[:, 0]                                        # (6, 5, 5)
    T = np.zeros((27 * 27, 6 * 12 * 12), np.float32)
    oc, ip, jp, di, dj = np.meshgrid(np.arange(6), np.arange(12), np.arange(12),
                                     np.arange(5), np.arange(5), indexing="ij")
    rows = (2 * ip + di) * 27 + (2 * jp + dj)
    cols = oc * 144 + ip * 12 + jp
    T[rows.ravel(), cols.ravel()] = w1s[oc, di, dj].ravel()
    return T


def _conv2_pool_toeplitz(w2):
    """(864, 1024) Toeplitz for conv2 with pool-quadrant column blocks.

    rows: ic*144 + a*12 + c           (pooled conv1 feature index, (C,H,W) order)
    cols: (2u+v)*256 + oc*16 + i'*4 + j'   (quadrant block, then (C,H,W) order)
    entry = w2[oc, ic, a - (2i'+u), c - (2j'+v)] when inside the 5x5 window.
    """
    w2 = np.asarray(w2, np.float32)
    T = np.zeros((6 * 12 * 12, 4 * 16 * 4 * 4), np.float32)
    u, v, oc, ip, jp, ic, di, dj = np.meshgrid(
        np.arange(2), np.arange(2), np.arange(16), np.arange(4), np.arange(4),
        np.arange(6), np.arange(5), np.arange(5), indexing="ij")
    rows = ic * 144 + (2 * ip + u + di) * 12 + (2 * jp + v + dj)
    cols = (2 * u + v) * 256 + oc * 16 + ip * 4 + jp
    T[rows.ravel(), cols.ravel()] = w2[oc, ic, di, dj].ravel()
    return T


# Lane-dense padded sizes (all multiples of 128).
K1_PAD = 768      # 27*27 = 729 -> 768
C1_PAD = 896      # 6*12*12 = 864 -> 896
C2 = 1024         # 4 * 16*4*4  (already 8*128)
FC_PAD = 128      # 120 / 84 / 10 -> 128


def prepare_params(params):
    """Precompute matmul-ready, 128-padded, bf16 weight layouts once (out of fwd path)."""
    (w1, b1, w2, b2, fw1, fb1, fw2, fb2, fw3, fb3) = params

    # conv1 Toeplitz, padded to (768, 896).
    T1 = _conv1_pool_toeplitz(w1)
    T1p = np.zeros((K1_PAD, C1_PAD), np.float32)
    T1p[:729, :864] = T1

    # conv2 Toeplitz, rows padded to 896 (matches padded conv1 output).
    W2 = _conv2_pool_toeplitz(w2)
    W2p = np.zeros((C1_PAD, C2), np.float32)
    W2p[:864, :] = W2

    # fc1 / fc2 / fc3 weights stacked into one (512, 128) slab (rows 0:256 / 256:384 / 384:512).
    WFC = np.zeros((256 + FC_PAD + FC_PAD, FC_PAD), np.float32)
    WFC[0:256, :120] = np.asarray(fw1, np.float32).T            # (256, 120)
    WFC[256:256 + 120, :84] = np.asarray(fw2, np.float32).T     # (120, 84)
    WFC[384:384 + 84, :10] = np.asarray(fw3, np.float32).T      # (84, 10)

    # All biases in one f32 slab, 128-aligned column blocks:
    #   [0:896) conv1, [896:1920) conv2, [1920:2048) fc1, [2048:2176) fc2, [2176:2304) fc3.
    BIAS = np.zeros((1, C1_PAD + C2 + 3 * FC_PAD), np.float32)
    BIAS[0, 0:864] = np.repeat(np.asarray(b1, np.float32), 12 * 12)
    BIAS[0, C1_PAD:C1_PAD + C2] = np.tile(np.repeat(np.asarray(b2, np.float32), 4 * 4), 4)
    BIAS[0, 1920:1920 + 120] = np.asarray(fb1, np.float32)
    BIAS[0, 2048:2048 + 84] = np.asarray(fb2, np.float32)
    BIAS[0, 2176:2176 + 10] = np.asarray(fb3, np.float32)

    return (jnp.asarray(T1p, jnp.bfloat16),
            jnp.asarray(W2p, jnp.bfloat16),
            jnp.asarray(WFC, jnp.bfloat16),
            jnp.asarray(BIAS, jnp.float32))


# ------------------------------- fused Pallas kernel -------------------------------

def _lenet_kernel(xq_ref, t1_ref, w2_ref, wfc_ref, bias_ref, out_ref):
    f32 = jnp.float32
    bf16 = jnp.bfloat16
    B = out_ref.shape[0]

    # Bias slices (f32, 128-aligned column blocks of the bias slab).
    b1 = bias_ref[:, 0:896]            # (1, 896)
    b2 = bias_ref[:, 896:1920]         # (1, 1024)
    bf1 = bias_ref[:, 1920:2048]       # (1, 128)
    bf2 = bias_ref[:, 2048:2176]       # (1, 128)
    bf3 = bias_ref[:, 2176:2304]       # (1, 128)

    # conv1: one bf16 MXU matmul over all four pool quadrants (rows = quadrant*B + b).
    g = jnp.dot(xq_ref[...], t1_ref[...], preferred_element_type=f32)     # (4B, 896) f32
    # 2x2 max-pool == max over the four quadrant row blocks; then bias + ReLU (f32).
    c1 = jnp.maximum(jnp.maximum(g[0 * B:1 * B], g[1 * B:2 * B]),
                     jnp.maximum(g[2 * B:3 * B], g[3 * B:4 * B]))
    p1 = jnp.maximum(c1 + b1, 0.0)                                        # (B, 896) f32

    # conv2 + bias + ReLU (columns ordered by pool quadrant, 256-wide 128-aligned blocks).
    h2 = jnp.dot(p1.astype(bf16), w2_ref[...], preferred_element_type=f32) + b2
    h2 = jnp.maximum(h2, 0.0)                                             # (B, 1024) f32
    # 2x2 max-pool == max over the four quadrant column blocks -> (B, 256), (C,H,W) order.
    p2 = jnp.maximum(jnp.maximum(h2[:, 0:256], h2[:, 256:512]),
                     jnp.maximum(h2[:, 512:768], h2[:, 768:1024]))

    # fc1 -> fc2 -> fc3, all VMEM resident; bf16 operands, f32 accumulate/epilogue.
    f = jnp.dot(p2.astype(bf16), wfc_ref[0:256, :], preferred_element_type=f32) + bf1
    f = jnp.maximum(f, 0.0)
    f = jnp.dot(f.astype(bf16), wfc_ref[256:384, :], preferred_element_type=f32) + bf2
    f = jnp.maximum(f, 0.0)
    out_ref[...] = jnp.dot(f.astype(bf16), wfc_ref[384:512, :],
                           preferred_element_type=f32) + bf3              # (B, 128)


def _lenet_fused_call(xq, T1p, W2p, WFC, BIAS):
    B = xq.shape[0] // 4
    return pl.pallas_call(
        _lenet_kernel,
        out_shape=jax.ShapeDtypeStruct((B, FC_PAD), jnp.float32),
        compiler_params=pltpu.CompilerParams(vmem_limit_bytes=32 * 1024 * 1024),
    )(xq, T1p, W2p, WFC, BIAS)


def garment_classifier_forward(x_nchw, prepped):
    """Full GarmentClassifier forward: one fused Pallas kernel + tiny input staging."""
    T1p, W2p, WFC, BIAS = prepped
    B = x_nchw.shape[0]
    x2 = x_nchw.reshape(B, 28, 28)                        # Cin == 1
    # Four (u, v)-shifted 27x27 crops (one per 2x2-pool quadrant), stacked on rows,
    # zero-padded to a 768-wide lane-dense contraction dim, staged as bf16.
    xq = jnp.concatenate(
        [x2[:, u:u + 27, v:v + 27].reshape(B, 27 * 27)
         for u in (0, 1) for v in (0, 1)], axis=0)        # (4B, 729)
    xq = jnp.pad(xq, ((0, 0), (0, K1_PAD - 729))).astype(jnp.bfloat16)    # (4B, 768)
    out = _lenet_fused_call(xq, T1p, W2p, WFC, BIAS)      # (B, 128)
    return out[:, :10]


# ------------------------------- pure-JAX reference --------------------------------

def reference_forward(x_nchw, params, dot_dtype=None):
    """Reference LeNet forward. With dot_dtype=bfloat16 it mirrors the kernel's
    numerics (bf16 matmul operands, f32 accumulation/epilogue) exactly."""
    (w1, b1, w2, b2, fw1, fb1, fw2, fb2, fw3, fb3) = params
    cast = (lambda a: a) if dot_dtype is None else (lambda a: a.astype(dot_dtype))

    def conv(x, w, b):
        y = lax.conv_general_dilated(
            cast(x), cast(w), (1, 1), "VALID",
            dimension_numbers=("NCHW", "OIHW", "NCHW"),
            preferred_element_type=jnp.float32)
        return y + b[None, :, None, None]

    def pool(x):
        return lax.reduce_window(x, -jnp.inf, lax.max,
                                 (1, 1, 2, 2), (1, 1, 2, 2), "VALID")

    y = pool(jnp.maximum(conv(x_nchw, w1, b1), 0.0))
    y = pool(jnp.maximum(conv(y, w2, b2), 0.0))
    f = y.reshape(y.shape[0], -1)
    f = jnp.maximum(jnp.dot(cast(f), cast(fw1.T), preferred_element_type=jnp.float32) + fb1, 0.0)
    f = jnp.maximum(jnp.dot(cast(f), cast(fw2.T), preferred_element_type=jnp.float32) + fb2, 0.0)
    return jnp.dot(cast(f), cast(fw3.T), preferred_element_type=jnp.float32) + fb3


# -------------------------------------- main ---------------------------------------

if __name__ == "__main__":
    key = jax.random.PRNGKey(0)
    ks = jax.random.split(key, 11)
    f32 = jnp.float32
    # deterministic synthetic parameters, shapes from GarmentClassifier.__init__
    params = (
        0.1 * jax.random.normal(ks[0], (6, 1, 5, 5), f32),     # conv1.weight
        0.1 * jax.random.normal(ks[1], (6,), f32),              # conv1.bias
        0.1 * jax.random.normal(ks[2], (16, 6, 5, 5), f32),     # conv2.weight
        0.1 * jax.random.normal(ks[3], (16,), f32),              # conv2.bias
        0.1 * jax.random.normal(ks[4], (120, 256), f32),         # fc1.weight
        0.1 * jax.random.normal(ks[5], (120,), f32),              # fc1.bias
        0.1 * jax.random.normal(ks[6], (84, 120), f32),           # fc2.weight
        0.1 * jax.random.normal(ks[7], (84,), f32),                # fc2.bias
        0.1 * jax.random.normal(ks[8], (10, 84), f32),             # fc3.weight
        0.1 * jax.random.normal(ks[9], (10,), f32),                 # fc3.bias
    )
    # fc1's 16*4*4 input pins the spatial size to 28x28, 1 channel
    x = jax.random.normal(ks[10], (2, 1, 28, 28), f32)

    # One-time, out-of-forward-path weight layout preparation (bf16, 128-padded slabs).
    prepped = prepare_params(params)

    fwd = jax.jit(garment_classifier_forward)
    out = fwd(x, prepped)
    out = jax.block_until_ready(out)
    assert out.shape == (2, 10), out.shape

    # Strict check against a reference that uses the same bf16-operand / f32-accumulate
    # numerics as the kernel: validates the Toeplitz / pooling / fusion implementation.
    ref_bf16 = reference_forward(x, params, dot_dtype=jnp.bfloat16)
    assert jnp.allclose(out, ref_bf16, atol=2e-3, rtol=2e-3), \
        f"bf16-matched max abs err = {float(jnp.max(jnp.abs(out - ref_bf16)))}"

    # Loose check against the full-f32 reference: bounds the bf16 quantization drift.
    ref_f32 = reference_forward(x, params)
    assert jnp.allclose(out, ref_f32, atol=1.5e-1, rtol=1.5e-1), \
        f"f32 max abs err = {float(jnp.max(jnp.abs(out - ref_f32)))}"

    print("KERNEL_OK")
</pallas_src>

<mosaic_0001>
module attributes {stable_mosaic.version = 11 : i64} {
  func.func @_lenet_kernel(%arg0: memref<8x768xbf16, #tpu.memory_space<vmem>>, %arg1: memref<768x896xbf16, #tpu.memory_space<vmem>>, %arg2: memref<896x1024xbf16, #tpu.memory_space<vmem>>, %arg3: memref<512x128xbf16, #tpu.memory_space<vmem>>, %arg4: memref<1x2304xf32, #tpu.memory_space<vmem>>, %arg5: memref<2x128xf32, #tpu.memory_space<vmem>>) attributes {dimension_semantics = [], scalar_prefetch = 0 : i64, scratch_operands = 0 : i64, tpu.core_type = #tpu.core_type<tc>} {
    %c0 = arith.constant 0 : index
    %c0_0 = arith.constant 0 : index
    %0 = vector.load %arg4[%c0, %c0_0] : memref<1x2304xf32, #tpu.memory_space<vmem>>, vector<1x896xf32>
    %c0_1 = arith.constant 0 : index
    %c896 = arith.constant 896 : index
    %1 = vector.load %arg4[%c0_1, %c896] : memref<1x2304xf32, #tpu.memory_space<vmem>>, vector<1x1024xf32>
    %c0_2 = arith.constant 0 : index
    %c1920 = arith.constant 1920 : index
    %2 = vector.load %arg4[%c0_2, %c1920] : memref<1x2304xf32, #tpu.memory_space<vmem>>, vector<1x128xf32>
    %c0_3 = arith.constant 0 : index
    %c2048 = arith.constant 2048 : index
    %3 = vector.load %arg4[%c0_3, %c2048] : memref<1x2304xf32, #tpu.memory_space<vmem>>, vector<1x128xf32>
    %c0_4 = arith.constant 0 : index
    %c2176 = arith.constant 2176 : index
    %4 = vector.load %arg4[%c0_4, %c2176] : memref<1x2304xf32, #tpu.memory_space<vmem>>, vector<1x128xf32>
    %c0_5 = arith.constant 0 : index
    %c0_6 = arith.constant 0 : index
    %5 = vector.load %arg0[%c0_5, %c0_6] : memref<8x768xbf16, #tpu.memory_space<vmem>>, vector<8x768xbf16>
    %c0_7 = arith.constant 0 : index
    %c0_8 = arith.constant 0 : index
    %6 = vector.load %arg1[%c0_7, %c0_8] : memref<768x896xbf16, #tpu.memory_space<vmem>>, vector<768x896xbf16>
    %cst = arith.constant dense<0.000000e+00> : vector<8x896xf32>
    %7 = tpu.matmul %5, %6, %cst {dimension_numbers = #tpu.dot_dimension_numbers<[1], [0], [0], [1], [0, 0, 1, 1], [], []>} : vector<8x768xbf16>, vector<768x896xbf16>, vector<8x896xf32> -> vector<8x896xf32>
    %8 = vector.extract_strided_slice %7 {offsets = [0, 0], sizes = [2, 896], strides = [1, 1]} : vector<8x896xf32> to vector<2x896xf32>
    %9 = vector.extract_strided_slice %7 {offsets = [2, 0], sizes = [2, 896], strides = [1, 1]} : vector<8x896xf32> to vector<2x896xf32>
    %10 = arith.maximumf %8, %9 : vector<2x896xf32>
    %11 = vector.extract_strided_slice %7 {offsets = [4, 0], sizes = [2, 896], strides = [1, 1]} : vector<8x896xf32> to vector<2x896xf32>
    %12 = vector.extract_strided_slice %7 {offsets = [6, 0], sizes = [2, 896], strides = [1, 1]} : vector<8x896xf32> to vector<2x896xf32>
    %13 = arith.maximumf %11, %12 : vector<2x896xf32>
    %14 = arith.maximumf %10, %13 : vector<2x896xf32>
    %15 = vector.broadcast %0 : vector<1x896xf32> to vector<2x896xf32>
    %16 = arith.addf %14, %15 : vector<2x896xf32>
    %cst_9 = arith.constant 0.000000e+00 : f32
    %17 = vector.broadcast %cst_9 : f32 to vector<2x896xf32>
    %18 = arith.maximumf %16, %17 : vector<2x896xf32>
    %19 = arith.truncf %18 : vector<2x896xf32> to vector<2x896xbf16>
    %c0_10 = arith.constant 0 : index
    %c0_11 = arith.constant 0 : index
    %20 = vector.load %arg2[%c0_10, %c0_11] : memref<896x1024xbf16, #tpu.memory_space<vmem>>, vector<896x1024xbf16>
    %cst_12 = arith.constant dense<0.000000e+00> : vector<2x1024xf32>
    %21 = tpu.matmul %19, %20, %cst_12 {dimension_numbers = #tpu.dot_dimension_numbers<[1], [0], [0], [1], [0, 0, 1, 1], [], []>} : vector<2x896xbf16>, vector<896x1024xbf16>, vector<2x1024xf32> -> vector<2x1024xf32>
    %22 = vector.broadcast %1 : vector<1x1024xf32> to vector<2x1024xf32>
    %23 = arith.addf %21, %22 : vector<2x1024xf32>
    %cst_13 = arith.constant 0.000000e+00 : f32
    %24 = vector.broadcast %cst_13 : f32 to vector<2x1024xf32>
    %25 = arith.maximumf %23, %24 : vector<2x1024xf32>
    %26 = vector.extract_strided_slice %25 {offsets = [0, 0], sizes = [2, 256], strides = [1, 1]} : vector<2x1024xf32> to vector<2x256xf32>
    %27 = vector.extract_strided_slice %25 {offsets = [0, 256], sizes = [2, 256], strides = [1, 1]} : vector<2x1024xf32> to vector<2x256xf32>
    %28 = arith.maximumf %26, %27 : vector<2x256xf32>
    %29 = vector.extract_strided_slice %25 {offsets = [0, 512], sizes = [2, 256], strides = [1, 1]} : vector<2x1024xf32> to vector<2x256xf32>
    %30 = vector.extract_strided_slice %25 {offsets = [0, 768], sizes = [2, 256], strides = [1, 1]} : vector<2x1024xf32> to vector<2x256xf32>
    %31 = arith.maximumf %29, %30 : vector<2x256xf32>
    %32 = arith.maximumf %28, %31 : vector<2x256xf32>
    %33 = arith.truncf %32 : vector<2x256xf32> to vector<2x256xbf16>
    %c0_14 = arith.constant 0 : index
    %c0_15 = arith.constant 0 : index
    %34 = vector.load %arg3[%c0_14, %c0_15] : memref<512x128xbf16, #tpu.memory_space<vmem>>, vector<256x128xbf16>
    %cst_16 = arith.constant dense<0.000000e+00> : vector<2x128xf32>
    %35 = tpu.matmul %33, %34, %cst_16 {dimension_numbers = #tpu.dot_dimension_numbers<[1], [0], [0], [1], [0, 0, 1, 1], [], []>} : vector<2x256xbf16>, vector<256x128xbf16>, vector<2x128xf32> -> vector<2x128xf32>
    %36 = vector.broadcast %2 : vector<1x128xf32> to vector<2x128xf32>
    %37 = arith.addf %35, %36 : vector<2x128xf32>
    %cst_17 = arith.constant 0.000000e+00 : f32
    %38 = vector.broadcast %cst_17 : f32 to vector<2x128xf32>
    %39 = arith.maximumf %37, %38 : vector<2x128xf32>
    %40 = arith.truncf %39 : vector<2x128xf32> to vector<2x128xbf16>
    %c256 = arith.constant 256 : index
    %c0_18 = arith.constant 0 : index
    %41 = vector.load %arg3[%c256, %c0_18] : memref<512x128xbf16, #tpu.memory_space<vmem>>, vector<128x128xbf16>
    %cst_19 = arith.constant dense<0.000000e+00> : vector<2x128xf32>
    %42 = tpu.matmul %40, %41, %cst_19 {dimension_numbers = #tpu.dot_dimension_numbers<[1], [0], [0], [1], [0, 0, 1, 1], [], []>} : vector<2x128xbf16>, vector<128x128xbf16>, vector<2x128xf32> -> vector<2x128xf32>
    %43 = vector.broadcast %3 : vector<1x128xf32> to vector<2x128xf32>
    %44 = arith.addf %42, %43 : vector<2x128xf32>
    %cst_20 = arith.constant 0.000000e+00 : f32
    %45 = vector.broadcast %cst_20 : f32 to vector<2x128xf32>
    %46 = arith.maximumf %44, %45 : vector<2x128xf32>
    %47 = arith.truncf %46 : vector<2x128xf32> to vector<2x128xbf16>
    %c384 = arith.constant 384 : index
    %c0_21 = arith.constant 0 : index
    %48 = vector.load %arg3[%c384, %c0_21] : memref<512x128xbf16, #tpu.memory_space<vmem>>, vector<128x128xbf16>
    %cst_22 = arith.constant dense<0.000000e+00> : vector<2x128xf32>
    %49 = tpu.matmul %47, %48, %cst_22 {dimension_numbers = #tpu.dot_dimension_numbers<[1], [0], [0], [1], [0, 0, 1, 1], [], []>} : vector<2x128xbf16>, vector<128x128xbf16>, vector<2x128xf32> -> vector<2x128xf32>
    %50 = vector.broadcast %4 : vector<1x128xf32> to vector<2x128xf32>
    %51 = arith.addf %49, %50 : vector<2x128xf32>
    %c0_23 = arith.constant 0 : index
    %c0_24 = arith.constant 0 : index
    %52 = vector.load %arg5[%c0_23, %c0_24] : memref<2x128xf32, #tpu.memory_space<vmem>>, vector<2x128xf32>
    tpu.vector_store %arg5[%c0_23, %c0_24], %51 {strides = array<i32>} : memref<2x128xf32, #tpu.memory_space<vmem>>, vector<2x128xf32>,
    return
  }
}

</mosaic_0001>

<bundles_post_ra>
// kernel: garment_classifier_forward.1
= control target key start
LH: loop header
LB: loop body
LE: loop exit
PB: predicated region body
PF: predicated region fallthrough
CT: control target
= control target key end

     0   :  { %10 = vsyncpa [#allocation3], 0  ;;  %s8665_s0 = inlined_call_operand.vmem [shape: bf16[8,768], index: 0, kind: input, shape index: {}]   ;;  %s8666_s1 = inlined_call_operand.hbm [shape: bf16[768,896], index: 1, kind: input, shape index: {}]   ;;  %s8667_s2 = inlined_call_operand.hbm [shape: bf16[896,1024], index: 2, kind: input, shape index: {}]   ;;  %s8668_s3 = inlined_call_operand.hbm [shape: bf16[512,128], index: 3, kind: input, shape index: {}]   ;;  %s8669_s4 = inlined_call_operand.hbm [shape: f32[1,2304], index: 4, kind: input, shape index: {}]   ;;  %s8670_s5 = inlined_call_operand.hbm [shape: f32[2,128], index: 5, kind: output, shape index: {}]  }
   0x1   :  { %11 = vsyncpa [#allocation6], 0 }
   0x2   :  { %12 = vsyncpa [#allocation9], 0 }
   0x3   :  { %13 = vsyncpa [#allocation4], 0  ;;  %s8337_s18 = smov [#allocation5]   ;;  %s8219_s22 = scalar_lea.hbm %s8667_s2, 57344 }
   0x4   :  { %s33_s19 = sshll.u32 %s8337_s18, 4  ;;  %p8220_p0 = scmp.ne.s32.totalorder %s8667_s2, %s8219_s22  ;;  %s34_s19 = int_to_ptr.vmem [resolvable:$true] %s33_s19 }
   0x5   :  { %p8223_p1 = scmp.lt.u32.totalorder %s8219_s22, %s8667_s2 }
   0x7   :  { %p8225_p2 = pnand %p8223_p1, %p8220_p0 }
   0x9   :  { %8228 = shalt.err (!%p8225_p2)
}
   0xa   :  { %s8229_s27 = scalar_lea.vmem %s34_s19, 57344  ;;  %p8234_p4 = scmp.lt.s32.totalorder %s34_s19, %s34_s19 }
   0xb   :  { %p8230_p3 = scmp.ne.s32.totalorder %s34_s19, %s8229_s27  ;;  %p8235_p5 = scmp.lt.s32.totalorder %s8229_s27, %s8229_s27 }
   0xd   :  { %p8236_p6 = por %p8235_p5, %p8234_p4 }
   0xf   :  { %p8237_p7 = pnand %p8236_p6, %p8230_p3 }
  0x11   :  { %8240 = shalt.err (!%p8237_p7)
}
  0x12   :  { %s8338_s28 = smov 512   ;;  %s8339_s29 = smov 32  }
  0x13   :  { %39 = dma.hbm_to_vmem [thread:$0]  %s8667_s2, 57344, %s34_s19, [#allocation6], %s8338_s28, %s8338_s28, %s8339_s29  }
  0x14   :  { %s8340_s7 = smov [#allocation2]   ;;  %s8241_s11 = scalar_lea.hbm %s8666_s1, 43008 }
  0x15   :  { %s21_s8 = sshll.u32 %s8340_s7, 4  ;;  %p8242_p8 = scmp.ne.s32.totalorder %s8666_s1, %s8241_s11  ;;  %s22_s8 = int_to_ptr.vmem [resolvable:$true] %s21_s8 }
  0x16   :  { %p8245_p9 = scmp.lt.u32.totalorder %s8241_s11, %s8666_s1 }
  0x18   :  { %p8247_p10 = pnand %p8245_p9, %p8242_p8 }
  0x1a   :  { %8250 = shalt.err (!%p8247_p10)
}
  0x1b   :  { %s8251_s16 = scalar_lea.vmem %s22_s8, 43008  ;;  %p8256_p12 = scmp.lt.s32.totalorder %s22_s8, %s22_s8 }
  0x1c   :  { %p8252_p11 = scmp.ne.s32.totalorder %s22_s8, %s8251_s16  ;;  %p8257_p13 = scmp.lt.s32.totalorder %s8251_s16, %s8251_s16 }
  0x1e   :  { %p8258_p0 = por %p8257_p13, %p8256_p12 }
  0x20   :  { %p8259_p1 = pnand %p8258_p0, %p8252_p11 }
  0x22   :  { %8262 = shalt.err (!%p8259_p1)
}
  0x23   :  { %s8341_s2 = smov 448   ;;  %s8342_s17 = smov 28  }
  0x24   :  { %27 = dma.hbm_to_vmem [thread:$0]  %s8666_s1, 43008, %s22_s8, [#allocation3], %s8341_s2, %s8341_s2, %s8342_s17  }
  0x25   :  { %s8343_s20 = smov [#allocation7]   ;;  %s8263_s24 = scalar_lea.hbm %s8668_s3, 4096 }
  0x26   :  { %s45_s21 = sshll.u32 %s8343_s20, 4  ;;  %p8264_p2 = scmp.ne.s32.totalorder %s8668_s3, %s8263_s24  ;;  %s46_s21 = int_to_ptr.vmem [resolvable:$true] %s45_s21 }
  0x27   :  { %p8267_p3 = scmp.lt.u32.totalorder %s8263_s24, %s8668_s3 }
  0x29   :  { %p8269_p4 = pnand %p8267_p3, %p8264_p2 }
  0x2b   :  { %8272 = shalt.err (!%p8269_p4)
}
  0x2c   :  { %s8273_s29 = scalar_lea.vmem %s46_s21, 4096  ;;  %p8278_p6 = scmp.lt.s32.totalorder %s46_s21, %s46_s21 }
  0x2d   :  { %p8274_p5 = scmp.ne.s32.totalorder %s46_s21, %s8273_s29  ;;  %p8279_p7 = scmp.lt.s32.totalorder %s8273_s29, %s8273_s29 }
  0x2f   :  { %p8280_p8 = por %p8279_p7, %p8278_p6 }
  0x31   :  { %p8281_p9 = pnand %p8280_p8, %p8274_p5 }
  0x33   :  { %8284 = shalt.err (!%p8281_p9)
}
  0x34   :  { %s8344_s1 = smov 64   ;;  %s8345_s30 = smov 4  }
  0x35   :  { %51 = dma.hbm_to_vmem [thread:$0]  %s8668_s3, 4096, %s46_s21, [#allocation6], %s8344_s1, %s8344_s1, %s8345_s30  }
  0x36   :  { %s8346_s8 = smov [#allocation8]   ;;  %s8285_s12 = scalar_lea.hbm %s8669_s4, 288 }
  0x37   :  { %s58_s9 = sshll.u32 %s8346_s8, 4  ;;  %p8286_p10 = scmp.ne.s32.totalorder %s8669_s4, %s8285_s12  ;;  %s59_s9 = int_to_ptr.vmem [resolvable:$true] %s58_s9 }
  0x38   :  { %p8289_p11 = scmp.lt.u32.totalorder %s8285_s12, %s8669_s4 }
  0x3a   :  { %p8291_p12 = pnand %p8289_p11, %p8286_p10 }
  0x3c   :  { %8294 = shalt.err (!%p8291_p12)
}
  0x3d   :  { %s8295_s2 = scalar_lea.vmem %s59_s9, 288  ;;  %p8300_p0 = scmp.lt.s32.totalorder %s59_s9, %s59_s9 }
  0x3e   :  { %p8296_p13 = scmp.ne.s32.totalorder %s59_s9, %s8295_s2  ;;  %p8301_p1 = scmp.lt.s32.totalorder %s8295_s2, %s8295_s2 }
  0x40   :  { %p8302_p2 = por %p8301_p1, %p8300_p0 }
  0x42   :  { %p8303_p3 = pnand %p8302_p2, %p8296_p13 }
  0x44   :  { %8306 = shalt.err (!%p8303_p3)
}
  0x45   :  { %61 = dma.hbm_to_vmem [thread:$0]  %s8669_s4, 288, %s59_s9, [#allocation9]  }
  0x46   :  { %8329 = dma.done.wait [#allocation3], 43008  }
  0x47   :  { %8330 = vsyncadd [#allocation3], 4294924288 }
  0x48   :  { %8331 = dma.done.wait [#allocation6], 61440  }
  0x49   :  { %8332 = vsyncadd [#allocation6], 4294905856 }
  0x4a   :  { %8333 = dma.done.wait [#allocation9], 288  }
  0x4b   :  { %8334 = vsyncadd [#allocation9], 4294967008  ;;  %v7700_v0 = vld [vmem:[#allocation2 + $0x4] ss:$28 sps:$4 sm:$0xff]   ;;  %v7702_v1 = vld [vmem:[#allocation2 + $0xc] ss:$28 sps:$4 sm:$0xff]  }
  0x4c   :  { %2216 = vmatprep.subr.bf16.mxu0 %v7700_v0  ;;  %v7704_v2 = vld [vmem:[#allocation2] ss:$28 sps:$4 sm:$0xff]   ;;  %v7705_v3 = vld [vmem:[#allocation2 + $0x8] ss:$28 sps:$4 sm:$0xff]   ;;  %2339 = vmatprep.subr.bf16.mxu1 %v7702_v1  ;;  %v7710_v6 = vld [vmem:[#allocation2 + $0x38] ss:$28 sps:$4 sm:$0xff]  }
  0x4d   :  { %v7706_v4 = vld [vmem:[#allocation2 + $0x3c] ss:$28 sps:$4 sm:$0xff]   ;;  %2217 = vmatpush1.bf16.msra.mxu0 %v7704_v2  ;;  %2340 = vmatpush1.bf16.msra.mxu1 %v7705_v3  ;;  %v7708_v5 = vld [vmem:[#allocation2 + $0x44] ss:$28 sps:$4 sm:$0xff]   ;;  %v7712_v8 = vld [vmem:[#allocation2 + $0x74] ss:$28 sps:$4 sm:$0xff]  }
  0x4e   :  { %2218 = vmatprep.subr.bf16.mxu0 %v7706_v4  ;;  %v7711_v7 = vld [vmem:[#allocation2 + $0x40] ss:$28 sps:$4 sm:$0xff]   ;;  %2341 = vmatprep.subr.bf16.mxu1 %v7708_v5  ;;  %v7716_v10 = vld [vmem:[#allocation2 + $0x70] ss:$28 sps:$4 sm:$0xff]   ;;  %v7717_v11 = vld [vmem:[#allocation2 + $0x78] ss:$28 sps:$4 sm:$0xff]  }
  0x4f   :  { %v7714_v9 = vld [vmem:[#allocation2 + $0x7c] ss:$28 sps:$4 sm:$0xff]   ;;  %v7718_v12 = vld [vmem:[#allocation2 + $0xac] ss:$28 sps:$4 sm:$0xff]   ;;  %v7720_v13 = vld [vmem:[#allocation2 + $0xb4] ss:$28 sps:$4 sm:$0xff]  }
  0x50   :  { %v7722_v14 = vld [vmem:[#allocation2 + $0xa8] ss:$28 sps:$4 sm:$0xff]   ;;  %v7723_v15 = vld [vmem:[#allocation2 + $0xb0] ss:$28 sps:$4 sm:$0xff]   ;;  %v7728_v18 = vld [vmem:[#allocation2 + $0xe0] ss:$28 sps:$4 sm:$0xff]  }
  0x51   :  { %2219 = vmatpush1.bf16.msra.mxu0 %v7710_v6  ;;  %2342 = vmatpush1.bf16.msra.mxu1 %v7711_v7  ;;  %v7724_v16 = vld [vmem:[#allocation2 + $0xe4] ss:$28 sps:$4 sm:$0xff]   ;;  %v7726_v17 = vld [vmem:[#allocation2 + $0xec] ss:$28 sps:$4 sm:$0xff]   ;;  %v7730_v20 = vld [vmem:[#allocation2 + $0x11c] ss:$28 sps:$4 sm:$0xff]  }
  0x52   :  { %2220 = vmatprep.subr.bf16.mxu0 %v7712_v8  ;;  %2343 = vmatprep.subr.bf16.mxu1 %v7714_v9  ;;  %v7729_v19 = vld [vmem:[#allocation2 + $0xe8] ss:$28 sps:$4 sm:$0xff]   ;;  %v7734_v22 = vld [vmem:[#allocation2 + $0x118] ss:$28 sps:$4 sm:$0xff]   ;;  %v7735_v23 = vld [vmem:[#allocation2 + $0x120] ss:$28 sps:$4 sm:$0xff]  }
  0x53   :  { %v7732_v21 = vld [vmem:[#allocation2 + $0x124] ss:$28 sps:$4 sm:$0xff]   ;;  %v7736_v24 = vld [vmem:[#allocation2 + $0x154] ss:$28 sps:$4 sm:$0xff]   ;;  %v7738_v25 = vld [vmem:[#allocation2 + $0x15c] ss:$28 sps:$4 sm:$0xff]  }
  0x54   :  { %v7740_v26 = vld [vmem:[#allocation2 + $0x150] ss:$28 sps:$4 sm:$0xff]   ;;  %v7741_v27 = vld [vmem:[#allocation2 + $0x158] ss:$28 sps:$4 sm:$0xff]   ;;  %v7746_v30 = vld [vmem:[#allocation2 + $0x188] ss:$28 sps:$4 sm:$0xff]  }
  0x55   :  { %2221 = vmatpush1.bf16.msra.mxu0 %v7716_v10  ;;  %2344 = vmatpush1.bf16.msra.mxu1 %v7717_v11  ;;  %v7742_v28 = vld [vmem:[#allocation2 + $0x18c] ss:$28 sps:$4 sm:$0xff]   ;;  %v7744_v29 = vld [vmem:[#allocation2 + $0x194] ss:$28 sps:$4 sm:$0xff]   ;;  %v7748_v32 = vld [vmem:[#allocation2 + $0x1c4] ss:$28 sps:$4 sm:$0xff]  }
  0x56   :  { %2222 = vmatprep.subr.bf16.mxu0 %v7718_v12  ;;  %2345 = vmatprep.subr.bf16.mxu1 %v7720_v13  ;;  %v7747_v31 = vld [vmem:[#allocation2 + $0x190] ss:$28 sps:$4 sm:$0xff]   ;;  %v7752_v34 = vld [vmem:[#allocation2 + $0x1c0] ss:$28 sps:$4 sm:$0xff]   ;;  %v7753_v35 = vld [vmem:[#allocation2 + $0x1c8] ss:$28 sps:$4 sm:$0xff]  }
  0x57   :  { %v7750_v33 = vld [vmem:[#allocation2 + $0x1cc] ss:$28 sps:$4 sm:$0xff]   ;;  %v7754_v36 = vld [vmem:[#allocation2 + $0x1fc] ss:$28 sps:$4 sm:$0xff]   ;;  %v7756_v37 = vld [vmem:[#allocation2 + $0x204] ss:$28 sps:$4 sm:$0xff]  }
  0x58   :  { %v7758_v38 = vld [vmem:[#allocation2 + $0x1f8] ss:$28 sps:$4 sm:$0xff]   ;;  %v7759_v39 = vld [vmem:[#allocation2 + $0x200] ss:$28 sps:$4 sm:$0xff]   ;;  %v7764_v42 = vld [vmem:[#allocation2 + $0x230] ss:$28 sps:$4 sm:$0xff]  }
  0x59   :  { %2223 = vmatpush1.bf16.msra.mxu0 %v7722_v14  ;;  %2346 = vmatpush1.bf16.msra.mxu1 %v7723_v15  ;;  %v7760_v40 = vld [vmem:[#allocation2 + $0x234] ss:$28 sps:$4 sm:$0xff]   ;;  %v7762_v41 = vld [vmem:[#allocation2 + $0x23c] ss:$28 sps:$4 sm:$0xff]   ;;  %v7766_v44 = vld [vmem:[#allocation2 + $0x26c] ss:$28 sps:$4 sm:$0xff]  }
  0x5a   :  { %2224 = vmatprep.subr.bf16.mxu0 %v7724_v16  ;;  %2347 = vmatprep.subr.bf16.mxu1 %v7726_v17  ;;  %v7765_v43 = vld [vmem:[#allocation2 + $0x238] ss:$28 sps:$4 sm:$0xff]   ;;  %v80_v46 = vld [vmem:[%s8665_s0] sm:$0xff]  ;;  %v7771_v49 = vld [vmem:[#allocation2 + $0x270] ss:$28 sps:$4 sm:$0xff]   ;;  %vm8349_vm0 = vmmov 0  }
  0x5b   :  { %v7768_v45 = vld [vmem:[#allocation2 + $0x274] ss:$28 sps:$4 sm:$0xff]   ;;  %v7770_v47 = vld [vmem:[#allocation2 + $0x268] ss:$28 sps:$4 sm:$0xff]   ;;  %v8432_v48 = vcombine.high %v80_v46, %v80_v46  ;;  %v7776_v52 = vld [vmem:[#allocation2 + $0x2a0] ss:$28 sps:$4 sm:$0xff]   ;;  %v8436_v5 = vcombine.low %v80_v46, %v80_v46 }
  0x5c   :  { %v7772_v50 = vld [vmem:[#allocation2 + $0x2a4] ss:$28 sps:$4 sm:$0xff]   ;;  %v7774_v51 = vld [vmem:[#allocation2 + $0x2ac] ss:$28 sps:$4 sm:$0xff]   ;;  %v7778_v54 = vld [vmem:[#allocation2 + $0x2dc] ss:$28 sps:$4 sm:$0xff]  }
  0x5d   :  { %2225 = vmatpush1.bf16.msra.mxu0 %v7728_v18  ;;  %2348 = vmatpush1.bf16.msra.mxu1 %v7729_v19  ;;  %v7777_v53 = vld [vmem:[#allocation2 + $0x2a8] ss:$28 sps:$4 sm:$0xff]   ;;  %v7782_v56 = vld [vmem:[#allocation2 + $0x2d8] ss:$28 sps:$4 sm:$0xff]   ;;  %v7783_v57 = vld [vmem:[#allocation2 + $0x2e0] ss:$28 sps:$4 sm:$0xff]  }
  0x5e   :  { %2226 = vmatprep.subr.bf16.mxu0 %v7730_v20  ;;  %2349 = vmatprep.subr.bf16.mxu1 %v7732_v21  ;;  %v7780_v55 = vld [vmem:[#allocation2 + $0x2e4] ss:$28 sps:$4 sm:$0xff]   ;;  %v7784_v58 = vld [vmem:[#allocation2 + $0x314] ss:$28 sps:$4 sm:$0xff]   ;;  %v7786_v59 = vld [vmem:[#allocation2 + $0x31c] ss:$28 sps:$4 sm:$0xff]  }
  0x5f   :  { %2248 = vmatprep.mubr.bf16.mxu0 %v8432_v48  ;;  %2371 = vmatprep.mubr.bf16.mxu1 %v8432_v48  ;;  %v7788_v60 = vld [vmem:[#allocation2 + $0x310] ss:$28 sps:$4 sm:$0xff]   ;;  %v7789_v61 = vld [vmem:[#allocation2 + $0x318] ss:$28 sps:$4 sm:$0xff]   ;;  %v7794_v0 = vld [vmem:[#allocation2 + $0x348] ss:$28 sps:$4 sm:$0xff]  }
  0x60   :  { %v7790_v62 = vld [vmem:[#allocation2 + $0x34c] ss:$28 sps:$4 sm:$0xff]   ;;  %v7792_v63 = vld [vmem:[#allocation2 + $0x354] ss:$28 sps:$4 sm:$0xff]   ;;  %v7799_v2 = vld [vmem:[#allocation2 + $0x384] ss:$28 sps:$4 sm:$0xff]  }
  0x61   :  { %2227 = vmatpush1.bf16.msra.mxu0 %v7734_v22  ;;  %2350 = vmatpush1.bf16.msra.mxu1 %v7735_v23  ;;  %v7795_v1 = vld [vmem:[#allocation2 + $0x350] ss:$28 sps:$4 sm:$0xff]   ;;  %v7797_v4 = vld [vmem:[#allocation2 + $0x380] ss:$28 sps:$4 sm:$0xff]   ;;  %v7800_v6 = vld [vmem:[#allocation2 + $0x388] ss:$28 sps:$4 sm:$0xff]  }
  0x62   :  { %2228 = vmatprep.subr.bf16.mxu0 %v7736_v24  ;;  %2351 = vmatprep.subr.bf16.mxu1 %v7738_v25  ;;  %v7802_v3 = vld [vmem:[#allocation2 + $0x38c] ss:$28 sps:$4 sm:$0xff]   ;;  %v7806_v7 = vld [vmem:[#allocation2 + $0x3bc] ss:$28 sps:$4 sm:$0xff]   ;;  %v7809_v8 = vld [vmem:[#allocation2 + $0x3c4] ss:$28 sps:$4 sm:$0xff]  }
  0x63   :  { %v7804_v9 = vld [vmem:[#allocation2 + $0x3b8] ss:$28 sps:$4 sm:$0xff]   ;;  %v7807_v10 = vld [vmem:[#allocation2 + $0x3c0] ss:$28 sps:$4 sm:$0xff]   ;;  %v7810_v13 = vld [vmem:[#allocation2 + $0x3f0] ss:$28 sps:$4 sm:$0xff]  }
  0x64   :  { %v7812_v11 = vld [vmem:[#allocation2 + $0x3f4] ss:$28 sps:$4 sm:$0xff]   ;;  %v7815_v12 = vld [vmem:[#allocation2 + $0x3fc] ss:$28 sps:$4 sm:$0xff]   ;;  %v7818_v15 = vld [vmem:[#allocation2 + $0x42c] ss:$28 sps:$4 sm:$0xff]  }
  0x65   :  { %2229 = vmatpush1.bf16.msra.mxu0 %v7740_v26  ;;  %2352 = vmatpush1.bf16.msra.mxu1 %v7741_v27  ;;  %v7813_v14 = vld [vmem:[#allocation2 + $0x3f8] ss:$28 sps:$4 sm:$0xff]   ;;  %v7816_v17 = vld [vmem:[#allocation2 + $0x428] ss:$28 sps:$4 sm:$0xff]   ;;  %v7819_v18 = vld [vmem:[#allocation2 + $0x430] ss:$28 sps:$4 sm:$0xff]  }
  0x66   :  { %2230 = vmatprep.subr.bf16.mxu0 %v7742_v28  ;;  %2353 = vmatprep.subr.bf16.mxu1 %v7744_v29  ;;  %v7821_v16 = vld [vmem:[#allocation2 + $0x434] ss:$28 sps:$4 sm:$0xff]   ;;  %v7824_v19 = vld [vmem:[#allocation2 + $0x464] ss:$28 sps:$4 sm:$0xff]   ;;  %v7827_v20 = vld [vmem:[#allocation2 + $0x46c] ss:$28 sps:$4 sm:$0xff]  }
  0x67   :  { %v7822_v21 = vld [vmem:[#allocation2 + $0x460] ss:$28 sps:$4 sm:$0xff]   ;;  %v7825_v22 = vld [vmem:[#allocation2 + $0x468] ss:$28 sps:$4 sm:$0xff]   ;;  %v7828_v25 = vld [vmem:[#allocation2 + $0x498] ss:$28 sps:$4 sm:$0xff]  }
  0x68   :  { %v7830_v23 = vld [vmem:[#allocation2 + $0x49c] ss:$28 sps:$4 sm:$0xff]   ;;  %v7833_v24 = vld [vmem:[#allocation2 + $0x4a4] ss:$28 sps:$4 sm:$0xff]   ;;  %v7836_v27 = vld [vmem:[#allocation2 + $0x4d4] ss:$28 sps:$4 sm:$0xff]  }
  0x69   :  { %2231 = vmatpush1.bf16.msra.mxu0 %v7746_v30  ;;  %2354 = vmatpush1.bf16.msra.mxu1 %v7747_v31  ;;  %v7831_v26 = vld [vmem:[#allocation2 + $0x4a0] ss:$28 sps:$4 sm:$0xff]   ;;  %v8443_v29 = vld [vmem:[%s8665_s0 + $0x8] sm:$0xff] }
  0x6a   :  { %2232 = vmatprep.subr.bf16.mxu0 %v7748_v32  ;;  %2355 = vmatprep.subr.bf16.mxu1 %v7750_v33  ;;  %v7839_v28 = vld [vmem:[#allocation2 + $0x4dc] ss:$28 sps:$4 sm:$0xff]   ;;  %v8447_v30 = vcombine.high %v8443_v29, %v8443_v29  ;;  %v7834_v31 = vld [vmem:[#allocation2 + $0x4d0] ss:$28 sps:$4 sm:$0xff]  }
  0x6b   :  { %v7837_v32 = vld [vmem:[#allocation2 + $0x4d8] ss:$28 sps:$4 sm:$0xff]   ;;  %v7842_v33 = vld [vmem:[#allocation2 + $0x50c] ss:$28 sps:$4 sm:$0xff]  }
  0x6c   :  { %v7863_v46 = vld [vmem:[#allocation2 + $0x5bc] ss:$28 sps:$4 sm:$0xff]  }
  0x6d   :  { %2233 = vmatpush1.bf16.msra.mxu0 %v7752_v34  ;;  %2356 = vmatpush1.bf16.msra.mxu1 %v7753_v35  ;;  %v7845_v34 = vld [vmem:[#allocation2 + $0x514] ss:$28 sps:$4 sm:$0xff]   ;;  %v7840_v35 = vld [vmem:[#allocation2 + $0x508] ss:$28 sps:$4 sm:$0xff]  }
  0x6e   :  { %2234 = vmatprep.subr.bf16.mxu0 %v7754_v36  ;;  %2357 = vmatprep.subr.bf16.mxu1 %v7756_v37  ;;  %v7843_v36 = vld [vmem:[#allocation2 + $0x510] ss:$28 sps:$4 sm:$0xff]   ;;  %v7848_v37 = vld [vmem:[#allocation2 + $0x544] ss:$28 sps:$4 sm:$0xff]  }
  0x71   :  { %2235 = vmatpush1.bf16.msra.mxu0 %v7758_v38  ;;  %2358 = vmatpush1.bf16.msra.mxu1 %v7759_v39  ;;  %v7851_v38 = vld [vmem:[#allocation2 + $0x54c] ss:$28 sps:$4 sm:$0xff]   ;;  %v7846_v39 = vld [vmem:[#allocation2 + $0x540] ss:$28 sps:$4 sm:$0xff]  }
  0x72   :  { %2236 = vmatprep.subr.bf16.mxu0 %v7760_v40  ;;  %2359 = vmatprep.subr.bf16.mxu1 %v7762_v41  ;;  %v7849_v40 = vld [vmem:[#allocation2 + $0x548] ss:$28 sps:$4 sm:$0xff]   ;;  %v7854_v41 = vld [vmem:[#allocation2 + $0x57c] ss:$28 sps:$4 sm:$0xff]  }
  0x75   :  { %2237 = vmatpush1.bf16.msra.mxu0 %v7764_v42  ;;  %2360 = vmatpush1.bf16.msra.mxu1 %v7765_v43  ;;  %v7857_v42 = vld [vmem:[#allocation2 + $0x584] ss:$28 sps:$4 sm:$0xff]   ;;  %v7852_v43 = vld [vmem:[#allocation2 + $0x578] ss:$28 sps:$4 sm:$0xff]  }
  0x76   :  { %2238 = vmatprep.subr.bf16.mxu0 %v7766_v44  ;;  %2361 = vmatprep.subr.bf16.mxu1 %v7768_v45  ;;  %v7855_v44 = vld [vmem:[#allocation2 + $0x580] ss:$28 sps:$4 sm:$0xff]   ;;  %v7860_v45 = vld [vmem:[#allocation2 + $0x5b4] ss:$28 sps:$4 sm:$0xff]  }
  0x79   :  { %2239 = vmatpush1.bf16.msra.mxu0 %v7770_v47  ;;  %2362 = vmatpush1.bf16.msra.mxu1 %v7771_v49  ;;  %v7858_v47 = vld [vmem:[#allocation2 + $0x5b0] ss:$28 sps:$4 sm:$0xff]   ;;  %v7861_v49 = vld [vmem:[#allocation2 + $0x5b8] ss:$28 sps:$4 sm:$0xff]  }
  0x7a   :  { %2240 = vmatprep.subr.bf16.mxu0 %v7772_v50  ;;  %2363 = vmatprep.subr.bf16.mxu1 %v7774_v51  ;;  %v7866_v50 = vld [vmem:[#allocation2 + $0x5ec] ss:$28 sps:$4 sm:$0xff]   ;;  %v7869_v51 = vld [vmem:[#allocation2 + $0x5f4] ss:$28 sps:$4 sm:$0xff]  }
  0x7d   :  { %2241 = vmatpush1.bf16.msra.mxu0 %v7776_v52  ;;  %2364 = vmatpush1.bf16.msra.mxu1 %v7777_v53  ;;  %v7864_v52 = vld [vmem:[#allocation2 + $0x5e8] ss:$28 sps:$4 sm:$0xff]   ;;  %v7867_v53 = vld [vmem:[#allocation2 + $0x5f0] ss:$28 sps:$4 sm:$0xff]  }
  0x7e   :  { %2242 = vmatprep.subr.bf16.mxu0 %v7778_v54  ;;  %2365 = vmatprep.subr.bf16.mxu1 %v7780_v55  ;;  %v7872_v54 = vld [vmem:[#allocation2 + $0x624] ss:$28 sps:$4 sm:$0xff]   ;;  %v7875_v55 = vld [vmem:[#allocation2 + $0x62c] ss:$28 sps:$4 sm:$0xff]  }
  0x81   :  { %2243 = vmatpush1.bf16.msra.mxu0 %v7782_v56  ;;  %2366 = vmatpush1.bf16.msra.mxu1 %v7783_v57  ;;  %v7870_v56 = vld [vmem:[#allocation2 + $0x620] ss:$28 sps:$4 sm:$0xff]   ;;  %v7873_v57 = vld [vmem:[#allocation2 + $0x628] ss:$28 sps:$4 sm:$0xff]  }
  0x82   :  { %2244 = vmatprep.subr.bf16.mxu0 %v7784_v58  ;;  %2367 = vmatprep.subr.bf16.mxu1 %v7786_v59  ;;  %v7878_v58 = vld [vmem:[#allocation2 + $0x65c] ss:$28 sps:$4 sm:$0xff]   ;;  %v7881_v59 = vld [vmem:[#allocation2 + $0x664] ss:$28 sps:$4 sm:$0xff]  }
  0x85   :  { %2245 = vmatpush1.bf16.msra.mxu0 %v7788_v60  ;;  %2368 = vmatpush1.bf16.msra.mxu1 %v7789_v61  ;;  %v7876_v60 = vld [vmem:[#allocation2 + $0x658] ss:$28 sps:$4 sm:$0xff]   ;;  %v7879_v61 = vld [vmem:[#allocation2 + $0x660] ss:$28 sps:$4 sm:$0xff]  }
  0x86   :  { %2246 = vmatprep.subr.bf16.mxu0 %v7790_v62  ;;  %2369 = vmatprep.subr.bf16.mxu1 %v7792_v63  ;;  %v7884_v62 = vld [vmem:[#allocation2 + $0x694] ss:$28 sps:$4 sm:$0xff]   ;;  %v7887_v63 = vld [vmem:[#allocation2 + $0x69c] ss:$28 sps:$4 sm:$0xff]  }
  0x89   :  { %2247 = vmatpush1.bf16.msra.mxu0 %v7794_v0  ;;  %2370 = vmatpush1.bf16.msra.mxu1 %v7795_v1  ;;  %v7882_v0 = vld [vmem:[#allocation2 + $0x690] ss:$28 sps:$4 sm:$0xff]   ;;  %v7885_v1 = vld [vmem:[#allocation2 + $0x698] ss:$28 sps:$4 sm:$0xff]  }
  0x8a   :  { %2257 = vmatprep.subr.bf16.mxu0 %v7799_v2  ;;  %2380 = vmatprep.subr.bf16.mxu1 %v7802_v3  ;;  %v7890_v2 = vld [vmem:[#allocation2 + $0x6cc] ss:$28 sps:$4 sm:$0xff]   ;;  %v7893_v3 = vld [vmem:[#allocation2 + $0x6d4] ss:$28 sps:$4 sm:$0xff]  }
  0x8c   :  { %2249 = vmatmul.mubr.bf16.vlgmr.msra.gmra.mrb[0].mxu0 %v8436_v5  ;;  %2372 = vmatmul.mubr.bf16.vlgmr.msra.gmra.mrb[0].mxu1 %v8436_v5 }
  0x8d   :  { %2258 = vmatpush1.bf16.msra.mxu0 %v7797_v4  ;;  %2381 = vmatpush1.bf16.msra.mxu1 %v7800_v6  ;;  %v7888_v4 = vld [vmem:[#allocation2 + $0x6c8] ss:$28 sps:$4 sm:$0xff]   ;;  %v7891_v6 = vld [vmem:[#allocation2 + $0x6d0] ss:$28 sps:$4 sm:$0xff]  }
  0x8e   :  { %2259 = vmatprep.subr.bf16.mxu0 %v7806_v7  ;;  %2382 = vmatprep.subr.bf16.mxu1 %v7809_v8  ;;  %v7897_v7 = vld [vmem:[#allocation2 + $0x704] ss:$28 sps:$4 sm:$0xff]   ;;  %v7900_v8 = vld [vmem:[#allocation2 + $0x70c] ss:$28 sps:$4 sm:$0xff]  }
  0x8f   :  { %2289 = vmatprep.mubr.bf16.mxu0 %v8447_v30  ;;  %2412 = vmatprep.mubr.bf16.mxu1 %v8447_v30 }
  0x91   :  { %2260 = vmatpush1.bf16.msra.mxu0 %v7804_v9  ;;  %2383 = vmatpush1.bf16.msra.mxu1 %v7807_v10  ;;  %v7895_v9 = vld [vmem:[#allocation2 + $0x700] ss:$28 sps:$4 sm:$0xff]   ;;  %v8453_v10 = vcombine.low %v8443_v29, %v8443_v29  ;;  %v7923_v29 = vld [vmem:[#allocation2 + $0x7e8] ss:$28 sps:$4 sm:$0xff]  }
  0x92   :  { %2261 = vmatprep.subr.bf16.mxu0 %v7812_v11  ;;  %2384 = vmatprep.subr.bf16.mxu1 %v7815_v12  ;;  %v7898_v11 = vld [vmem:[#allocation2 + $0x708] ss:$28 sps:$4 sm:$0xff]   ;;  %v7904_v12 = vld [vmem:[#allocation2 + $0x73c] ss:$28 sps:$4 sm:$0xff]  }
  0x95   :  { %2262 = vmatpush1.bf16.msra.mxu0 %v7810_v13  ;;  %2385 = vmatpush1.bf16.msra.mxu1 %v7813_v14  ;;  %v8458_v13 = vld [vmem:[%s8665_s0 + $0x10] sm:$0xff]  ;;  %v7907_v14 = vld [vmem:[#allocation2 + $0x744] ss:$28 sps:$4 sm:$0xff]   ;;  %s8350_s0 = smov [#allocation10]  }
  0x96   :  { %2263 = vmatprep.subr.bf16.mxu0 %v7818_v15  ;;  %2386 = vmatprep.subr.bf16.mxu1 %v7821_v16  ;;  %v8462_v15 = vcombine.high %v8458_v13, %v8458_v13  ;;  %v7902_v16 = vld [vmem:[#allocation2 + $0x738] ss:$28 sps:$4 sm:$0xff]   ;;  %s6624_s23 = sshll.u32 %s8350_s0, 4  ;;  %s6625_s23 = int_to_ptr.vmem [resolvable:$true] %s6624_s23 }
  0x97   :  { %s8307_s24 = scalar_lea.vmem %s6625_s23, 32  ;;  %p8312_p5 = scmp.lt.s32.totalorder %s6625_s23, %s6625_s23 }
  0x98   :  { %p8308_p4 = scmp.ne.s32.totalorder %s6625_s23, %s8307_s24  ;;  %p8313_p6 = scmp.lt.s32.totalorder %s8307_s24, %s8307_s24 }
  0x99   :  { %2264 = vmatpush1.bf16.msra.mxu0 %v7816_v17  ;;  %2387 = vmatpush1.bf16.msra.mxu1 %v7819_v18  ;;  %v7905_v17 = vld [vmem:[#allocation2 + $0x740] ss:$28 sps:$4 sm:$0xff]   ;;  %v7910_v18 = vld [vmem:[#allocation2 + $0x774] ss:$28 sps:$4 sm:$0xff]  }
  0x9a   :  { %2265 = vmatprep.subr.bf16.mxu0 %v7824_v19  ;;  %2388 = vmatprep.subr.bf16.mxu1 %v7827_v20  ;;  %v7913_v19 = vld [vmem:[#allocation2 + $0x77c] ss:$28 sps:$4 sm:$0xff]   ;;  %v7908_v20 = vld [vmem:[#allocation2 + $0x770] ss:$28 sps:$4 sm:$0xff]   ;;  %p8314_p7 = por %p8313_p6, %p8312_p5 }
  0x9c   :  { %p8315_p8 = pnand %p8314_p7, %p8308_p4 }
  0x9d   :  { %2266 = vmatpush1.bf16.msra.mxu0 %v7822_v21  ;;  %2389 = vmatpush1.bf16.msra.mxu1 %v7825_v22  ;;  %v7911_v21 = vld [vmem:[#allocation2 + $0x778] ss:$28 sps:$4 sm:$0xff]   ;;  %v7916_v22 = vld [vmem:[#allocation2 + $0x7ac] ss:$28 sps:$4 sm:$0xff]  }
  0x9e   :  { %2267 = vmatprep.subr.bf16.mxu0 %v7830_v23  ;;  %2390 = vmatprep.subr.bf16.mxu1 %v7833_v24  ;;  %v7919_v23 = vld [vmem:[#allocation2 + $0x7b4] ss:$28 sps:$4 sm:$0xff]   ;;  %v7914_v24 = vld [vmem:[#allocation2 + $0x7a8] ss:$28 sps:$4 sm:$0xff]  }
  0xa1   :  { %2268 = vmatpush1.bf16.msra.mxu0 %v7828_v25  ;;  %2391 = vmatpush1.bf16.msra.mxu1 %v7831_v26  ;;  %v7917_v25 = vld [vmem:[#allocation2 + $0x7b0] ss:$28 sps:$4 sm:$0xff]   ;;  %v7922_v26 = vld [vmem:[#allocation2 + $0x7e4] ss:$28 sps:$4 sm:$0xff]  }
  0xa2   :  { %2269 = vmatprep.subr.bf16.mxu0 %v7836_v27  ;;  %2392 = vmatprep.subr.bf16.mxu1 %v7839_v28  ;;  %v7925_v27 = vld [vmem:[#allocation2 + $0x7ec] ss:$28 sps:$4 sm:$0xff]   ;;  %v7920_v28 = vld [vmem:[#allocation2 + $0x7e0] ss:$28 sps:$4 sm:$0xff]  }
  0xa5   :  { %2270 = vmatpush1.bf16.msra.mxu0 %v7834_v31  ;;  %2393 = vmatpush1.bf16.msra.mxu1 %v7837_v32  ;;  %v7928_v31 = vld [vmem:[#allocation2 + $0x81c] ss:$28 sps:$4 sm:$0xff]   ;;  %v7931_v32 = vld [vmem:[#allocation2 + $0x824] ss:$28 sps:$4 sm:$0xff]  }
  0xa6   :  { %2271 = vmatprep.subr.bf16.mxu0 %v7842_v33  ;;  %2394 = vmatprep.subr.bf16.mxu1 %v7845_v34  ;;  %v7926_v33 = vld [vmem:[#allocation2 + $0x818] ss:$28 sps:$4 sm:$0xff]   ;;  %v7929_v34 = vld [vmem:[#allocation2 + $0x820] ss:$28 sps:$4 sm:$0xff]  }
  0xa9   :  { %2272 = vmatpush1.bf16.msra.mxu0 %v7840_v35  ;;  %2395 = vmatpush1.bf16.msra.mxu1 %v7843_v36  ;;  %v7934_v35 = vld [vmem:[#allocation2 + $0x854] ss:$28 sps:$4 sm:$0xff]   ;;  %v7937_v36 = vld [vmem:[#allocation2 + $0x85c] ss:$28 sps:$4 sm:$0xff]  }
  0xaa   :  { %2273 = vmatprep.subr.bf16.mxu0 %v7848_v37  ;;  %2396 = vmatprep.subr.bf16.mxu1 %v7851_v38  ;;  %v7932_v37 = vld [vmem:[#allocation2 + $0x850] ss:$28 sps:$4 sm:$0xff]   ;;  %v7935_v38 = vld [vmem:[#allocation2 + $0x858] ss:$28 sps:$4 sm:$0xff]  }
  0xad   :  { %2274 = vmatpush1.bf16.msra.mxu0 %v7846_v39  ;;  %2397 = vmatpush1.bf16.msra.mxu1 %v7849_v40  ;;  %v7940_v39 = vld [vmem:[#allocation2 + $0x88c] ss:$28 sps:$4 sm:$0xff]   ;;  %v7943_v40 = vld [vmem:[#allocation2 + $0x894] ss:$28 sps:$4 sm:$0xff]  }
  0xae   :  { %2275 = vmatprep.subr.bf16.mxu0 %v7854_v41  ;;  %2398 = vmatprep.subr.bf16.mxu1 %v7857_v42  ;;  %v7938_v41 = vld [vmem:[#allocation2 + $0x888] ss:$28 sps:$4 sm:$0xff]   ;;  %v7941_v42 = vld [vmem:[#allocation2 + $0x890] ss:$28 sps:$4 sm:$0xff]  }
  0xb1   :  { %2276 = vmatpush1.bf16.msra.mxu0 %v7852_v43  ;;  %2399 = vmatpush1.bf16.msra.mxu1 %v7855_v44  ;;  %v7946_v43 = vld [vmem:[#allocation2 + $0x8c4] ss:$28 sps:$4 sm:$0xff]   ;;  %v7949_v44 = vld [vmem:[#allocation2 + $0x8cc] ss:$28 sps:$4 sm:$0xff]  }
  0xb2   :  { %2277 = vmatprep.subr.bf16.mxu0 %v7860_v45  ;;  %2400 = vmatprep.subr.bf16.mxu1 %v7863_v46  ;;  %v7944_v45 = vld [vmem:[#allocation2 + $0x8c0] ss:$28 sps:$4 sm:$0xff]   ;;  %v7947_v46 = vld [vmem:[#allocation2 + $0x8c8] ss:$28 sps:$4 sm:$0xff]  }
  0xb5   :  { %2278 = vmatpush1.bf16.msra.mxu0 %v7858_v47  ;;  %2401 = vmatpush1.bf16.msra.mxu1 %v7861_v49  ;;  %v7952_v47 = vld [vmem:[#allocation2 + $0x8fc] ss:$28 sps:$4 sm:$0xff]   ;;  %v7955_v49 = vld [vmem:[#allocation2 + $0x904] ss:$28 sps:$4 sm:$0xff]  }
  0xb6   :  { %2279 = vmatprep.subr.bf16.mxu0 %v7866_v50  ;;  %2402 = vmatprep.subr.bf16.mxu1 %v7869_v51  ;;  %v7950_v50 = vld [vmem:[#allocation2 + $0x8f8] ss:$28 sps:$4 sm:$0xff]   ;;  %v7953_v51 = vld [vmem:[#allocation2 + $0x900] ss:$28 sps:$4 sm:$0xff]  }
  0xb9   :  { %2280 = vmatpush1.bf16.msra.mxu0 %v7864_v52  ;;  %2403 = vmatpush1.bf16.msra.mxu1 %v7867_v53  ;;  %v7958_v52 = vld [vmem:[#allocation2 + $0x934] ss:$28 sps:$4 sm:$0xff]   ;;  %v7961_v53 = vld [vmem:[#allocation2 + $0x93c] ss:$28 sps:$4 sm:$0xff]  }
  0xba   :  { %2281 = vmatprep.subr.bf16.mxu0 %v7872_v54  ;;  %2404 = vmatprep.subr.bf16.mxu1 %v7875_v55  ;;  %v7956_v54 = vld [vmem:[#allocation2 + $0x930] ss:$28 sps:$4 sm:$0xff]   ;;  %v7959_v55 = vld [vmem:[#allocation2 + $0x938] ss:$28 sps:$4 sm:$0xff]  }
  0xbd   :  { %2282 = vmatpush1.bf16.msra.mxu0 %v7870_v56  ;;  %2405 = vmatpush1.bf16.msra.mxu1 %v7873_v57  ;;  %v7964_v56 = vld [vmem:[#allocation2 + $0x96c] ss:$28 sps:$4 sm:$0xff]   ;;  %v7967_v57 = vld [vmem:[#allocation2 + $0x974] ss:$28 sps:$4 sm:$0xff]  }
  0xbe   :  { %2283 = vmatprep.subr.bf16.mxu0 %v7878_v58  ;;  %2406 = vmatprep.subr.bf16.mxu1 %v7881_v59  ;;  %v7962_v58 = vld [vmem:[#allocation2 + $0x968] ss:$28 sps:$4 sm:$0xff]   ;;  %v7965_v59 = vld [vmem:[#allocation2 + $0x970] ss:$28 sps:$4 sm:$0xff]  }
  0xc1   :  { %2284 = vmatpush1.bf16.msra.mxu0 %v7876_v60  ;;  %2407 = vmatpush1.bf16.msra.mxu1 %v7879_v61  ;;  %v7970_v60 = vld [vmem:[#allocation2 + $0x9a4] ss:$28 sps:$4 sm:$0xff]   ;;  %v7973_v61 = vld [vmem:[#allocation2 + $0x9ac] ss:$28 sps:$4 sm:$0xff]  }
  0xc2   :  { %2285 = vmatprep.subr.bf16.mxu0 %v7884_v62  ;;  %2408 = vmatprep.subr.bf16.mxu1 %v7887_v63  ;;  %v7968_v62 = vld [vmem:[#allocation2 + $0x9a0] ss:$28 sps:$4 sm:$0xff]   ;;  %v7971_v63 = vld [vmem:[#allocation2 + $0x9a8] ss:$28 sps:$4 sm:$0xff]  }
  0xc5   :  { %2286 = vmatpush1.bf16.msra.mxu0 %v7882_v0  ;;  %2409 = vmatpush1.bf16.msra.mxu1 %v7885_v1  ;;  %v7976_v0 = vld [vmem:[#allocation2 + $0x9dc] ss:$28 sps:$4 sm:$0xff]   ;;  %v7979_v1 = vld [vmem:[#allocation2 + $0x9e4] ss:$28 sps:$4 sm:$0xff]  }
  0xc6   :  { %2287 = vmatprep.subr.bf16.mxu0 %v7890_v2  ;;  %2410 = vmatprep.subr.bf16.mxu1 %v7893_v3  ;;  %v7974_v2 = vld [vmem:[#allocation2 + $0x9d8] ss:$28 sps:$4 sm:$0xff]   ;;  %v7977_v3 = vld [vmem:[#allocation2 + $0x9e0] ss:$28 sps:$4 sm:$0xff]  }
  0xc9   :  { %2288 = vmatpush1.bf16.msra.mxu0 %v7888_v4  ;;  %2411 = vmatpush1.bf16.msra.mxu1 %v7891_v6  ;;  %v7982_v4 = vld [vmem:[#allocation2 + $0xa14] ss:$28 sps:$4 sm:$0xff]   ;;  %v7985_v6 = vld [vmem:[#allocation2 + $0xa1c] ss:$28 sps:$4 sm:$0xff]  }
  0xca   :  { %2298 = vmatprep.subr.bf16.mxu0 %v7897_v7  ;;  %2421 = vmatprep.subr.bf16.mxu1 %v7900_v8  ;;  %v7980_v7 = vld [vmem:[#allocation2 + $0xa10] ss:$28 sps:$4 sm:$0xff]   ;;  %v7983_v8 = vld [vmem:[#allocation2 + $0xa18] ss:$28 sps:$4 sm:$0xff]  }
  0xcc   :  { %2290 = vmatmul.mubr.bf16.vlgmr.msra.gmra.mrb[0].mxu0 %v8453_v10  ;;  %2413 = vmatmul.mubr.bf16.vlgmr.msra.gmra.mrb[0].mxu1 %v8453_v10 }
  0xcd   :  { %2299 = vmatpush1.bf16.msra.mxu0 %v7895_v9  ;;  %2422 = vmatpush1.bf16.msra.mxu1 %v7898_v11  ;;  %v7988_v9 = vld [vmem:[#allocation2 + $0xa4c] ss:$28 sps:$4 sm:$0xff]   ;;  %v7991_v11 = vld [vmem:[#allocation2 + $0xa54] ss:$28 sps:$4 sm:$0xff]  }
  0xce   :  { %2300 = vmatprep.subr.bf16.mxu0 %v7904_v12  ;;  %2423 = vmatprep.subr.bf16.mxu1 %v7907_v14  ;;  %v7986_v12 = vld [vmem:[#allocation2 + $0xa48] ss:$28 sps:$4 sm:$0xff]   ;;  %v7989_v14 = vld [vmem:[#allocation2 + $0xa50] ss:$28 sps:$4 sm:$0xff]  }
  0xcf   :  { %2330 = vmatprep.mubr.bf16.mxu0 %v8462_v15  ;;  %2453 = vmatprep.mubr.bf16.mxu1 %v8462_v15 }
  0xd1   :  { %2301 = vmatpush1.bf16.msra.mxu0 %v7902_v16  ;;  %2424 = vmatpush1.bf16.msra.mxu1 %v7905_v17  ;;  %v7996_v16 = vld [vmem:[#allocation2 + $0x14] ss:$28 sps:$4 sm:$0xff]  }
  0xd2   :  { %2302 = vmatprep.subr.bf16.mxu0 %v7910_v18  ;;  %2425 = vmatprep.subr.bf16.mxu1 %v7913_v19  ;;  %v8039_v17 = vld [vmem:[#allocation2 + $0x1d8] ss:$28 sps:$4 sm:$0xff]   ;;  %v7994_v18 = vld [vmem:[#allocation2 + $0x10] ss:$28 sps:$4 sm:$0xff]   ;;  %v8470_v19 = vcombine.low %v8458_v13, %v8458_v13  ;;  %v8049_v13 = vld [vmem:[#allocation2 + $0x248] ss:$28 sps:$4 sm:$0xff]  }
  0xd5   :  { %2303 = vmatpush1.bf16.msra.mxu0 %v7908_v20  ;;  %2426 = vmatpush1.bf16.msra.mxu1 %v7911_v21  ;;  %v7999_v20 = vld [vmem:[#allocation2 + $0x4c] ss:$28 sps:$4 sm:$0xff]   ;;  %v8043_v21 = vld [vmem:[#allocation2 + $0x18] ss:$28 sps:$4 sm:$0xff]  }
  0xd6   :  { %2304 = vmatprep.subr.bf16.mxu0 %v7916_v22  ;;  %2427 = vmatprep.subr.bf16.mxu1 %v7919_v23  ;;  %v8044_v22 = vld [vmem:[#allocation2 + $0x210] ss:$28 sps:$4 sm:$0xff]   ;;  %v7997_v23 = vld [vmem:[#allocation2 + $0x48] ss:$28 sps:$4 sm:$0xff]  }
  0xd9   :  { %2305 = vmatpush1.bf16.msra.mxu0 %v7914_v24  ;;  %2428 = vmatpush1.bf16.msra.mxu1 %v7917_v25  ;;  %v8048_v24 = vld [vmem:[#allocation2 + $0x50] ss:$28 sps:$4 sm:$0xff]   ;;  %v8002_v25 = vld [vmem:[#allocation2 + $0x84] ss:$28 sps:$4 sm:$0xff]  }
  0xda   :  { %2306 = vmatprep.subr.bf16.mxu0 %v7922_v26  ;;  %2429 = vmatprep.subr.bf16.mxu1 %v7925_v27  ;;  %v8000_v26 = vld [vmem:[#allocation2 + $0x80] ss:$28 sps:$4 sm:$0xff]  }
  0xdb   :  { %v8005_v27 = vld [vmem:[#allocation2 + $0xbc] ss:$28 sps:$4 sm:$0xff]  }
  0xdd   :  { %2307 = vmatpush1.bf16.msra.mxu0 %v7920_v28  ;;  %2430 = vmatpush1.bf16.msra.mxu1 %v7923_v29  ;;  %v8053_v28 = vld [vmem:[#allocation2 + $0x88] ss:$28 sps:$4 sm:$0xff]   ;;  %v8054_v29 = vld [vmem:[#allocation2 + $0x280] ss:$28 sps:$4 sm:$0xff]  }
  0xde   :  { %2308 = vmatprep.subr.bf16.mxu0 %v7928_v31  ;;  %2431 = vmatprep.subr.bf16.mxu1 %v7931_v32  ;;  %v8003_v31 = vld [vmem:[#allocation2 + $0xb8] ss:$28 sps:$4 sm:$0xff]  }
  0xdf   :  { %v8008_v32 = vld [vmem:[#allocation2 + $0xf4] ss:$28 sps:$4 sm:$0xff]  }
  0xe1   :  { %2309 = vmatpush1.bf16.msra.mxu0 %v7926_v33  ;;  %2432 = vmatpush1.bf16.msra.mxu1 %v7929_v34  ;;  %v8058_v33 = vld [vmem:[#allocation2 + $0xc0] ss:$28 sps:$4 sm:$0xff]   ;;  %v8059_v34 = vld [vmem:[#allocation2 + $0x2b8] ss:$28 sps:$4 sm:$0xff]  }
  0xe2   :  { %2310 = vmatprep.subr.bf16.mxu0 %v7934_v35  ;;  %2433 = vmatprep.subr.bf16.mxu1 %v7937_v36  ;;  %v8006_v35 = vld [vmem:[#allocation2 + $0xf0] ss:$28 sps:$4 sm:$0xff]  }
  0xe3   :  { %v8011_v36 = vld [vmem:[#allocation2 + $0x12c] ss:$28 sps:$4 sm:$0xff]  }
  0xe5   :  { %2311 = vmatpush1.bf16.msra.mxu0 %v7932_v37  ;;  %2434 = vmatpush1.bf16.msra.mxu1 %v7935_v38  ;;  %v8064_v37 = vld [vmem:[#allocation2 + $0x2f0] ss:$28 sps:$4 sm:$0xff]   ;;  %v8009_v38 = vld [vmem:[#allocation2 + $0x128] ss:$28 sps:$4 sm:$0xff]  }
  0xe6   :  { %2312 = vmatprep.subr.bf16.mxu0 %v7940_v39  ;;  %2435 = vmatprep.subr.bf16.mxu1 %v7943_v40  ;;  %v8014_v39 = vld [vmem:[#allocation2 + $0x164] ss:$28 sps:$4 sm:$0xff]   ;;  %v8068_v40 = vld [vmem:[#allocation2 + $0x130] ss:$28 sps:$4 sm:$0xff]  }
  0xe9   :  { %2313 = vmatpush1.bf16.msra.mxu0 %v7938_v41  ;;  %2436 = vmatpush1.bf16.msra.mxu1 %v7941_v42  ;;  %v8069_v41 = vld [vmem:[#allocation2 + $0x328] ss:$28 sps:$4 sm:$0xff]   ;;  %v8012_v42 = vld [vmem:[#allocation2 + $0x160] ss:$28 sps:$4 sm:$0xff]  }
  0xea   :  { %2314 = vmatprep.subr.bf16.mxu0 %v7946_v43  ;;  %2437 = vmatprep.subr.bf16.mxu1 %v7949_v44  ;;  %v8073_v43 = vld [vmem:[#allocation2 + $0x168] ss:$28 sps:$4 sm:$0xff]   ;;  %v8017_v44 = vld [vmem:[#allocation2 + $0x19c] ss:$28 sps:$4 sm:$0xff]  }
  0xed   :  { %2315 = vmatpush1.bf16.msra.mxu0 %v7944_v45  ;;  %2438 = vmatpush1.bf16.msra.mxu1 %v7947_v46  ;;  %v8074_v45 = vld [vmem:[#allocation2 + $0x360] ss:$28 sps:$4 sm:$0xff]   ;;  %v8015_v46 = vld [vmem:[#allocation2 + $0x198] ss:$28 sps:$4 sm:$0xff]  }
  0xee   :  { %2316 = vmatprep.subr.bf16.mxu0 %v7952_v47  ;;  %2439 = vmatprep.subr.bf16.mxu1 %v7955_v49  ;;  %v8020_v47 = vld [vmem:[#allocation2 + $0x1d4] ss:$28 sps:$4 sm:$0xff]   ;;  %v8078_v49 = vld [vmem:[#allocation2 + $0x1a0] ss:$28 sps:$4 sm:$0xff]  }
  0xf1   :  { %2317 = vmatpush1.bf16.msra.mxu0 %v7950_v50  ;;  %2440 = vmatpush1.bf16.msra.mxu1 %v7953_v51  ;;  %v8079_v50 = vld [vmem:[#allocation2 + $0x558] ss:$28 sps:$4 sm:$0xff]   ;;  %v8018_v51 = vld [vmem:[#allocation2 + $0x1d0] ss:$28 sps:$4 sm:$0xff]  }
  0xf2   :  { %2318 = vmatprep.subr.bf16.mxu0 %v7958_v52  ;;  %2441 = vmatprep.subr.bf16.mxu1 %v7961_v53  ;;  %v8023_v52 = vld [vmem:[#allocation2 + $0x20c] ss:$28 sps:$4 sm:$0xff]   ;;  %v8083_v53 = vld [vmem:[#allocation2 + $0x398] ss:$28 sps:$4 sm:$0xff]  }
  0xf5   :  { %2319 = vmatpush1.bf16.msra.mxu0 %v7956_v54  ;;  %2442 = vmatpush1.bf16.msra.mxu1 %v7959_v55  ;;  %v8084_v54 = vld [vmem:[#allocation2 + $0x590] ss:$28 sps:$4 sm:$0xff]   ;;  %v8021_v55 = vld [vmem:[#allocation2 + $0x208] ss:$28 sps:$4 sm:$0xff]  }
  0xf6   :  { %2320 = vmatprep.subr.bf16.mxu0 %v7964_v56  ;;  %2443 = vmatprep.subr.bf16.mxu1 %v7967_v57  ;;  %v8026_v56 = vld [vmem:[#allocation2 + $0x244] ss:$28 sps:$4 sm:$0xff]   ;;  %v8088_v57 = vld [vmem:[#allocation2 + $0x3d0] ss:$28 sps:$4 sm:$0xff]  }
  0xf9   :  { %2321 = vmatpush1.bf16.msra.mxu0 %v7962_v58  ;;  %2444 = vmatpush1.bf16.msra.mxu1 %v7965_v59  ;;  %v8089_v58 = vld [vmem:[#allocation2 + $0x5c8] ss:$28 sps:$4 sm:$0xff]   ;;  %v8024_v59 = vld [vmem:[#allocation2 + $0x240] ss:$28 sps:$4 sm:$0xff]  }
  0xfa   :  { %2322 = vmatprep.subr.bf16.mxu0 %v7970_v60  ;;  %2445 = vmatprep.subr.bf16.mxu1 %v7973_v61  ;;  %v8093_v60 = vld [vmem:[#allocation2 + $0x408] ss:$28 sps:$4 sm:$0xff]   ;;  %v8029_v61 = vld [vmem:[#allocation2 + $0x27c] ss:$28 sps:$4 sm:$0xff]  }
  0xfd   :  { %2323 = vmatpush1.bf16.msra.mxu0 %v7968_v62  ;;  %2446 = vmatpush1.bf16.msra.mxu1 %v7971_v63  ;;  %v8094_v62 = vld [vmem:[#allocation2 + $0x600] ss:$28 sps:$4 sm:$0xff]   ;;  %v8027_v63 = vld [vmem:[#allocation2 + $0x278] ss:$28 sps:$4 sm:$0xff]  }
  0xfe   :  { %2324 = vmatprep.subr.bf16.mxu0 %v7976_v0  ;;  %2447 = vmatprep.subr.bf16.mxu1 %v7979_v1  ;;  %v8098_v0 = vld [vmem:[#allocation2 + $0x440] ss:$28 sps:$4 sm:$0xff]   ;;  %v8032_v1 = vld [vmem:[#allocation2 + $0x2b4] ss:$28 sps:$4 sm:$0xff]  }
 0x101   :  { %2325 = vmatpush1.bf16.msra.mxu0 %v7974_v2  ;;  %2448 = vmatpush1.bf16.msra.mxu1 %v7977_v3  ;;  %v8099_v2 = vld [vmem:[#allocation2 + $0x638] ss:$28 sps:$4 sm:$0xff]   ;;  %v8030_v3 = vld [vmem:[#allocation2 + $0x2b0] ss:$28 sps:$4 sm:$0xff]  }
 0x102   :  { %2326 = vmatprep.subr.bf16.mxu0 %v7982_v4  ;;  %2449 = vmatprep.subr.bf16.mxu1 %v7985_v6  ;;  %v8035_v4 = vld [vmem:[#allocation2 + $0x2ec] ss:$28 sps:$4 sm:$0xff]   ;;  %v8103_v6 = vld [vmem:[#allocation2 + $0x478] ss:$28 sps:$4 sm:$0xff]  }
 0x105   :  { %2327 = vmatpush1.bf16.msra.mxu0 %v7980_v7  ;;  %2450 = vmatpush1.bf16.msra.mxu1 %v7983_v8  ;;  %v8104_v7 = vld [vmem:[#allocation2 + $0x670] ss:$28 sps:$4 sm:$0xff]   ;;  %v8033_v8 = vld [vmem:[#allocation2 + $0x2e8] ss:$28 sps:$4 sm:$0xff]  }
 0x106   :  { %2328 = vmatprep.subr.bf16.mxu0 %v7988_v9  ;;  %2451 = vmatprep.subr.bf16.mxu1 %v7991_v11  ;;  %v8038_v9 = vld [vmem:[#allocation2 + $0x324] ss:$28 sps:$4 sm:$0xff]   ;;  %v8108_v11 = vld [vmem:[#allocation2 + $0x4b0] ss:$28 sps:$4 sm:$0xff]  }
 0x109   :  { %2329 = vmatpush1.bf16.msra.mxu0 %v7986_v12  ;;  %2452 = vmatpush1.bf16.msra.mxu1 %v7989_v14  ;;  %v8109_v12 = vld [vmem:[#allocation2 + $0x6a8] ss:$28 sps:$4 sm:$0xff]   ;;  %v8036_v14 = vld [vmem:[#allocation2 + $0x320] ss:$28 sps:$4 sm:$0xff]  }
 0x10a   :  { %2462 = vmatprep.subr.bf16.mxu0 %v7996_v16  ;;  %7460 = vmatprep.subr.bf16.mxu1 %v8039_v17  ;;  %v8042_v16 = vld [vmem:[#allocation2 + $0x35c] ss:$28 sps:$4 sm:$0xff]   ;;  %v8113_v17 = vld [vmem:[#allocation2 + $0x4e8] ss:$28 sps:$4 sm:$0xff]  }
 0x10c   :  { %2331 = vmatmul.mubr.bf16.vlgmr.msra.gmra.mrb[0].mxu0 %v8470_v19  ;;  %2454 = vmatmul.mubr.bf16.vlgmr.msra.gmra.mrb[0].mxu1 %v8470_v19 }
 0x10d   :  { %2463 = vmatpush1.bf16.msra.mxu0 %v7994_v18  ;;  %7461 = vmatpush3.bf16.msra.mxu1 %v8043_v21  ;;  %v8114_v18 = vld [vmem:[#allocation2 + $0x6e0] ss:$28 sps:$4 sm:$0xff]   ;;  %v8047_v21 = vld [vmem:[#allocation2 + $0x394] ss:$28 sps:$4 sm:$0xff]  }
 0x10e   :  { %2464 = vmatprep.subr.bf16.mxu0 %v7999_v20  ;;  %7462 = vmatprep.subr.bf16.mxu1 %v8044_v22  ;;  %v8040_v20 = vld [vmem:[#allocation2 + $0x358] ss:$28 sps:$4 sm:$0xff]   ;;  %v8118_v22 = vld [vmem:[#allocation2 + $0x520] ss:$28 sps:$4 sm:$0xff]  }
 0x10f   :  { %2494 = vmatprep.mubr.bf16.mxu0 %v8432_v48  ;;  %2617 = vmatprep.mubr.bf16.mxu1 %v8432_v48  ;;  %v8063_v48 = vld [vmem:[#allocation2 + $0xf8] ss:$28 sps:$4 sm:$0xff]  }
 0x111   :  { %2465 = vmatpush1.bf16.msra.mxu0 %v7997_v23  ;;  %7463 = vmatpush3.bf16.msra.mxu1 %v8048_v24  ;;  %v8119_v23 = vld [vmem:[#allocation2 + $0x8d8] ss:$28 sps:$4 sm:$0xff]   ;;  %v8045_v24 = vld [vmem:[#allocation2 + $0x390] ss:$28 sps:$4 sm:$0xff]  }
 0x112   :  { %2466 = vmatprep.subr.bf16.mxu0 %v8002_v25  ;;  %7464 = vmatprep.subr.bf16.mxu1 %v8049_v13  ;;  %v8052_v25 = vld [vmem:[#allocation2 + $0x3cc] ss:$28 sps:$4 sm:$0xff]   ;;  %v8123_v13 = vld [vmem:[#allocation2 + $0x718] ss:$28 sps:$4 sm:$0xff]  }
 0x115   :  { %2467 = vmatpush1.bf16.msra.mxu0 %v8000_v26  ;;  %7465 = vmatpush3.bf16.msra.mxu1 %v8053_v28  ;;  %v8124_v26 = vld [vmem:[#allocation2 + $0x910] ss:$28 sps:$4 sm:$0xff]   ;;  %v8057_v28 = vld [vmem:[#allocation2 + $0x404] ss:$28 sps:$4 sm:$0xff]  }
 0x116   :  { %2468 = vmatprep.subr.bf16.mxu0 %v8005_v27  ;;  %7466 = vmatprep.subr.bf16.mxu1 %v8054_v29  ;;  %v8050_v27 = vld [vmem:[#allocation2 + $0x3c8] ss:$28 sps:$4 sm:$0xff]   ;;  %v8128_v29 = vld [vmem:[#allocation2 + $0x750] ss:$28 sps:$4 sm:$0xff]  }
 0x119   :  { %2469 = vmatpush1.bf16.msra.mxu0 %v8003_v31  ;;  %7467 = vmatpush3.bf16.msra.mxu1 %v8058_v33  ;;  %v8129_v31 = vld [vmem:[#allocation2 + $0x948] ss:$28 sps:$4 sm:$0xff]   ;;  %v8062_v33 = vld [vmem:[#allocation2 + $0x43c] ss:$28 sps:$4 sm:$0xff]  }
 0x11a   :  { %2470 = vmatprep.subr.bf16.mxu0 %v8008_v32  ;;  %7468 = vmatprep.subr.bf16.mxu1 %v8059_v34  ;;  %v8055_v32 = vld [vmem:[#allocation2 + $0x400] ss:$28 sps:$4 sm:$0xff]   ;;  %v8133_v34 = vld [vmem:[#allocation2 + $0x788] ss:$28 sps:$4 sm:$0xff]  }
 0x11d   :  { %2471 = vmatpush1.bf16.msra.mxu0 %v8006_v35  ;;  %7469 = vmatpush3.bf16.msra.mxu1 %v8063_v48  ;;  %v8060_v35 = vld [vmem:[#allocation2 + $0x438] ss:$28 sps:$4 sm:$0xff]   ;;  %v8138_v48 = vld [vmem:[#allocation2 + $0x7c0] ss:$28 sps:$4 sm:$0xff]  }
 0x11e   :  { %2472 = vmatprep.subr.bf16.mxu0 %v8011_v36  ;;  %7470 = vmatprep.subr.bf16.mxu1 %v8064_v37  ;;  %v8067_v36 = vld [vmem:[#allocation2 + $0x474] ss:$28 sps:$4 sm:$0xff]  }
 0x11f   :  { %v8139_v37 = vld [vmem:[#allocation2 + $0x9b8] ss:$28 sps:$4 sm:$0xff]  }
 0x121   :  { %2473 = vmatpush1.bf16.msra.mxu0 %v8009_v38  ;;  %7471 = vmatpush3.bf16.msra.mxu1 %v8068_v40  ;;  %v8065_v38 = vld [vmem:[#allocation2 + $0x470] ss:$28 sps:$4 sm:$0xff]  }
 0x122   :  { %2474 = vmatprep.subr.bf16.mxu0 %v8014_v39  ;;  %7472 = vmatprep.subr.bf16.mxu1 %v8069_v41  ;;  %v8143_v39 = vld [vmem:[#allocation2 + $0x7f8] ss:$28 sps:$4 sm:$0xff]   ;;  %v8144_v40 = vld [vmem:[#allocation2 + $0x9f0] ss:$28 sps:$4 sm:$0xff]   ;;  %v8070_v41 = vld [vmem:[#allocation2 + $0x4a8] ss:$28 sps:$4 sm:$0xff]  }
 0x125   :  { %2475 = vmatpush1.bf16.msra.mxu0 %v8012_v42  ;;  %7473 = vmatpush3.bf16.msra.mxu1 %v8073_v43  ;;  %v8148_v42 = vld [vmem:[#allocation2 + $0x830] ss:$28 sps:$4 sm:$0xff]   ;;  %v8077_v43 = vld [vmem:[#allocation2 + $0x4e4] ss:$28 sps:$4 sm:$0xff]  }
 0x126   :  { %2476 = vmatprep.subr.bf16.mxu0 %v8017_v44  ;;  %7474 = vmatprep.subr.bf16.mxu1 %v8074_v45  ;;  %v8149_v44 = vld [vmem:[#allocation2 + $0xa28] ss:$28 sps:$4 sm:$0xff]   ;;  %v8075_v45 = vld [vmem:[#allocation2 + $0x4e0] ss:$28 sps:$4 sm:$0xff]  }
 0x129   :  { %2477 = vmatpush1.bf16.msra.mxu0 %v8015_v46  ;;  %7475 = vmatpush3.bf16.msra.mxu1 %v8078_v49  ;;  %v8153_v46 = vld [vmem:[#allocation2 + $0x868] ss:$28 sps:$4 sm:$0xff]   ;;  %v8154_v49 = vld [vmem:[#allocation2 + $0xa60] ss:$28 sps:$4 sm:$0xff]  }
 0x12a   :  { %2478 = vmatprep.subr.bf16.mxu0 %v8020_v47  ;;  %7482 = vmatprep.subr.bf16.mxu1 %v8079_v50  ;;  %v8082_v47 = vld [vmem:[#allocation2 + $0x51c] ss:$28 sps:$4 sm:$0xff]   ;;  %v2818_v50 = vld [vmem:[#allocation5] sm:$0xff] }
 0x12c   :  { %2618 = vmatmul.mubr.bf16.vlgmr.msra.gmra.mrb[4].mxu1 %v8436_v5 }
 0x12d   :  { %2479 = vmatpush1.bf16.msra.mxu0 %v8018_v51  ;;  %7483 = vmatpush3.bf16.msra.mxu1 %v8083_v53  ;;  %v2822_v51 = vld [vmem:[#allocation5 + $0x20] sm:$0xff] }
 0x12e   :  { %2480 = vmatprep.subr.bf16.mxu0 %v8023_v52  ;;  %7484 = vmatprep.subr.bf16.mxu1 %v8084_v54  ;;  %v8080_v52 = vld [vmem:[#allocation2 + $0x518] ss:$28 sps:$4 sm:$0xff]   ;;  %v8158_v53 = vld [vmem:[#allocation2 + $0x8a0] ss:$28 sps:$4 sm:$0xff]  }
 0x12f   :  { %2657 = vmatprep.mubr.bf16.mxu1 %v8447_v30  ;;  %v8087_v54 = vld [vmem:[#allocation2 + $0x554] ss:$28 sps:$4 sm:$0xff]  }
 0x131   :  { %2481 = vmatpush1.bf16.msra.mxu0 %v8021_v55  ;;  %7485 = vmatpush3.bf16.msra.mxu1 %v8088_v57  ;;  %v6978_v55 = vcombine.high %v2818_v50, %v2822_v51  ;;  %v2830_v57 = vld [vmem:[#allocation5 + $0x60] sm:$0xff] }
 0x132   :  { %2482 = vmatprep.subr.bf16.mxu0 %v8026_v56  ;;  %7486 = vmatprep.subr.bf16.mxu1 %v8089_v58  ;;  %v2826_v56 = vld [vmem:[#allocation5 + $0x40] sm:$0xff]  ;;  %v8085_v58 = vld [vmem:[#allocation2 + $0x550] ss:$28 sps:$4 sm:$0xff]  }
 0x135   :  { %2483 = vmatpush1.bf16.msra.mxu0 %v8024_v59  ;;  %7487 = vmatpush3.bf16.msra.mxu1 %v8093_v60  ;;  %v6977_v59 = vcombine.low %v2818_v50, %v2822_v51  ;;  %v8092_v60 = vld [vmem:[#allocation2 + $0x58c] ss:$28 sps:$4 sm:$0xff]  }
 0x136   :  { %2484 = vmatprep.subr.bf16.mxu0 %v8029_v61  ;;  %7488 = vmatprep.subr.bf16.mxu1 %v8094_v62  ;;  %v6986_v61 = vcombine.high %v2826_v56, %v2830_v57  ;;  %v2834_v62 = vld [vmem:[#allocation5 + $0x80] sm:$0xff] }
 0x139   :  { %2485 = vmatpush1.bf16.msra.mxu0 %v8027_v63  ;;  %7489 = vmatpush3.bf16.msra.mxu1 %v8098_v0  ;;  %v2838_v63 = vld [vmem:[#allocation5 + $0xa0] sm:$0xff] }
 0x13a   :  { %2486 = vmatprep.subr.bf16.mxu0 %v8032_v1  ;;  %7490 = vmatprep.subr.bf16.mxu1 %v8099_v2  ;;  %v8483_v0 = vld [vmem:[#allocation5 + $0x400] sm:$0xff] }
 0x13b   :  { %v8485_v1 = vld [vmem:[#allocation5 + $0x420] sm:$0xff] }
 0x13c   :  { %v8090_v2 = vld [vmem:[#allocation2 + $0x588] ss:$28 sps:$4 sm:$0xff]  }
 0x13d   :  { %2487 = vmatpush1.bf16.msra.mxu0 %v8030_v3  ;;  %7491 = vmatpush3.bf16.msra.mxu1 %v8103_v6  ;;  %v6985_v3 = vcombine.low %v2826_v56, %v2830_v57  ;;  %v6994_v6 = vcombine.high %v2834_v62, %v2838_v63 }
 0x13e   :  { %2488 = vmatprep.subr.bf16.mxu0 %v8035_v4  ;;  %7492 = vmatprep.subr.bf16.mxu1 %v8104_v7  ;;  %v8097_v4 = vld [vmem:[#allocation2 + $0x5c4] ss:$28 sps:$4 sm:$0xff]   ;;  %v7105_v7 = vcombine.low %v8483_v0, %v8485_v1 }
 0x141   :  { %2489 = vmatpush1.bf16.msra.mxu0 %v8033_v8  ;;  %7493 = vmatpush3.bf16.msra.mxu1 %v8108_v11  ;;  %v2842_v8 = vld [vmem:[#allocation5 + $0xc0] sm:$0xff] }
 0x142   :  { %2490 = vmatprep.subr.bf16.mxu0 %v8038_v9  ;;  %7494 = vmatprep.subr.bf16.mxu1 %v8109_v12  ;;  %v2846_v9 = vld [vmem:[#allocation5 + $0xe0] sm:$0xff]  ;;  %v6993_v12 = vcombine.low %v2834_v62, %v2838_v63 }
 0x143   :  { %v8095_v11 = vld [vmem:[#allocation2 + $0x5c0] ss:$28 sps:$4 sm:$0xff]  }
 0x144   :  { %v2914_v63 = vld [vmem:[#allocation5 + $0x300] sm:$0xff] }
 0x145   :  { %2491 = vmatpush1.bf16.msra.mxu0 %v8036_v14  ;;  %7495 = vmatpush3.bf16.msra.mxu1 %v8113_v17  ;;  %v8102_v14 = vld [vmem:[#allocation2 + $0x5fc] ss:$28 sps:$4 sm:$0xff]   ;;  %v2850_v17 = vld [vmem:[#allocation5 + $0x100] sm:$0xff] }
 0x146   :  { %2492 = vmatprep.subr.bf16.mxu0 %v8042_v16  ;;  %7496 = vmatprep.subr.bf16.mxu1 %v8114_v18  ;;  %v7002_v16 = vcombine.high %v2842_v8, %v2846_v9  ;;  %v2854_v18 = vld [vmem:[#allocation5 + $0x120] sm:$0xff] }
 0x149   :  { %2493 = vmatpush1.bf16.msra.mxu0 %v8040_v20  ;;  %7497 = vmatpush3.bf16.msra.mxu1 %v8118_v22  ;;  %v8100_v20 = vld [vmem:[#allocation2 + $0x5f8] ss:$28 sps:$4 sm:$0xff]  }
 0x14a   :  { %2503 = vmatprep.subr.bf16.mxu0 %v8047_v21  ;;  %7504 = vmatprep.subr.bf16.mxu1 %v8119_v23  ;;  %v7001_v21 = vcombine.low %v2842_v8, %v2846_v9  ;;  %v8107_v22 = vld [vmem:[#allocation2 + $0x634] ss:$28 sps:$4 sm:$0xff]   ;;  %v7010_v23 = vcombine.high %v2850_v17, %v2854_v18  ;;  %v2922_v8 = vld [vmem:[#allocation5 + $0x340] sm:$0xff] }
 0x14b   :  { %v2926_v9 = vld [vmem:[#allocation5 + $0x360] sm:$0xff] }
 0x14c   :  { %2495 = vmatmul.mubr.bf16.vlgmr.msra.gmra.mrb[4].mxu0 %v8436_v5  ;;  %2658 = vmatmul.mubr.bf16.vlgmr.msra.gmra.mrb[8].mxu1 %v8453_v10  ;;  %v8134_v5 = vld [vmem:[#allocation2 + $0x980] ss:$28 sps:$4 sm:$0xff]  }
 0x14d   :  { %2504 = vmatpush1.bf16.msra.mxu0 %v8045_v24  ;;  %7505 = vmatpush3.bf16.msra.mxu1 %v8123_v13  ;;  %v2858_v24 = vld [vmem:[#allocation5 + $0x140] sm:$0xff]  ;;  %v8105_v13 = vld [vmem:[#allocation2 + $0x630] ss:$28 sps:$4 sm:$0xff]  }
 0x14e   :  { %2505 = vmatprep.subr.bf16.mxu0 %v8052_v25  ;;  %7506 = vmatprep.subr.bf16.mxu1 %v8124_v26  ;;  %v2862_v25 = vld [vmem:[#allocation5 + $0x160] sm:$0xff]  ;;  %v7009_v26 = vcombine.low %v2850_v17, %v2854_v18 }
 0x14f   :  { %2535 = vmatprep.mubr.bf16.mxu0 %v8447_v30  ;;  %2697 = vmatprep.mubr.bf16.mxu1 %v8462_v15  ;;  %v8072_v30 = vld [vmem:[#allocation2 + $0x4ac] ss:$28 sps:$4 sm:$0xff]   ;;  %v2930_v17 = vld [vmem:[#allocation5 + $0x380] sm:$0xff] }
 0x150   :  { %v2934_v18 = vld [vmem:[#allocation5 + $0x3a0] sm:$0xff] }
 0x151   :  { %2506 = vmatpush1.bf16.msra.mxu0 %v8050_v27  ;;  %7507 = vmatpush3.bf16.msra.mxu1 %v8128_v29  ;;  %v8112_v27 = vld [vmem:[#allocation2 + $0x66c] ss:$28 sps:$4 sm:$0xff]   ;;  %v2866_v29 = vld [vmem:[#allocation5 + $0x180] sm:$0xff] }
 0x152   :  { %2507 = vmatprep.subr.bf16.mxu0 %v8057_v28  ;;  %7508 = vmatprep.subr.bf16.mxu1 %v8129_v31  ;;  %v7018_v28 = vcombine.high %v2858_v24, %v2862_v25  ;;  %v2870_v31 = vld [vmem:[#allocation5 + $0x1a0] sm:$0xff] }
 0x155   :  { %2508 = vmatpush1.bf16.msra.mxu0 %v8055_v32  ;;  %7509 = vmatpush3.bf16.msra.mxu1 %v8133_v34  ;;  %v8110_v32 = vld [vmem:[#allocation2 + $0x668] ss:$28 sps:$4 sm:$0xff]  }
 0x156   :  { %2509 = vmatprep.subr.bf16.mxu0 %v8062_v33  ;;  %7510 = vmatprep.subr.bf16.mxu1 %v8134_v5  ;;  %v7017_v33 = vcombine.low %v2858_v24, %v2862_v25  ;;  %v8117_v34 = vld [vmem:[#allocation2 + $0x6a4] ss:$28 sps:$4 sm:$0xff]   ;;  %v7026_v5 = vcombine.high %v2866_v29, %v2870_v31 }
 0x157   :  { %v2938_v24 = vld [vmem:[#allocation5 + $0x3c0] sm:$0xff] }
 0x158   :  { %v2942_v25 = vld [vmem:[#allocation5 + $0x3e0] sm:$0xff] }
 0x159   :  { %2510 = vmatpush1.bf16.msra.mxu0 %v8060_v35  ;;  %7511 = vmatpush3.bf16.msra.mxu1 %v8138_v48  ;;  %v2874_v35 = vld [vmem:[#allocation5 + $0x1c0] sm:$0xff] }
 0x15a   :  { %2511 = vmatprep.subr.bf16.mxu0 %v8067_v36  ;;  %7512 = vmatprep.subr.bf16.mxu1 %v8139_v37  ;;  %v2878_v36 = vld [vmem:[#allocation5 + $0x1e0] sm:$0xff]  ;;  %v7025_v37 = vcombine.low %v2866_v29, %v2870_v31  ;;  %v8159_v29 = vld [vmem:[#allocation2 + $0x898] ss:$28 sps:$4 sm:$0xff]  }
 0x15b   :  { %v8115_v48 = vld [vmem:[#allocation2 + $0x6a0] ss:$28 sps:$4 sm:$0xff]   ;;  %v8164_v31 = vld [vmem:[#allocation2 + $0x8d4] ss:$28 sps:$4 sm:$0xff]  }
 0x15d   :  { %2512 = vmatpush1.bf16.msra.mxu0 %v8065_v38  ;;  %7513 = vmatpush3.bf16.msra.mxu1 %v8143_v39  ;;  %v8122_v38 = vld [vmem:[#allocation2 + $0x6dc] ss:$28 sps:$4 sm:$0xff]   ;;  %v2882_v39 = vld [vmem:[#allocation5 + $0x200] sm:$0xff] }
 0x15e   :  { %2513 = vmatprep.subr.bf16.mxu0 %v8072_v30  ;;  %7514 = vmatprep.subr.bf16.mxu1 %v8144_v40  ;;  %v7034_v30 = vcombine.high %v2874_v35, %v2878_v36  ;;  %v2886_v40 = vld [vmem:[#allocation5 + $0x220] sm:$0xff] }
 0x15f   :  { %v7041_v50 = vcombine.low %v2882_v39, %v2886_v40 }
 0x161   :  { %2514 = vmatpush1.bf16.msra.mxu0 %v8070_v41  ;;  %7515 = vmatpush3.bf16.msra.mxu1 %v8148_v42  ;;  %v8120_v41 = vld [vmem:[#allocation2 + $0x6d8] ss:$28 sps:$4 sm:$0xff]   ;;  %v7033_v42 = vcombine.low %v2874_v35, %v2878_v36  ;;  %v8165_v35 = vld [vmem:[#allocation2 + $0x908] ss:$28 sps:$4 sm:$0xff]  }
 0x162   :  { %2515 = vmatprep.subr.bf16.mxu0 %v8077_v43  ;;  %7516 = vmatprep.subr.bf16.mxu1 %v8149_v44  ;;  %v8127_v43 = vld [vmem:[#allocation2 + $0x714] ss:$28 sps:$4 sm:$0xff]   ;;  %v7042_v44 = vcombine.high %v2882_v39, %v2886_v40  ;;  %v8170_v36 = vld [vmem:[#allocation2 + $0x944] ss:$28 sps:$4 sm:$0xff]   ;;  %v8179_v40 = vld [vmem:[#allocation2 + $0x9ec] ss:$28 sps:$4 sm:$0xff]  }
 0x163   :  { %v8174_v39 = vld [vmem:[#allocation2 + $0x9b0] ss:$28 sps:$4 sm:$0xff]  }
 0x165   :  { %2516 = vmatpush1.bf16.msra.mxu0 %v8075_v45  ;;  %7517 = vmatpush3.bf16.msra.mxu1 %v8153_v46  ;;  %v2890_v45 = vld [vmem:[#allocation5 + $0x240] sm:$0xff] }
 0x166   :  { %2517 = vmatprep.subr.bf16.mxu0 %v8082_v47  ;;  %7518 = vmatprep.subr.bf16.mxu1 %v8154_v49  ;;  %v2894_v46 = vld [vmem:[#allocation5 + $0x260] sm:$0xff]  ;;  %v8125_v47 = vld [vmem:[#allocation2 + $0x710] ss:$28 sps:$4 sm:$0xff]  }
 0x167   :  { %v8132_v49 = vld [vmem:[#allocation2 + $0x74c] ss:$28 sps:$4 sm:$0xff]   ;;  %v7050_v51 = vcombine.high %v2890_v45, %v2894_v46  ;;  %v7049_v56 = vcombine.low %v2890_v45, %v2894_v46 }
 0x168   :  { %v2819_v45 = vld [vmem:[#allocation5 + $0x8] sm:$0xff] }
 0x169   :  { %2518 = vmatpush1.bf16.msra.mxu0 %v8080_v52  ;;  %7519 = vmatpush3.bf16.msra.mxu1 %v8158_v53  ;;  %v2898_v52 = vld [vmem:[#allocation5 + $0x280] sm:$0xff]  ;;  %v2823_v46 = vld [vmem:[#allocation5 + $0x28] sm:$0xff] }
 0x16a   :  { %2519 = vmatprep.subr.bf16.mxu0 %v8087_v54  ;;  %5547 = vmatprep.subr.bf16.mxu1 %v6978_v55  ;;  %v2902_v53 = vld [vmem:[#allocation5 + $0x2a0] sm:$0xff] }
 0x16b   :  { %v8130_v54 = vld [vmem:[#allocation2 + $0x748] ss:$28 sps:$4 sm:$0xff]   ;;  %v7058_v57 = vcombine.high %v2898_v52, %v2902_v53 }
 0x16c   :  { %2698 = vmatmul.mubr.bf16.vlgmr.msra.gmra.mrb[12].mxu1 %v8470_v19  ;;  %v8137_v55 = vld [vmem:[#allocation2 + $0x784] ss:$28 sps:$4 sm:$0xff]  }
 0x16d   :  { %2520 = vmatpush1.bf16.msra.mxu0 %v8085_v58  ;;  %5548 = vmatpush1.bf16.msra.mxu1 %v6977_v59  ;;  %v2906_v58 = vld [vmem:[#allocation5 + $0x2c0] sm:$0xff] }
 0x16e   :  { %2521 = vmatprep.subr.bf16.mxu0 %v8092_v60  ;;  %5549 = vmatprep.subr.bf16.mxu1 %v6986_v61  ;;  %v2910_v59 = vld [vmem:[#allocation5 + $0x2e0] sm:$0xff]  ;;  %v8142_v61 = vld [vmem:[#allocation2 + $0x7bc] ss:$28 sps:$4 sm:$0xff]  }
 0x16f   :  { %v8135_v60 = vld [vmem:[#allocation2 + $0x780] ss:$28 sps:$4 sm:$0xff]   ;;  %v7066_v62 = vcombine.high %v2906_v58, %v2910_v59 }
 0x171   :  { %2522 = vmatpush1.bf16.msra.mxu0 %v8090_v2  ;;  %5550 = vmatpush1.bf16.msra.mxu1 %v6985_v3  ;;  %v2918_v2 = vld [vmem:[#allocation5 + $0x320] sm:$0xff]  ;;  %v8147_v3 = vld [vmem:[#allocation2 + $0x7f4] ss:$28 sps:$4 sm:$0xff]  }
 0x172   :  { %2523 = vmatprep.subr.bf16.mxu0 %v8097_v4  ;;  %5551 = vmatprep.subr.bf16.mxu1 %v6994_v6  ;;  %v7065_v4 = vcombine.low %v2906_v58, %v2910_v59  ;;  %v7074_v6 = vcombine.high %v2914_v63, %v2918_v2  ;;  %v2843_v58 = vld [vmem:[#allocation5 + $0xc8] sm:$0xff] }
 0x173   :  { %v2847_v59 = vld [vmem:[#allocation5 + $0xe8] sm:$0xff] }
 0x175   :  { %2524 = vmatpush1.bf16.msra.mxu0 %v8095_v11  ;;  %5552 = vmatpush1.bf16.msra.mxu1 %v6993_v12  ;;  %v8145_v11 = vld [vmem:[#allocation2 + $0x7f0] ss:$28 sps:$4 sm:$0xff]  }
 0x176   :  { %2525 = vmatprep.subr.bf16.mxu0 %v8102_v14  ;;  %5553 = vmatprep.subr.bf16.mxu1 %v7002_v16  ;;  %v8152_v12 = vld [vmem:[#allocation2 + $0x82c] ss:$28 sps:$4 sm:$0xff]   ;;  %v7073_v14 = vcombine.low %v2914_v63, %v2918_v2  ;;  %v7082_v16 = vcombine.high %v2922_v8, %v2926_v9  ;;  %v7003_v63 = vcombine.low %v2843_v58, %v2847_v59 }
 0x179   :  { %2526 = vmatpush1.bf16.msra.mxu0 %v8100_v20  ;;  %5554 = vmatpush1.bf16.msra.mxu1 %v7001_v21  ;;  %v8150_v20 = vld [vmem:[#allocation2 + $0x828] ss:$28 sps:$4 sm:$0xff]  }
 0x17a   :  { %2527 = vmatprep.subr.bf16.mxu0 %v8107_v22  ;;  %5555 = vmatprep.subr.bf16.mxu1 %v7010_v23  ;;  %v8157_v21 = vld [vmem:[#allocation2 + $0x864] ss:$28 sps:$4 sm:$0xff]   ;;  %v7081_v22 = vcombine.low %v2922_v8, %v2926_v9  ;;  %v7090_v23 = vcombine.high %v2930_v17, %v2934_v18  ;;  %v2867_v8 = vld [vmem:[#allocation5 + $0x188] sm:$0xff] }
 0x17b   :  { %v2871_v9 = vld [vmem:[#allocation5 + $0x1a8] sm:$0xff] }
 0x17d   :  { %2528 = vmatpush1.bf16.msra.mxu0 %v8105_v13  ;;  %5556 = vmatpush1.bf16.msra.mxu1 %v7009_v26  ;;  %v8155_v13 = vld [vmem:[#allocation2 + $0x860] ss:$28 sps:$4 sm:$0xff]  }
 0x17e   :  { %2529 = vmatprep.subr.bf16.mxu0 %v8112_v27  ;;  %5557 = vmatprep.subr.bf16.mxu1 %v7018_v28  ;;  %v8161_v26 = vld [vmem:[#allocation2 + $0x89c] ss:$28 sps:$4 sm:$0xff]   ;;  %v7089_v27 = vcombine.low %v2930_v17, %v2934_v18  ;;  %v7098_v28 = vcombine.high %v2938_v24, %v2942_v25  ;;  %v2875_v18 = vld [vmem:[#allocation5 + $0x1c8] sm:$0xff] }
 0x181   :  { %2530 = vmatpush1.bf16.msra.mxu0 %v8110_v32  ;;  %5558 = vmatpush1.bf16.msra.mxu1 %v7017_v33  ;;  %v7097_v32 = vcombine.low %v2938_v24, %v2942_v25  ;;  %v7106_v33 = vcombine.high %v8483_v0, %v8485_v1 }
 0x182   :  { %2531 = vmatprep.subr.bf16.mxu0 %v8117_v34  ;;  %5559 = vmatprep.subr.bf16.mxu1 %v7026_v5  ;;  %v8162_v34 = vld [vmem:[#allocation2 + $0x8d0] ss:$28 sps:$4 sm:$0xff]  }
 0x183   :  { %v8167_v5 = vld [vmem:[#allocation2 + $0x90c] ss:$28 sps:$4 sm:$0xff]  }
 0x185   :  { %2532 = vmatpush1.bf16.msra.mxu0 %v8115_v48  ;;  %5560 = vmatpush1.bf16.msra.mxu1 %v7025_v37  ;;  %v8168_v48 = vld [vmem:[#allocation2 + $0x940] ss:$28 sps:$4 sm:$0xff]  }
 0x186   :  { %2533 = vmatprep.subr.bf16.mxu0 %v8122_v38  ;;  %5561 = vmatprep.subr.bf16.mxu1 %v7034_v30  ;;  %v8173_v37 = vld [vmem:[#allocation2 + $0x97c] ss:$28 sps:$4 sm:$0xff]   ;;  %v8176_v30 = vld [vmem:[#allocation2 + $0x9b4] ss:$28 sps:$4 sm:$0xff]  }
 0x187   :  { %v8171_v38 = vld [vmem:[#allocation2 + $0x978] ss:$28 sps:$4 sm:$0xff]  }
 0x189   :  { %2534 = vmatpush1.bf16.msra.mxu0 %v8120_v41  ;;  %5562 = vmatpush1.bf16.msra.mxu1 %v7033_v42  ;;  %v8177_v41 = vld [vmem:[#allocation2 + $0x9e8] ss:$28 sps:$4 sm:$0xff]  }
 0x18a   :  { %2544 = vmatprep.subr.bf16.mxu0 %v8127_v43  ;;  %5563 = vmatprep.subr.bf16.mxu1 %v7042_v44  ;;  %v8182_v42 = vld [vmem:[#allocation2 + $0xa24] ss:$28 sps:$4 sm:$0xff]   ;;  %v8185_v44 = vld [vmem:[#allocation2 + $0xa5c] ss:$28 sps:$4 sm:$0xff]  }
 0x18b   :  { %v8180_v43 = vld [vmem:[#allocation2 + $0xa20] ss:$28 sps:$4 sm:$0xff]  }
 0x18c   :  { %2536 = vmatmul.mubr.bf16.vlgmr.msra.gmra.mrb[4].mxu0 %v8453_v10  ;;  %v7057_v10 = vcombine.low %v2898_v52, %v2902_v53  ;;  %v6979_v52 = vcombine.low %v2819_v45, %v2823_v46 }
 0x18d   :  { %2545 = vmatpush1.bf16.msra.mxu0 %v8125_v47  ;;  %2576 = vmatprep.mubr.bf16.mxu0 %v8462_v15  ;;  %v8140_v15 = vld [vmem:[#allocation2 + $0x7b8] ss:$28 sps:$4 sm:$0xff]  }
 0x18e   :  { %2546 = vmatprep.subr.bf16.mxu0 %v8132_v49  ;;  %5564 = vmatpush1.bf16.msra.mxu1 %v7041_v50  ;;  %v8183_v47 = vld [vmem:[#allocation2 + $0xa58] ss:$28 sps:$4 sm:$0xff]   ;;  %v6980_v49 = vcombine.high %v2819_v45, %v2823_v46  ;;  %v2827_v50 = vld [vmem:[#allocation5 + $0x48] sm:$0xff] }
 0x18f   :  { %5565 = vmatprep.subr.bf16.mxu1 %v7050_v51  ;;  %v2831_v51 = vld [vmem:[#allocation5 + $0x68] sm:$0xff] }
 0x190   :  { %v6988_v53 = vcombine.high %v2827_v50, %v2831_v51 }
 0x191   :  { %2547 = vmatpush1.bf16.msra.mxu0 %v8130_v54  ;;  %v2835_v54 = vld [vmem:[#allocation5 + $0x88] sm:$0xff] }
 0x192   :  { %2548 = vmatprep.subr.bf16.mxu0 %v8137_v55  ;;  %5566 = vmatpush1.bf16.msra.mxu1 %v7049_v56  ;;  %v2839_v55 = vld [vmem:[#allocation5 + $0xa8] sm:$0xff]  ;;  %v6987_v56 = vcombine.low %v2827_v50, %v2831_v51 }
 0x193   :  { %5567 = vmatprep.subr.bf16.mxu1 %v7058_v57  ;;  %v6996_v57 = vcombine.high %v2835_v54, %v2839_v55  ;;  %v2891_v50 = vld [vmem:[#allocation5 + $0x248] sm:$0xff] }
 0x194   :  { %v2895_v51 = vld [vmem:[#allocation5 + $0x268] sm:$0xff] }
 0x195   :  { %2549 = vmatpush1.bf16.msra.mxu0 %v8135_v60  ;;  %v6995_v60 = vcombine.low %v2835_v54, %v2839_v55 }
 0x196   :  { %2550 = vmatprep.subr.bf16.mxu0 %v8142_v61  ;;  %5568 = vmatpush1.bf16.msra.mxu1 %v7057_v10  ;;  %v7004_v61 = vcombine.high %v2843_v58, %v2847_v59  ;;  %v2851_v10 = vld [vmem:[#allocation5 + $0x108] sm:$0xff] }
 0x197   :  { %5569 = vmatprep.subr.bf16.mxu1 %v7066_v62  ;;  %v2855_v62 = vld [vmem:[#allocation5 + $0x128] sm:$0xff] }
 0x198   :  { %v7012_v2 = vcombine.high %v2851_v10, %v2855_v62 }
 0x199   :  { %2551 = vmatpush1.bf16.msra.mxu0 %v8140_v15  ;;  %v2859_v15 = vld [vmem:[#allocation5 + $0x148] sm:$0xff] }
 0x19a   :  { %2552 = vmatprep.subr.bf16.mxu0 %v8147_v3  ;;  %5570 = vmatpush1.bf16.msra.mxu1 %v7065_v4  ;;  %v2863_v3 = vld [vmem:[#allocation5 + $0x168] sm:$0xff]  ;;  %v2762_v4 = vlaneseq }
 0x19b   :  { %5571 = vmatprep.subr.bf16.mxu1 %v7074_v6  ;;  %v7020_v6 = vcombine.high %v2859_v15, %v2863_v3 }
 0x19d   :  { %2553 = vmatpush1.bf16.msra.mxu0 %v8145_v11  ;;  %v8494_v11 = vshrl.u32 %v2762_v4, 7 }
 0x19e   :  { %2554 = vmatprep.subr.bf16.mxu0 %v8152_v12  ;;  %5572 = vmatpush1.bf16.msra.mxu1 %v7073_v14  ;;  %v7019_v12 = vcombine.low %v2859_v15, %v2863_v3  ;;  %v7028_v14 = vcombine.high %v2867_v8, %v2871_v9  ;;  %v7051_v15 = vcombine.low %v2891_v50, %v2895_v51 }
 0x19f   :  { %5573 = vmatprep.subr.bf16.mxu1 %v7082_v16  ;;  %v2768_v24 = vsub.s32 1, %v8494_v11 }
 0x1a1   :  { %2555 = vmatpush1.bf16.msra.mxu0 %v8150_v20  ;;  %v2879_v20 = vld [vmem:[#allocation5 + $0x1e8] sm:$0xff] }
 0x1a2   :  { %2556 = vmatprep.subr.bf16.mxu0 %v8157_v21  ;;  %5574 = vmatpush1.bf16.msra.mxu1 %v7081_v22  ;;  %v2764_v22 = vsub.s32 0, %v8494_v11 }
 0x1a3   :  { %5575 = vmatprep.subr.bf16.mxu1 %v7090_v23 }
 0x1a5   :  { %2557 = vmatpush1.bf16.msra.mxu0 %v8155_v13  ;;  %v8500_v13 = vld [vmem:[#allocation8] sm:$0xff] }
 0x1a6   :  { %2558 = vmatprep.subr.bf16.mxu0 %v8161_v26  ;;  %5576 = vmatpush1.bf16.msra.mxu1 %v7089_v27 }
 0x1a7   :  { %5577 = vmatprep.subr.bf16.mxu1 %v7098_v28  ;;  %v2776_v28 = vsub.s32 3, %v8494_v11 }
 0x1a9   :  { %2559 = vmatpush1.bf16.msra.mxu0 %v8159_v29 }
 0x1aa   :  { %2560 = vmatprep.subr.bf16.mxu0 %v8164_v31  ;;  %5578 = vmatpush1.bf16.msra.mxu1 %v7097_v32  ;;  %v7027_v32 = vcombine.low %v2867_v8, %v2871_v9  ;;  %v2966_v8 = vld [vmem:[#allocation5 + $0x4a0] sm:$0xff]  ;;  %v2907_v9 = vld [vmem:[#allocation5 + $0x2c8] sm:$0xff] }
 0x1ab   :  { %5588 = vmatprep.subr.bf16.mxu1 %v7106_v33 }
 0x1ad   :  { %2561 = vmatpush1.bf16.msra.mxu0 %v8162_v34 }
 0x1ae   :  { %2562 = vmatprep.subr.bf16.mxu0 %v8167_v5 }
 0x1b1   :  { %2563 = vmatpush1.bf16.msra.mxu0 %v8165_v35  ;;  %v7036_v35 = vcombine.high %v2875_v18, %v2879_v20 }
 0x1b2   :  { %2564 = vmatprep.subr.bf16.mxu0 %v8170_v36 }
 0x1b5   :  { %2565 = vmatpush1.bf16.msra.mxu0 %v8168_v48 }
 0x1b6   :  { %2566 = vmatprep.subr.bf16.mxu0 %v8173_v37  ;;  %v2883_v37 = vld [vmem:[#allocation5 + $0x208] sm:$0xff] }
 0x1b9   :  { %2567 = vmatpush1.bf16.msra.mxu0 %v8171_v38  ;;  %v2887_v38 = vld [vmem:[#allocation5 + $0x228] sm:$0xff] }
 0x1ba   :  { %2568 = vmatprep.subr.bf16.mxu0 %v8176_v30  ;;  %v7044_v46 = vcombine.high %v2883_v37, %v2887_v38  ;;  %v7043_v55 = vcombine.low %v2883_v37, %v2887_v38  ;;  %v2990_v37 = vld [vmem:[#allocation5 + $0x560] sm:$0xff]  ;;  %v2931_v38 = vld [vmem:[#allocation5 + $0x388] sm:$0xff] }
 0x1bd   :  { %2569 = vmatpush1.bf16.msra.mxu0 %v8174_v39  ;;  %v2765_v39 = vrot.slane %v8500_v13, %v2764_v22 }
 0x1be   :  { %2570 = vmatprep.subr.bf16.mxu0 %v8179_v40  ;;  %v2769_v40 = vrot.slane %v8500_v13, %v2768_v24 }
 0x1c1   :  { %2571 = vmatpush1.bf16.msra.mxu0 %v8177_v41 }
 0x1c2   :  { %2572 = vmatprep.subr.bf16.mxu0 %v8182_v42 }
 0x1c5   :  { %2573 = vmatpush1.bf16.msra.mxu0 %v8180_v43  ;;  %v2777_v43 = vrot.slane %v8500_v13, %v2776_v28 }
 0x1c6   :  { %2574 = vmatprep.subr.bf16.mxu0 %v8185_v44  ;;  %v7035_v44 = vcombine.low %v2875_v18, %v2879_v20 }
 0x1c9   :  { %2575 = vmatpush1.bf16.msra.mxu0 %v8183_v47 }
 0x1ca   :  { %5711 = vmatprep.subr.bf16.mxu0 %v6980_v49 }
 0x1cc   :  { %2577 = vmatmul.mubr.bf16.vlgmr.msra.gmra.mrb[4].mxu0 %v8470_v19  ;;  %v7011_v19 = vcombine.low %v2851_v10, %v2855_v62  ;;  %v2899_v10 = vld [vmem:[#allocation5 + $0x288] sm:$0xff] }
 0x1cd   :  { %5712 = vmatpush1.bf16.msra.mxu0 %v6979_v52  ;;  %v2903_v62 = vld [vmem:[#allocation5 + $0x2a8] sm:$0xff] }
 0x1ce   :  { %5713 = vmatprep.subr.bf16.mxu0 %v6988_v53 }
 0x1d1   :  { %5714 = vmatpush1.bf16.msra.mxu0 %v6987_v56 }
 0x1d2   :  { %5715 = vmatprep.subr.bf16.mxu0 %v6996_v57  ;;  %v7052_v57 = vcombine.high %v2891_v50, %v2895_v51 }
 0x1d5   :  { %5716 = vmatpush1.bf16.msra.mxu0 %v6995_v60  ;;  %v2954_v60 = vld [vmem:[#allocation5 + $0x440] sm:$0xff] }
 0x1d6   :  { %5717 = vmatprep.subr.bf16.mxu0 %v7004_v61  ;;  %v2958_v61 = vld [vmem:[#allocation5 + $0x460] sm:$0xff] }
 0x1d7   :  { %v7114_v3 = vcombine.high %v2954_v60, %v2958_v61 }
 0x1d9   :  { %5718 = vmatpush1.bf16.msra.mxu0 %v7003_v63 }
 0x1da   :  { %5719 = vmatprep.subr.bf16.mxu0 %v7012_v2 }
 0x1dd   :  { %5720 = vmatpush1.bf16.msra.mxu0 %v7011_v19  ;;  %v7060_v19 = vcombine.high %v2899_v10, %v2903_v62 }
 0x1de   :  { %5721 = vmatprep.subr.bf16.mxu0 %v7020_v6  ;;  %v2962_v6 = vld [vmem:[#allocation5 + $0x480] sm:$0xff] }
 0x1df   :  { %v2332_v16 = vpop.f32.mrb[0].mxu0  ;;  %v8496_v17 = vpop.f32.mrb[0].mxu1  ;;  %v7122_v18 = vcombine.high %v2962_v6, %v2966_v8 }
 0x1e0   :  { %v2712_v21 = vrot.slane %v2332_v16, 2  ;;  %v2334_v23 = vpop.f32.mrb[1].mxu0  ;;  %v2457_v25 = vpop.f32.mrb[1].mxu1 }
 0x1e1   :  { %v2713_v26 = vrot.slane %v2334_v23, 2  ;;  %v2715_v27 = vrot.slane %v2457_v25, 2  ;;  %v2336_v29 = vpop.f32.mrb[2].mxu0  ;;  %v2459_v31 = vpop.f32.mrb[2].mxu1  ;;  %5722 = vmatpush1.bf16.msra.mxu0 %v7019_v12  ;;  %v2911_v12 = vld [vmem:[#allocation5 + $0x2e8] sm:$0xff] }
 0x1e2   :  { %v2726_v33 = vmax.f32 %v2332_v16, %v2712_v21  ;;  %v2337_v34 = vpop.f32.mrb[3].mxu0  ;;  %v2460_v5 = vpop.f32.mrb[3].mxu1  ;;  %5723 = vmatprep.subr.bf16.mxu0 %v7028_v14  ;;  %v7113_v14 = vcombine.low %v2954_v60, %v2958_v61  ;;  %v7059_v16 = vcombine.low %v2899_v10, %v2903_v62  ;;  %v7068_v20 = vcombine.high %v2907_v9, %v2911_v12  ;;  %v2970_v21 = vld [vmem:[#allocation5 + $0x4c0] sm:$0xff]  ;;  %v2951_v60 = vld [vmem:[#allocation5 + $0x428] sm:$0xff] }
 0x1e3   :  { %v2727_v36 = vmax.f32 %v2334_v23, %v2713_v26  ;;  %v2729_v48 = vmax.f32 %v2457_v25, %v2715_v27  ;;  %v2974_v23 = vld [vmem:[#allocation5 + $0x4e0] sm:$0xff]  ;;  %v2915_v25 = vld [vmem:[#allocation5 + $0x308] sm:$0xff]  ;;  %v7121_v27 = vcombine.low %v2962_v6, %v2966_v8  ;;  %v7067_v29 = vcombine.low %v2907_v9, %v2911_v12 }
 0x1e4   :  { %v2740_v30 = vrot.slane %v2726_v33, 4  ;;  %v2919_v26 = vld [vmem:[#allocation5 + $0x328] sm:$0xff]  ;;  %v7130_v0 = vcombine.high %v2970_v21, %v2974_v23  ;;  %v2982_v31 = vld [vmem:[#allocation5 + $0x520] sm:$0xff]  ;;  %v7129_v34 = vcombine.low %v2970_v21, %v2974_v23 }
 0x1e5   :  { %v2741_v41 = vrot.slane %v2727_v36, 4  ;;  %v2743_v42 = vrot.slane %v2729_v48, 4  ;;  %5724 = vmatpush1.bf16.msra.mxu0 %v7027_v32  ;;  %v7076_v1 = vcombine.high %v2915_v25, %v2919_v26  ;;  %v2923_v32 = vld [vmem:[#allocation5 + $0x348] sm:$0xff]  ;;  %v7075_v5 = vcombine.low %v2915_v25, %v2919_v26 }
 0x1e6   :  { %v2754_v45 = vmax.f32 %v2726_v33, %v2740_v30  ;;  %5725 = vmatprep.subr.bf16.mxu0 %v7036_v35  ;;  %v2927_v33 = vld [vmem:[#allocation5 + $0x368] sm:$0xff] }
 0x1e7   :  { %v2755_v47 = vmax.f32 %v2727_v36, %v2741_v41  ;;  %v2757_v49 = vmax.f32 %v2729_v48, %v2743_v42  ;;  %v7084_v36 = vcombine.high %v2923_v32, %v2927_v33  ;;  %v2986_v48 = vld [vmem:[#allocation5 + $0x540] sm:$0xff]  ;;  %v2935_v30 = vld [vmem:[#allocation5 + $0x3a8] sm:$0xff] }
 0x1e8   :  { %v2797_v52 = vadd.f32 %v2765_v39, %v2754_v45  ;;  %v7146_v41 = vcombine.high %v2986_v48, %v2990_v37  ;;  %v7092_v42 = vcombine.high %v2931_v38, %v2935_v30  ;;  %v7145_v50 = vcombine.low %v2986_v48, %v2990_v37  ;;  %v2955_v6 = vld [vmem:[#allocation5 + $0x448] sm:$0xff] }
 0x1e9   :  { %v2798_v53 = vadd.f32 %v2769_v40, %v2755_v47  ;;  %v2800_v54 = vadd.f32 %v2777_v43, %v2757_v49  ;;  %5726 = vmatpush1.bf16.msra.mxu0 %v7035_v44  ;;  %v7083_v40 = vcombine.low %v2923_v32, %v2927_v33  ;;  %v2994_v43 = vld [vmem:[#allocation5 + $0x580] sm:$0xff]  ;;  %v2943_v47 = vld [vmem:[#allocation5 + $0x3e8] sm:$0xff] }
 0x1ea   :  { %v2804_v56 = vmax.f32 %v2797_v52, 0.0  ;;  %5727 = vmatprep.subr.bf16.mxu0 %v7044_v46  ;;  %v2998_v44 = vld [vmem:[#allocation5 + $0x5a0] sm:$0xff]  ;;  %v2939_v46 = vld [vmem:[#allocation5 + $0x3c8] sm:$0xff] }
 0x1eb   :  { %v2805_v58 = vmax.f32 %v2798_v53, 0.0  ;;  %v2807_v59 = vmax.f32 %v2800_v54, 0.0  ;;  %v7091_v53 = vcombine.low %v2931_v38, %v2935_v30  ;;  %v7154_v54 = vcombine.high %v2994_v43, %v2998_v44  ;;  %v2959_v8 = vld [vmem:[#allocation5 + $0x468] sm:$0xff] }
 0x1ec   :  { %v8514_v2 = vpack.c.bf16 %v2804_v56, %v2804_v56  ;;  %v7100_v56 = vcombine.high %v2939_v46, %v2943_v47  ;;  %v7153_v61 = vcombine.low %v2994_v43, %v2998_v44  ;;  %v7099_v10 = vcombine.low %v2939_v46, %v2943_v47  ;;  %v2963_v21 = vld [vmem:[#allocation5 + $0x488] sm:$0xff]  ;;  %v3046_v43 = vld [vmem:[#allocation5 + $0x720] sm:$0xff] }
 0x1ed   :  { %v8512_v63 = vpack.c.bf16 %v2805_v58, %v2805_v58  ;;  %5728 = vmatpush1.bf16.msra.mxu0 %v7043_v55  ;;  %v8516_v4 = vpack.c.bf16 %v2807_v59, %v2807_v59  ;;  %v3006_v58 = vld [vmem:[#allocation5 + $0x5e0] sm:$0xff]  ;;  %v2947_v59 = vld [vmem:[#allocation5 + $0x408] sm:$0xff]  ;;  %v7115_v26 = vcombine.low %v2955_v6, %v2959_v8  ;;  %v2714_v30 = vrot.slane %v8496_v17, 2 }
 0x1ee   :  { %5729 = vmatprep.subr.bf16.mxu0 %v7052_v57  ;;  %v3002_v57 = vld [vmem:[#allocation5 + $0x5c0] sm:$0xff]  ;;  %v7107_v12 = vcombine.low %v2947_v59, %v2951_v60  ;;  %v2967_v23 = vld [vmem:[#allocation5 + $0x4a8] sm:$0xff] }
 0x1ef   :  { %5579 = vmatprep.mubr.bf16.mxu1 %v8512_v63  ;;  %5743 = vmatprep.mubr.bf16.mxu0 %v8512_v63  ;;  %v7162_v62 = vcombine.high %v3002_v57, %v3006_v58  ;;  %v7161_v9 = vcombine.low %v3002_v57, %v3006_v58  ;;  %v7123_v33 = vcombine.low %v2963_v21, %v2967_v23  ;;  %v2979_v48 = vld [vmem:[#allocation5 + $0x508] sm:$0xff]  ;;  %v2772_v57 = vsub.s32 2, %v8494_v11 }
 0x1f0   :  { %5580 = vmatmul.mubr.bf16.vlgmr.msra.gmra.mrb[16].mxu1 %v8514_v2  ;;  %v2983_v37 = vld [vmem:[#allocation5 + $0x528] sm:$0xff]  ;;  %v2728_v47 = vmax.f32 %v8496_v17, %v2714_v30  ;;  %v3082_v30 = vld [vmem:[#allocation5 + $0x840] sm:$0xff] }
 0x1f1   :  { %5589 = vmatpush1.bf16.msra.mxu1 %v7105_v7  ;;  %5620 = vmatprep.mubr.bf16.mxu1 %v8516_v4  ;;  %v2978_v7 = vld [vmem:[#allocation5 + $0x500] sm:$0xff]  ;;  %v2987_v44 = vld [vmem:[#allocation5 + $0x548] sm:$0xff] }
 0x1f2   :  { %5730 = vmatpush1.bf16.msra.mxu0 %v7051_v15  ;;  %5590 = vmatprep.subr.bf16.mxu1 %v7114_v3  ;;  %v7138_v35 = vcombine.high %v2978_v7, %v2982_v31  ;;  %v7137_v39 = vcombine.low %v2978_v7, %v2982_v31  ;;  %v7108_v15 = vcombine.high %v2947_v59, %v2951_v60  ;;  %v3010_v3 = vld [vmem:[#allocation5 + $0x600] sm:$0xff]  ;;  %v2971_v7 = vld [vmem:[#allocation5 + $0x4c8] sm:$0xff]  ;;  %v2742_v59 = vrot.slane %v2728_v47, 4 }
 0x1f3   :  { %5731 = vmatprep.subr.bf16.mxu0 %v7060_v19  ;;  %v3014_v19 = vld [vmem:[#allocation5 + $0x620] sm:$0xff]  ;;  %v2975_v31 = vld [vmem:[#allocation5 + $0x4e8] sm:$0xff] }
 0x1f4   :  { %v7169_v25 = vcombine.low %v3010_v3, %v3014_v19 }
 0x1f5   :  { %5591 = vmatpush1.bf16.msra.mxu1 %v7113_v14  ;;  %v7170_v14 = vcombine.high %v3010_v3, %v3014_v19  ;;  %v3003_v3 = vld [vmem:[#allocation5 + $0x5c8] sm:$0xff] }
 0x1f6   :  { %5732 = vmatpush1.bf16.msra.mxu0 %v7059_v16  ;;  %5592 = vmatprep.subr.bf16.mxu1 %v7122_v18  ;;  %v7116_v16 = vcombine.high %v2955_v6, %v2959_v8  ;;  %v3018_v18 = vld [vmem:[#allocation5 + $0x640] sm:$0xff]  ;;  %v3007_v19 = vld [vmem:[#allocation5 + $0x5e8] sm:$0xff]  ;;  %v2773_v8 = vrot.slane %v8500_v13, %v2772_v57 }
 0x1f7   :  { %5733 = vmatprep.subr.bf16.mxu0 %v7068_v20  ;;  %v3022_v20 = vld [vmem:[#allocation5 + $0x660] sm:$0xff] }
 0x1f8   :  { %v7177_v32 = vcombine.low %v3018_v18, %v3022_v20 }
 0x1f9   :  { %5593 = vmatpush1.bf16.msra.mxu1 %v7121_v27  ;;  %v7178_v27 = vcombine.high %v3018_v18, %v3022_v20 }
 0x1fa   :  { %5734 = vmatpush1.bf16.msra.mxu0 %v7067_v29  ;;  %5594 = vmatprep.subr.bf16.mxu1 %v7130_v0  ;;  %v7124_v29 = vcombine.high %v2963_v21, %v2967_v23  ;;  %v3026_v0 = vld [vmem:[#allocation5 + $0x680] sm:$0xff]  ;;  %v7164_v23 = vcombine.high %v3003_v3, %v3007_v19 }
 0x1fb   :  { %5735 = vmatprep.subr.bf16.mxu0 %v7076_v1  ;;  %v3030_v1 = vld [vmem:[#allocation5 + $0x6a0] sm:$0xff] }
 0x1fc   :  { %v7185_v38 = vcombine.low %v3026_v0, %v3030_v1 }
 0x1fd   :  { %5595 = vmatpush1.bf16.msra.mxu1 %v7129_v34  ;;  %v7186_v34 = vcombine.high %v3026_v0, %v3030_v1  ;;  %v3015_v0 = vld [vmem:[#allocation5 + $0x628] sm:$0xff] }
 0x1fe   :  { %5736 = vmatpush1.bf16.msra.mxu0 %v7075_v5  ;;  %5596 = vmatprep.subr.bf16.mxu1 %v7138_v35  ;;  %v7132_v5 = vcombine.high %v2971_v7, %v2975_v31  ;;  %v3034_v35 = vld [vmem:[#allocation5 + $0x6c0] sm:$0xff] }
 0x1ff   :  { %5737 = vmatprep.subr.bf16.mxu0 %v7084_v36  ;;  %v7476_v45 = vpop.f32.mrb[4].mxu1  ;;  %v3038_v36 = vld [vmem:[#allocation5 + $0x6e0] sm:$0xff] }
 0x200   :  { %v7477_v49 = vpop.f32.mrb[5].mxu1  ;;  %v7193_v46 = vcombine.low %v3034_v35, %v3038_v36 }
 0x201   :  { %5597 = vmatpush1.bf16.msra.mxu1 %v7137_v39  ;;  %v8525_v51 = vadd.f32 %v7477_v49, %v7476_v45  ;;  %v7479_v52 = vpop.f32.mrb[6].mxu1  ;;  %v7131_v39 = vcombine.low %v2971_v7, %v2975_v31  ;;  %v2991_v45 = vld [vmem:[#allocation5 + $0x568] sm:$0xff]  ;;  %v7139_v49 = vcombine.low %v2979_v48, %v2983_v37  ;;  %v7163_v7 = vcombine.low %v3003_v3, %v3007_v19 }
 0x202   :  { %5738 = vmatpush1.bf16.msra.mxu0 %v7083_v40  ;;  %5598 = vmatprep.subr.bf16.mxu1 %v7146_v41  ;;  %v7480_v55 = vpop.f32.mrb[7].mxu1  ;;  %v7194_v40 = vcombine.high %v3034_v35, %v3038_v36  ;;  %v7140_v41 = vcombine.high %v2979_v48, %v2983_v37  ;;  %v7148_v52 = vcombine.high %v2987_v44, %v2991_v45  ;;  %v3023_v35 = vld [vmem:[#allocation5 + $0x668] sm:$0xff] }
 0x203   :  { %5739 = vmatprep.subr.bf16.mxu0 %v7092_v42  ;;  %v3042_v42 = vld [vmem:[#allocation5 + $0x700] sm:$0xff]  ;;  %v2995_v55 = vld [vmem:[#allocation5 + $0x588] sm:$0xff]  ;;  %v7147_v60 = vcombine.low %v2987_v44, %v2991_v45 }
 0x204   :  { %v7201_v58 = vcombine.low %v3042_v42, %v3046_v43  ;;  %v8540_v44 = vld [vmem:[#allocation5 + $0xc20] sm:$0xff] }
 0x205   :  { %5599 = vmatpush1.bf16.msra.mxu1 %v7145_v50  ;;  %v7202_v50 = vcombine.high %v3042_v42, %v3046_v43  ;;  %v8538_v43 = vld [vmem:[#allocation5 + $0xc00] sm:$0xff] }
 0x206   :  { %5740 = vmatpush1.bf16.msra.mxu0 %v7091_v53  ;;  %5600 = vmatprep.subr.bf16.mxu1 %v7154_v54  ;;  %v3050_v53 = vld [vmem:[#allocation5 + $0x740] sm:$0xff] }
 0x207   :  { %5741 = vmatprep.subr.bf16.mxu0 %v7100_v56  ;;  %v3054_v54 = vld [vmem:[#allocation5 + $0x760] sm:$0xff]  ;;  %v2999_v56 = vld [vmem:[#allocation5 + $0x5a8] sm:$0xff] }
 0x208   :  { %v7156_v17 = vcombine.high %v2995_v55, %v2999_v56  ;;  %v7155_v18 = vcombine.low %v2995_v55, %v2999_v56  ;;  %v3039_v55 = vld [vmem:[#allocation5 + $0x6e8] sm:$0xff] }
 0x209   :  { %5601 = vmatpush1.bf16.msra.mxu1 %v7153_v61  ;;  %v7210_v61 = vcombine.high %v3050_v53, %v3054_v54 }
 0x20a   :  { %5742 = vmatpush1.bf16.msra.mxu0 %v7099_v10  ;;  %5602 = vmatprep.subr.bf16.mxu1 %v7162_v62  ;;  %v3058_v10 = vld [vmem:[#allocation5 + $0x780] sm:$0xff] }
 0x20b   :  { %5752 = vmatprep.subr.bf16.mxu0 %v7108_v15  ;;  %v3062_v62 = vld [vmem:[#allocation5 + $0x7a0] sm:$0xff] }
 0x20c   :  { %v7218_v20 = vcombine.high %v3058_v10, %v3062_v62  ;;  %v7217_v13 = vcombine.low %v3058_v10, %v3062_v62  ;;  %v3043_v10 = vld [vmem:[#allocation5 + $0x708] sm:$0xff] }
 0x20d   :  { %5603 = vmatpush1.bf16.msra.mxu1 %v7161_v9  ;;  %5744 = vmatmul.mubr.bf16.vlgmr.msra.gmra.mrb[8].mxu0 %v8514_v2  ;;  %v7209_v9 = vcombine.low %v3050_v53, %v3054_v54  ;;  %v7361_v53 = vcombine.low %v8538_v43, %v8540_v44  ;;  %v3035_v54 = vld [vmem:[#allocation5 + $0x6c8] sm:$0xff] }
 0x20e   :  { %5753 = vmatpush1.bf16.msra.mxu0 %v7107_v12  ;;  %5784 = vmatprep.mubr.bf16.mxu0 %v8516_v4  ;;  %v3047_v62 = vld [vmem:[#allocation5 + $0x728] sm:$0xff]  ;;  %v7195_v3 = vcombine.low %v3035_v54, %v3039_v55 }
 0x20f   :  { %5604 = vmatprep.subr.bf16.mxu1 %v7170_v14  ;;  %5754 = vmatprep.subr.bf16.mxu0 %v7116_v16  ;;  %v2756_v16 = vmax.f32 %v2728_v47, %v2742_v59 }
 0x211   :  { %5605 = vmatpush1.bf16.msra.mxu1 %v7169_v25  ;;  %v3066_v25 = vld [vmem:[#allocation5 + $0x7c0] sm:$0xff]  ;;  %v2799_v1 = vadd.f32 %v2773_v8, %v2756_v16 }
 0x212   :  { %5755 = vmatpush1.bf16.msra.mxu0 %v7115_v26  ;;  %5606 = vmatprep.subr.bf16.mxu1 %v7178_v27  ;;  %v3070_v26 = vld [vmem:[#allocation5 + $0x7e0] sm:$0xff] }
 0x213   :  { %5756 = vmatprep.subr.bf16.mxu0 %v7124_v29  ;;  %v3011_v29 = vld [vmem:[#allocation5 + $0x608] sm:$0xff]  ;;  %v7226_v31 = vcombine.high %v3066_v25, %v3070_v26  ;;  %v7225_v36 = vcombine.low %v3066_v25, %v3070_v26  ;;  %v2806_v48 = vmax.f32 %v2799_v1, 0.0  ;;  %v3106_v8 = vld [vmem:[#allocation5 + $0x900] sm:$0xff] }
 0x214   :  { %v3118_v25 = vld [vmem:[#allocation5 + $0x960] sm:$0xff]  ;;  %v3059_v26 = vld [vmem:[#allocation5 + $0x788] sm:$0xff] }
 0x215   :  { %5607 = vmatpush1.bf16.msra.mxu1 %v7177_v32  ;;  %v7172_v32 = vcombine.high %v3011_v29, %v3015_v0  ;;  %v8542_v45 = vpack.c.bf16 %v2806_v48, %v2806_v48 }
 0x216   :  { %5757 = vmatpush1.bf16.msra.mxu0 %v7123_v33  ;;  %5608 = vmatprep.subr.bf16.mxu1 %v7186_v34  ;;  %v3074_v33 = vld [vmem:[#allocation5 + $0x800] sm:$0xff] }
 0x217   :  { %5758 = vmatprep.subr.bf16.mxu0 %v7132_v5  ;;  %v3078_v34 = vld [vmem:[#allocation5 + $0x820] sm:$0xff]  ;;  %v3019_v5 = vld [vmem:[#allocation5 + $0x648] sm:$0xff] }
 0x218   :  { %v7234_v37 = vcombine.high %v3074_v33, %v3078_v34  ;;  %v7233_v42 = vcombine.low %v3074_v33, %v3078_v34  ;;  %v3126_v33 = vld [vmem:[#allocation5 + $0x9a0] sm:$0xff]  ;;  %v3067_v34 = vld [vmem:[#allocation5 + $0x7c8] sm:$0xff] }
 0x219   :  { %5609 = vmatpush1.bf16.msra.mxu1 %v7185_v38  ;;  %v7180_v38 = vcombine.high %v3019_v5, %v3023_v35 }
 0x21a   :  { %5759 = vmatpush1.bf16.msra.mxu0 %v7131_v39  ;;  %5610 = vmatprep.subr.bf16.mxu1 %v7194_v40  ;;  %v3086_v39 = vld [vmem:[#allocation5 + $0x860] sm:$0xff]  ;;  %v3027_v40 = vld [vmem:[#allocation5 + $0x688] sm:$0xff] }
 0x21b   :  { %5760 = vmatprep.subr.bf16.mxu0 %v7140_v41  ;;  %v3031_v41 = vld [vmem:[#allocation5 + $0x6a8] sm:$0xff]  ;;  %v7242_v47 = vcombine.high %v3082_v30, %v3086_v39  ;;  %v7241_v56 = vcombine.low %v3082_v30, %v3086_v39 }
 0x21d   :  { %5611 = vmatpush1.bf16.msra.mxu1 %v7193_v46  ;;  %v7179_v46 = vcombine.low %v3019_v5, %v3023_v35  ;;  %v3071_v5 = vld [vmem:[#allocation5 + $0x7e8] sm:$0xff] }
 0x21e   :  { %5761 = vmatpush1.bf16.msra.mxu0 %v7139_v49  ;;  %5612 = vmatprep.subr.bf16.mxu1 %v7202_v50  ;;  %v7188_v49 = vcombine.high %v3027_v40, %v3031_v41  ;;  %v3090_v50 = vld [vmem:[#allocation5 + $0x880] sm:$0xff]  ;;  %v7228_v39 = vcombine.high %v3067_v34, %v3071_v5 }
 0x21f   :  { %5762 = vmatprep.subr.bf16.mxu0 %v7148_v52  ;;  %v7498_v15 = vpop.f32.mrb[8].mxu1  ;;  %v3094_v52 = vld [vmem:[#allocation5 + $0x8a0] sm:$0xff] }
 0x220   :  { %v7499_v6 = vpop.f32.mrb[9].mxu1  ;;  %v7250_v59 = vcombine.high %v3090_v50, %v3094_v52 }
 0x221   :  { %5613 = vmatpush1.bf16.msra.mxu1 %v7201_v58  ;;  %v7500_v12 = vadd.f32 %v7499_v6, %v7498_v15  ;;  %v7501_v14 = vpop.f32.mrb[10].mxu1  ;;  %v7187_v58 = vcombine.low %v3027_v40, %v3031_v41  ;;  %v7249_v15 = vcombine.low %v3090_v50, %v3094_v52  ;;  %v7204_v6 = vcombine.high %v3043_v10, %v3047_v62  ;;  %v3130_v41 = vld [vmem:[#allocation5 + $0x9c0] sm:$0xff] }
 0x222   :  { %5763 = vmatpush1.bf16.msra.mxu0 %v7147_v60  ;;  %5614 = vmatprep.subr.bf16.mxu1 %v7210_v61  ;;  %v7502_v21 = vpop.f32.mrb[11].mxu1  ;;  %v7196_v60 = vcombine.high %v3035_v54, %v3039_v55  ;;  %v3098_v61 = vld [vmem:[#allocation5 + $0x8c0] sm:$0xff]  ;;  %v3055_v14 = vld [vmem:[#allocation5 + $0x768] sm:$0xff]  ;;  %v7227_v50 = vcombine.low %v3067_v34, %v3071_v5 }
 0x223   :  { %5764 = vmatprep.subr.bf16.mxu0 %v7156_v17  ;;  %v8536_v27 = vadd.f32 %v7500_v12, %v8525_v51  ;;  %v7171_v51 = vcombine.low %v3011_v29, %v3015_v0  ;;  %v3102_v17 = vld [vmem:[#allocation5 + $0x8e0] sm:$0xff]  ;;  %v3051_v12 = vld [vmem:[#allocation5 + $0x748] sm:$0xff] }
 0x224   :  { %v7258_v19 = vcombine.high %v3098_v61, %v3102_v17  ;;  %v7257_v16 = vcombine.low %v3098_v61, %v3102_v17  ;;  %v7212_v21 = vcombine.high %v3051_v12, %v3055_v14  ;;  %v3063_v29 = vld [vmem:[#allocation5 + $0x7a8] sm:$0xff]  ;;  %v3138_v55 = vld [vmem:[#allocation5 + $0xa00] sm:$0xff] }
 0x225   :  { %5615 = vmatpush1.bf16.msra.mxu1 %v7209_v9  ;;  %v3110_v9 = vld [vmem:[#allocation5 + $0x920] sm:$0xff]  ;;  %v3115_v5 = vld [vmem:[#allocation5 + $0x948] sm:$0xff] }
 0x226   :  { %5765 = vmatpush1.bf16.msra.mxu0 %v7155_v18  ;;  %5616 = vmatprep.subr.bf16.mxu1 %v7218_v20  ;;  %v7203_v18 = vcombine.low %v3043_v10, %v3047_v62  ;;  %v7266_v20 = vcombine.high %v3106_v8, %v3110_v9  ;;  %v7265_v0 = vcombine.low %v3106_v8, %v3110_v9  ;;  %v3146_v10 = vld [vmem:[#allocation5 + $0xa40] sm:$0xff] }
 0x227   :  { %5766 = vmatprep.subr.bf16.mxu0 %v7164_v23  ;;  %v3114_v23 = vld [vmem:[#allocation5 + $0x940] sm:$0xff] }
 0x228   :  { %v7274_v1 = vcombine.high %v3114_v23, %v3118_v25  ;;  %v7273_v48 = vcombine.low %v3114_v23, %v3118_v25  ;;  %v3150_v62 = vld [vmem:[#allocation5 + $0xa60] sm:$0xff] }
 0x229   :  { %5617 = vmatpush1.bf16.msra.mxu1 %v7217_v13  ;;  %v7211_v13 = vcombine.low %v3051_v12, %v3055_v14  ;;  %v7306_v8 = vcombine.high %v3146_v10, %v3150_v62  ;;  %v3154_v12 = vld [vmem:[#allocation5 + $0xa80] sm:$0xff] }
 0x22a   :  { %5767 = vmatpush1.bf16.msra.mxu0 %v7163_v7  ;;  %5618 = vmatprep.subr.bf16.mxu1 %v7226_v31  ;;  %v7220_v7 = vcombine.high %v3059_v26, %v3063_v29  ;;  %v3158_v14 = vld [vmem:[#allocation5 + $0xaa0] sm:$0xff] }
 0x22b   :  { %5768 = vmatprep.subr.bf16.mxu0 %v7172_v32  ;;  %v3122_v32 = vld [vmem:[#allocation5 + $0x980] sm:$0xff]  ;;  %v7314_v23 = vcombine.high %v3154_v12, %v3158_v14 }
 0x22c   :  { %v3174_v34 = vld [vmem:[#allocation5 + $0xb20] sm:$0xff] }
 0x22d   :  { %5619 = vmatpush1.bf16.msra.mxu1 %v7225_v36 }
 0x22e   :  { %5769 = vmatpush1.bf16.msra.mxu0 %v7171_v51  ;;  %5629 = vmatprep.subr.bf16.mxu1 %v7234_v37  ;;  %v7219_v37 = vcombine.low %v3059_v26, %v3063_v29  ;;  %v3162_v26 = vld [vmem:[#allocation5 + $0xac0] sm:$0xff] }
 0x22f   :  { %5770 = vmatprep.subr.bf16.mxu0 %v7180_v38  ;;  %v7282_v38 = vcombine.high %v3122_v32, %v3126_v33  ;;  %v3166_v29 = vld [vmem:[#allocation5 + $0xae0] sm:$0xff] }
 0x230   :  { %5621 = vmatmul.mubr.bf16.vlgmr.msra.gmra.mrb[16].mxu1 %v8542_v45 }
 0x231   :  { %5630 = vmatpush1.bf16.msra.mxu1 %v7233_v42  ;;  %v3134_v42 = vld [vmem:[#allocation5 + $0x9e0] sm:$0xff] }
 0x232   :  { %5771 = vmatpush1.bf16.msra.mxu0 %v7179_v46  ;;  %5631 = vmatprep.subr.bf16.mxu1 %v7242_v47  ;;  %v3075_v46 = vld [vmem:[#allocation5 + $0x808] sm:$0xff]  ;;  %v7290_v52 = vcombine.high %v3130_v41, %v3134_v42 }
 0x233   :  { %5772 = vmatprep.subr.bf16.mxu0 %v7188_v49  ;;  %v3079_v47 = vld [vmem:[#allocation5 + $0x828] sm:$0xff]  ;;  %v7281_v49 = vcombine.low %v3122_v32, %v3126_v33  ;;  %v3170_v33 = vld [vmem:[#allocation5 + $0xb00] sm:$0xff] }
 0x234   :  { %v7236_v54 = vcombine.high %v3075_v46, %v3079_v47 }
 0x235   :  { %5632 = vmatpush1.bf16.msra.mxu1 %v7241_v56  ;;  %v3142_v56 = vld [vmem:[#allocation5 + $0xa20] sm:$0xff] }
 0x236   :  { %5773 = vmatpush1.bf16.msra.mxu0 %v7187_v58  ;;  %5633 = vmatprep.subr.bf16.mxu1 %v7250_v59  ;;  %v3083_v58 = vld [vmem:[#allocation5 + $0x848] sm:$0xff]  ;;  %v7298_v61 = vcombine.high %v3138_v55, %v3142_v56 }
 0x237   :  { %5774 = vmatprep.subr.bf16.mxu0 %v7196_v60  ;;  %v3087_v59 = vld [vmem:[#allocation5 + $0x868] sm:$0xff]  ;;  %v7289_v60 = vcombine.low %v3130_v41, %v3134_v42  ;;  %v7329_v42 = vcombine.low %v3170_v33, %v3174_v34 }
 0x238   :  { %v7244_v17 = vcombine.high %v3083_v58, %v3087_v59  ;;  %v3127_v41 = vld [vmem:[#allocation5 + $0x9a8] sm:$0xff] }
 0x239   :  { %5634 = vmatpush1.bf16.msra.mxu1 %v7249_v15  ;;  %v3091_v15 = vld [vmem:[#allocation5 + $0x888] sm:$0xff] }
 0x23a   :  { %5775 = vmatpush1.bf16.msra.mxu0 %v7195_v3  ;;  %5635 = vmatprep.subr.bf16.mxu1 %v7258_v19  ;;  %v3095_v3 = vld [vmem:[#allocation5 + $0x8a8] sm:$0xff]  ;;  %v7297_v19 = vcombine.low %v3138_v55, %v3142_v56 }
 0x23b   :  { %5776 = vmatprep.subr.bf16.mxu0 %v7204_v6  ;;  %v7243_v6 = vcombine.low %v3083_v58, %v3087_v59  ;;  %v7252_v9 = vcombine.high %v3091_v15, %v3095_v3  ;;  %v3135_v55 = vld [vmem:[#allocation5 + $0x9e8] sm:$0xff] }
 0x23d   :  { %5636 = vmatpush1.bf16.msra.mxu1 %v7257_v16  ;;  %v3099_v16 = vld [vmem:[#allocation5 + $0x8c8] sm:$0xff] }
 0x23e   :  { %5777 = vmatpush1.bf16.msra.mxu0 %v7203_v18  ;;  %5637 = vmatprep.subr.bf16.mxu1 %v7266_v20  ;;  %v3103_v18 = vld [vmem:[#allocation5 + $0x8e8] sm:$0xff]  ;;  %v7305_v20 = vcombine.low %v3146_v10, %v3150_v62 }
 0x23f   :  { %5778 = vmatprep.subr.bf16.mxu0 %v7212_v21  ;;  %v7520_v31 = vpop.f32.mrb[12].mxu1  ;;  %v7251_v21 = vcombine.low %v3091_v15, %v3095_v3  ;;  %v7260_v25 = vcombine.high %v3099_v16, %v3103_v18  ;;  %v3143_v10 = vld [vmem:[#allocation5 + $0xa28] sm:$0xff] }
 0x240   :  { %v7521_v35 = vpop.f32.mrb[13].mxu1 }
 0x241   :  { %v7522_v36 = vadd.f32 %v7521_v35, %v7520_v31  ;;  %5638 = vmatpush1.bf16.msra.mxu1 %v7265_v0  ;;  %v7523_v51 = vpop.f32.mrb[14].mxu1  ;;  %v3107_v0 = vld [vmem:[#allocation5 + $0x908] sm:$0xff]  ;;  %v7322_v31 = vcombine.high %v3162_v26, %v3166_v29 }
 0x242   :  { %5779 = vmatpush1.bf16.msra.mxu0 %v7211_v13  ;;  %5639 = vmatprep.subr.bf16.mxu1 %v7274_v1  ;;  %v7524_v30 = vpop.f32.mrb[15].mxu1  ;;  %v3111_v13 = vld [vmem:[#allocation5 + $0x928] sm:$0xff]  ;;  %v7313_v1 = vcombine.low %v3154_v12, %v3158_v14  ;;  %v7330_v51 = vcombine.high %v3170_v33, %v3174_v34  ;;  %v7362_v14 = vcombine.high %v8538_v43, %v8540_v44 }
 0x243   :  { %5780 = vmatprep.subr.bf16.mxu0 %v7220_v7  ;;  %v8548_v40 = vadd.f32 %v7522_v36, %v8536_v27  ;;  %v7235_v27 = vcombine.low %v3075_v46, %v3079_v47  ;;  %v7259_v7 = vcombine.low %v3099_v16, %v3103_v18  ;;  %v7268_v32 = vcombine.high %v3107_v0, %v3111_v13  ;;  %v3119_v35 = vld [vmem:[#allocation5 + $0x968] sm:$0xff]  ;;  %v3182_v30 = vld [vmem:[#allocation5 + $0xb60] sm:$0xff] }
 0x244   :  { %v7321_v36 = vcombine.low %v3162_v26, %v3166_v29  ;;  %v7275_v46 = vcombine.low %v3115_v5, %v3119_v35  ;;  %v3155_v18 = vld [vmem:[#allocation5 + $0xa88] sm:$0xff] }
 0x245   :  { %5640 = vmatpush1.bf16.msra.mxu1 %v7273_v48  ;;  %v7267_v48 = vcombine.low %v3107_v0, %v3111_v13  ;;  %v3167_v26 = vld [vmem:[#allocation5 + $0xae8] sm:$0xff] }
 0x246   :  { %5781 = vmatpush1.bf16.msra.mxu0 %v7219_v37  ;;  %5641 = vmatprep.subr.bf16.mxu1 %v7282_v38  ;;  %v7276_v37 = vcombine.high %v3115_v5, %v3119_v35  ;;  %v3178_v38 = vld [vmem:[#allocation5 + $0xb40] sm:$0xff]  ;;  %v3171_v13 = vld [vmem:[#allocation5 + $0xb08] sm:$0xff] }
 0x247   :  { %5782 = vmatprep.subr.bf16.mxu0 %v7228_v39  ;;  %v3123_v39 = vld [vmem:[#allocation5 + $0x988] sm:$0xff]  ;;  %v7338_v47 = vcombine.high %v3178_v38, %v3182_v30  ;;  %v7337_v56 = vcombine.low %v3178_v38, %v3182_v30 }
 0x248   :  { %v7283_v58 = vcombine.low %v3123_v39, %v3127_v41  ;;  %v3183_v33 = vld [vmem:[#allocation5 + $0xb68] sm:$0xff] }
 0x249   :  { %5642 = vmatpush1.bf16.msra.mxu1 %v7281_v49  ;;  %v7284_v49 = vcombine.high %v3123_v39, %v3127_v41  ;;  %v3187_v35 = vld [vmem:[#allocation5 + $0xb88] sm:$0xff] }
 0x24a   :  { %5783 = vmatpush1.bf16.msra.mxu0 %v7227_v50  ;;  %5643 = vmatprep.subr.bf16.mxu1 %v7290_v52  ;;  %v3186_v50 = vld [vmem:[#allocation5 + $0xb80] sm:$0xff]  ;;  %v3199_v38 = vld [vmem:[#allocation5 + $0xbe8] sm:$0xff] }
 0x24b   :  { %5793 = vmatprep.subr.bf16.mxu0 %v7236_v54  ;;  %v3190_v52 = vld [vmem:[#allocation5 + $0xba0] sm:$0xff]  ;;  %v3131_v54 = vld [vmem:[#allocation5 + $0x9c8] sm:$0xff] }
 0x24c   :  { %v7346_v59 = vcombine.high %v3186_v50, %v3190_v52  ;;  %v7345_v62 = vcombine.low %v3186_v50, %v3190_v52  ;;  %v7291_v15 = vcombine.low %v3131_v54, %v3135_v55  ;;  %v3203_v41 = vld [vmem:[#allocation5 + $0xc08] sm:$0xff]  ;;  %v2780_v52 = vsub.s32 4, %v8494_v11 }
 0x24d   :  { %5785 = vmatmul.mubr.bf16.vlgmr.msra.gmra.mrb[8].mxu0 %v8542_v45  ;;  %5644 = vmatpush1.bf16.msra.mxu1 %v7289_v60  ;;  %v7292_v60 = vcombine.high %v3131_v54, %v3135_v55 }
 0x24e   :  { %5794 = vmatpush1.bf16.msra.mxu0 %v7235_v27  ;;  %5645 = vmatprep.subr.bf16.mxu1 %v7298_v61  ;;  %v3194_v27 = vld [vmem:[#allocation5 + $0xbc0] sm:$0xff] }
 0x24f   :  { %5795 = vmatprep.subr.bf16.mxu0 %v7244_v17  ;;  %v3198_v61 = vld [vmem:[#allocation5 + $0xbe0] sm:$0xff]  ;;  %v3139_v17 = vld [vmem:[#allocation5 + $0xa08] sm:$0xff] }
 0x250   :  { %v7354_v3 = vcombine.high %v3194_v27, %v3198_v61  ;;  %v7299_v12 = vcombine.low %v3139_v17, %v3143_v10 }
 0x251   :  { %5646 = vmatpush1.bf16.msra.mxu1 %v7297_v19  ;;  %v7300_v19 = vcombine.high %v3139_v17, %v3143_v10  ;;  %v8555_v17 = vld [vmem:[#allocation8] sm:$0xff] }
 0x252   :  { %5796 = vmatpush1.bf16.msra.mxu0 %v7243_v6  ;;  %5647 = vmatprep.subr.bf16.mxu1 %v7306_v8  ;;  %v3147_v6 = vld [vmem:[#allocation5 + $0xa48] sm:$0xff]  ;;  %v2781_v10 = vrot.slane %v8555_v17, %v2780_v52 }
 0x253   :  { %5797 = vmatprep.subr.bf16.mxu0 %v7252_v9  ;;  %v3151_v8 = vld [vmem:[#allocation5 + $0xa68] sm:$0xff]  ;;  %v7353_v9 = vcombine.low %v3194_v27, %v3198_v61 }
 0x254   :  { %v7308_v16 = vcombine.high %v3147_v6, %v3151_v8 }
 0x255   :  { %5648 = vmatpush1.bf16.msra.mxu1 %v7305_v20  ;;  %v3159_v20 = vld [vmem:[#allocation5 + $0xaa8] sm:$0xff] }
 0x256   :  { %5798 = vmatpush1.bf16.msra.mxu0 %v7251_v21  ;;  %5649 = vmatprep.subr.bf16.mxu1 %v7314_v23  ;;  %v7307_v21 = vcombine.low %v3147_v6, %v3151_v8  ;;  %v7316_v23 = vcombine.high %v3155_v18, %v3159_v20  ;;  %v7315_v29 = vcombine.low %v3155_v18, %v3159_v20  ;;  %v3211_v18 = vld [vmem:[#allocation5 + $0xc48] sm:$0xff] }
 0x257   :  { %5799 = vmatprep.subr.bf16.mxu0 %v7260_v25  ;;  %v3163_v25 = vld [vmem:[#allocation5 + $0xac8] sm:$0xff] }
 0x258   :  { %v7324_v0 = vcombine.high %v3163_v25, %v3167_v26  ;;  %v3215_v20 = vld [vmem:[#allocation5 + $0xc68] sm:$0xff] }
 0x259   :  { %5650 = vmatpush1.bf16.msra.mxu1 %v7313_v1  ;;  %v3175_v1 = vld [vmem:[#allocation5 + $0xb28] sm:$0xff] }
 0x25a   :  { %5800 = vmatpush1.bf16.msra.mxu0 %v7259_v7  ;;  %5651 = vmatprep.subr.bf16.mxu1 %v7322_v31  ;;  %v7323_v7 = vcombine.low %v3163_v25, %v3167_v26  ;;  %v7332_v31 = vcombine.high %v3171_v13, %v3175_v1  ;;  %v7331_v34 = vcombine.low %v3171_v13, %v3175_v1  ;;  %v3222_v13 = vld [vmem:[#allocation5 + $0xca0] sm:$0xff]  ;;  %v3219_v1 = vld [vmem:[#allocation5 + $0xc88] sm:$0xff] }
 0x25b   :  { %5801 = vmatprep.subr.bf16.mxu0 %v7268_v32  ;;  %v3179_v32 = vld [vmem:[#allocation5 + $0xb48] sm:$0xff] }
 0x25c   :  { %v7340_v5 = vcombine.high %v3179_v32, %v3183_v33 }
 0x25d   :  { %5652 = vmatpush1.bf16.msra.mxu1 %v7321_v36  ;;  %v3191_v36 = vld [vmem:[#allocation5 + $0xba8] sm:$0xff] }
 0x25e   :  { %5802 = vmatpush1.bf16.msra.mxu0 %v7267_v48  ;;  %5653 = vmatprep.subr.bf16.mxu1 %v7330_v51  ;;  %v7339_v48 = vcombine.low %v3179_v32, %v3183_v33  ;;  %v7348_v51 = vcombine.high %v3187_v35, %v3191_v36  ;;  %v7347_v30 = vcombine.low %v3187_v35, %v3191_v36  ;;  %v3230_v35 = vld [vmem:[#allocation5 + $0xce0] sm:$0xff]  ;;  %v3227_v36 = vld [vmem:[#allocation5 + $0xcc8] sm:$0xff] }
 0x25f   :  { %5803 = vmatprep.subr.bf16.mxu0 %v7276_v37  ;;  %v3195_v37 = vld [vmem:[#allocation5 + $0xbc8] sm:$0xff]  ;;  %v7371_v32 = vcombine.low %v3211_v18, %v3215_v20 }
 0x260   :  { %v7356_v39 = vcombine.high %v3195_v37, %v3199_v38 }
 0x261   :  { %5654 = vmatpush1.bf16.msra.mxu1 %v7329_v42  ;;  %v3207_v42 = vld [vmem:[#allocation5 + $0xc28] sm:$0xff] }
 0x262   :  { %5804 = vmatpush1.bf16.msra.mxu0 %v7275_v46  ;;  %5655 = vmatprep.subr.bf16.mxu1 %v7338_v47  ;;  %v7355_v46 = vcombine.low %v3195_v37, %v3199_v38  ;;  %v7364_v47 = vcombine.high %v3203_v41, %v3207_v42 }
 0x263   :  { %5805 = vmatprep.subr.bf16.mxu0 %v7284_v49 }
 0x265   :  { %5656 = vmatpush1.bf16.msra.mxu1 %v7337_v56  ;;  %v2784_v56 = vsub.s32 5, %v8494_v11 }
 0x266   :  { %5806 = vmatpush1.bf16.msra.mxu0 %v7283_v58  ;;  %5657 = vmatprep.subr.bf16.mxu1 %v7346_v59 }
 0x267   :  { %5807 = vmatprep.subr.bf16.mxu0 %v7292_v60 }
 0x269   :  { %5658 = vmatpush1.bf16.msra.mxu1 %v7345_v62 }
 0x26a   :  { %5808 = vmatpush1.bf16.msra.mxu0 %v7291_v15  ;;  %5659 = vmatprep.subr.bf16.mxu1 %v7354_v3  ;;  %v2785_v15 = vrot.slane %v8555_v17, %v2784_v56 }
 0x26b   :  { %5809 = vmatprep.subr.bf16.mxu0 %v7300_v19 }
 0x26d   :  { %5660 = vmatpush1.bf16.msra.mxu1 %v7353_v9 }
 0x26e   :  { %5810 = vmatpush1.bf16.msra.mxu0 %v7299_v12  ;;  %5670 = vmatprep.subr.bf16.mxu1 %v7362_v14  ;;  %v3210_v12 = vld [vmem:[#allocation5 + $0xc40] sm:$0xff] }
 0x26f   :  { %5811 = vmatprep.subr.bf16.mxu0 %v7308_v16  ;;  %v3214_v16 = vld [vmem:[#allocation5 + $0xc60] sm:$0xff] }
 0x270   :  { %v7370_v26 = vcombine.high %v3210_v12, %v3214_v16 }
 0x272   :  { %5812 = vmatpush1.bf16.msra.mxu0 %v7307_v21 }
 0x273   :  { %5813 = vmatprep.subr.bf16.mxu0 %v7316_v23  ;;  %v7363_v23 = vcombine.low %v3203_v41, %v3207_v42  ;;  %v3235_v41 = vld [vmem:[#allocation5 + $0xd08] sm:$0xff] }
 0x274   :  { %v3239_v42 = vld [vmem:[#allocation5 + $0xd28] sm:$0xff] }
 0x276   :  { %5814 = vmatpush1.bf16.msra.mxu0 %v7315_v29  ;;  %v7372_v29 = vcombine.high %v3211_v18, %v3215_v20 }
 0x277   :  { %5815 = vmatprep.subr.bf16.mxu0 %v7324_v0  ;;  %v3218_v0 = vld [vmem:[#allocation5 + $0xc80] sm:$0xff] }
 0x278   :  { %v7378_v33 = vcombine.high %v3218_v0, %v3222_v13  ;;  %v7377_v43 = vcombine.low %v3218_v0, %v3222_v13  ;;  %v3263_v0 = vld [vmem:[#allocation5 + $0xde8] sm:$0xff] }
 0x27a   :  { %5816 = vmatpush1.bf16.msra.mxu0 %v7323_v7  ;;  %v3223_v7 = vld [vmem:[#allocation5 + $0xca8] sm:$0xff] }
 0x27b   :  { %5817 = vmatprep.subr.bf16.mxu0 %v7332_v31  ;;  %v7369_v31 = vcombine.low %v3210_v12, %v3214_v16  ;;  %v7379_v44 = vcombine.low %v3219_v1, %v3223_v7 }
 0x27e   :  { %5818 = vmatpush1.bf16.msra.mxu0 %v7331_v34  ;;  %v7380_v34 = vcombine.high %v3219_v1, %v3223_v7 }
 0x27f   :  { %5819 = vmatprep.subr.bf16.mxu0 %v7340_v5  ;;  %v3226_v5 = vld [vmem:[#allocation5 + $0xcc0] sm:$0xff] }
 0x280   :  { %v7386_v37 = vcombine.high %v3226_v5, %v3230_v35 }
 0x282   :  { %5820 = vmatpush1.bf16.msra.mxu0 %v7339_v48  ;;  %v3231_v48 = vld [vmem:[#allocation5 + $0xce8] sm:$0xff] }
 0x283   :  { %5821 = vmatprep.subr.bf16.mxu0 %v7348_v51  ;;  %v8347_v51 = vmov 0   ;;  %v7388_v38 = vcombine.high %v3227_v36, %v3231_v48 }
 0x286   :  { %5822 = vmatpush1.bf16.msra.mxu0 %v7347_v30  ;;  %v3234_v30 = vld [vmem:[#allocation5 + $0xd00] sm:$0xff] }
 0x287   :  { %5823 = vmatprep.subr.bf16.mxu0 %v7356_v39  ;;  %v3238_v39 = vld [vmem:[#allocation5 + $0xd20] sm:$0xff] }
 0x28a   :  { %5824 = vmatpush1.bf16.msra.mxu0 %v7355_v46  ;;  %v7385_v46 = vcombine.low %v3226_v5, %v3230_v35  ;;  %v2825_v5 = vld [vmem:[#allocation5 + $0x38] sm:$0xff] }
 0x28b   :  { %5834 = vmatprep.subr.bf16.mxu0 %v7364_v47  ;;  %v7387_v47 = vcombine.low %v3227_v36, %v3231_v48 }
 0x29f   :  { %v2578_v49 = vpop.f32.mrb[4].mxu0 }
 0x2a0   :  { %v2716_v50 = vrot.slane %v2578_v49, 2  ;;  %v2580_v54 = vpop.f32.mrb[5].mxu0 }
 0x2a1   :  { %v2717_v55 = vrot.slane %v2580_v54, 2  ;;  %v2582_v58 = vpop.f32.mrb[6].mxu0 }
 0x2a2   :  { %v2730_v59 = vmax.f32 %v2578_v49, %v2716_v50  ;;  %v2583_v60 = vpop.f32.mrb[7].mxu0  ;;  %v7394_v50 = vcombine.high %v3234_v30, %v3238_v39  ;;  %v3246_v58 = vld [vmem:[#allocation5 + $0xd60] sm:$0xff] }
 0x2a3   :  { %v2731_v27 = vmax.f32 %v2580_v54, %v2717_v55  ;;  %v7396_v54 = vcombine.high %v3235_v41, %v3239_v42  ;;  %v3242_v55 = vld [vmem:[#allocation5 + $0xd40] sm:$0xff]  ;;  %v3247_v60 = vld [vmem:[#allocation5 + $0xd68] sm:$0xff] }
 0x2a4   :  { %v2744_v61 = vrot.slane %v2730_v59, 4 }
 0x2a5   :  { %v2745_v62 = vrot.slane %v2731_v27, 4 }
 0x2a6   :  { %v2758_v3 = vmax.f32 %v2730_v59, %v2744_v61  ;;  %v3243_v59 = vld [vmem:[#allocation5 + $0xd48] sm:$0xff]  ;;  %v7395_v61 = vcombine.low %v3235_v41, %v3239_v42 }
 0x2a7   :  { %v2759_v19 = vmax.f32 %v2731_v27, %v2745_v62  ;;  %v7393_v27 = vcombine.low %v3234_v30, %v3238_v39  ;;  %v7403_v12 = vcombine.low %v3243_v59, %v3247_v60  ;;  %v2833_v30 = vld [vmem:[#allocation5 + $0x78] sm:$0xff] }
 0x2a8   :  { %v2801_v6 = vadd.f32 %v2781_v10, %v2758_v3  ;;  %v2788_v10 = vsub.s32 6, %v8494_v11  ;;  %v7404_v3 = vcombine.high %v3243_v59, %v3247_v60 }
 0x2a9   :  { %v2802_v8 = vadd.f32 %v2785_v15, %v2759_v19  ;;  %v7402_v15 = vcombine.high %v3242_v55, %v3246_v58  ;;  %v3254_v19 = vld [vmem:[#allocation5 + $0xda0] sm:$0xff] }
 0x2aa   :  { %v2808_v9 = vmax.f32 %v2801_v6, 0.0  ;;  %v3251_v6 = vld [vmem:[#allocation5 + $0xd88] sm:$0xff] }
 0x2ab   :  { %v2809_v14 = vmax.f32 %v2802_v8, 0.0  ;;  %v3255_v8 = vld [vmem:[#allocation5 + $0xda8] sm:$0xff] }
 0x2ac   :  { %v8565_v25 = vpack.c.bf16 %v2808_v9, %v2808_v9  ;;  %v7401_v9 = vcombine.low %v3242_v55, %v3246_v58  ;;  %v7412_v20 = vcombine.high %v3251_v6, %v3255_v8  ;;  %v7411_v1 = vcombine.low %v3251_v6, %v3255_v8  ;;  %v2841_v55 = vld [vmem:[#allocation5 + $0xb8] sm:$0xff] }
 0x2ad   :  { %v8563_v21 = vpack.c.bf16 %v2809_v14, %v2809_v14  ;;  %v2789_v14 = vrot.slane %v8555_v17, %v2788_v10  ;;  %v2824_v17 = vld [vmem:[#allocation5 + $0x30] sm:$0xff] }
 0x2af   :  { %5661 = vmatprep.mubr.bf16.mxu1 %v8563_v21  ;;  %5825 = vmatprep.mubr.bf16.mxu0 %v8563_v21 }
 0x2b0   :  { %5662 = vmatmul.mubr.bf16.vlgmr.msra.gmra.mrb[16].mxu1 %v8565_v25  ;;  %5826 = vmatmul.mubr.bf16.vlgmr.msra.gmra.mrb[8].mxu0 %v8565_v25 }
 0x2b1   :  { %5671 = vmatpush1.bf16.msra.mxu1 %v7361_v53  ;;  %5835 = vmatpush1.bf16.msra.mxu0 %v7363_v23  ;;  %v2718_v53 = vrot.slane %v8548_v40, 2  ;;  %v3258_v23 = vld [vmem:[#allocation5 + $0xdc0] sm:$0xff] }
 0x2b2   :  { %5672 = vmatprep.subr.bf16.mxu1 %v7370_v26  ;;  %5836 = vmatprep.subr.bf16.mxu0 %v7372_v29  ;;  %v3262_v26 = vld [vmem:[#allocation5 + $0xde0] sm:$0xff]  ;;  %v3259_v29 = vld [vmem:[#allocation5 + $0xdc8] sm:$0xff] }
 0x2b3   :  { %5702 = vmatprep.mubr.bf16.mxu1 %v8347_v51  ;;  %5866 = vmatprep.mubr.bf16.mxu0 %v8347_v51  ;;  %v2732_v49 = vmax.f32 %v8548_v40, %v2718_v53  ;;  %v3250_v40 = vld [vmem:[#allocation5 + $0xd80] sm:$0xff]  ;;  %v7418_v7 = vcombine.high %v3258_v23, %v3262_v26  ;;  %v7417_v35 = vcombine.low %v3258_v23, %v3262_v26  ;;  %v2828_v53 = vld [vmem:[#allocation5 + $0x50] sm:$0xff] }
 0x2b4   :  { %v7410_v18 = vcombine.high %v3250_v40, %v3254_v19  ;;  %v7409_v13 = vcombine.low %v3250_v40, %v3254_v19  ;;  %v7419_v36 = vcombine.low %v3259_v29, %v3263_v0  ;;  %v2860_v26 = vld [vmem:[#allocation5 + $0x150] sm:$0xff] }
 0x2b5   :  { %5673 = vmatpush1.bf16.msra.mxu1 %v7369_v31  ;;  %5837 = vmatpush1.bf16.msra.mxu0 %v7371_v32  ;;  %v2746_v62 = vrot.slane %v2732_v49, 4  ;;  %v7420_v31 = vcombine.high %v3259_v29, %v3263_v0  ;;  %v2864_v29 = vld [vmem:[#allocation5 + $0x170] sm:$0xff]  ;;  %v2861_v0 = vld [vmem:[#allocation5 + $0x158] sm:$0xff] }
 0x2b6   :  { %5674 = vmatprep.subr.bf16.mxu1 %v7378_v33  ;;  %5838 = vmatprep.subr.bf16.mxu0 %v7380_v34  ;;  %v2820_v33 = vld [vmem:[#allocation5 + $0x10] sm:$0xff]  ;;  %v2821_v34 = vld [vmem:[#allocation5 + $0x18] sm:$0xff] }
 0x2b7   :  { %v2760_v16 = vmax.f32 %v2732_v49, %v2746_v62  ;;  %v6981_v39 = vcombine.low %v2820_v33, %v2824_v17  ;;  %v6983_v42 = vcombine.low %v2821_v34, %v2825_v5  ;;  %v2836_v49 = vld [vmem:[#allocation5 + $0x90] sm:$0xff] }
 0x2b8   :  { %v2848_v62 = vld [vmem:[#allocation5 + $0xf0] sm:$0xff] }
 0x2b9   :  { %5675 = vmatpush1.bf16.msra.mxu1 %v7377_v43  ;;  %5839 = vmatpush1.bf16.msra.mxu0 %v7379_v44  ;;  %v2803_v32 = vadd.f32 %v2789_v14, %v2760_v16  ;;  %v6982_v43 = vcombine.high %v2820_v33, %v2824_v17  ;;  %v6984_v44 = vcombine.high %v2821_v34, %v2825_v5  ;;  %v2857_v14 = vld [vmem:[#allocation5 + $0x138] sm:$0xff]  ;;  %v2868_v33 = vld [vmem:[#allocation5 + $0x190] sm:$0xff] }
 0x2ba   :  { %5676 = vmatprep.subr.bf16.mxu1 %v7386_v37  ;;  %5840 = vmatprep.subr.bf16.mxu0 %v7388_v38  ;;  %v2832_v37 = vld [vmem:[#allocation5 + $0x70] sm:$0xff]  ;;  %v2829_v38 = vld [vmem:[#allocation5 + $0x58] sm:$0xff] }
 0x2bb   :  { %v2810_v48 = vmax.f32 %v2803_v32, 0.0  ;;  %v6989_v58 = vcombine.low %v2828_v53, %v2832_v37  ;;  %v6991_v59 = vcombine.low %v2829_v38, %v2833_v30  ;;  %v2872_v17 = vld [vmem:[#allocation5 + $0x1b0] sm:$0xff]  ;;  %v2869_v34 = vld [vmem:[#allocation5 + $0x198] sm:$0xff] }
 0x2bc   :  { %v2873_v5 = vld [vmem:[#allocation5 + $0x1b8] sm:$0xff] }
 0x2bd   :  { %5677 = vmatpush1.bf16.msra.mxu1 %v7385_v46  ;;  %5841 = vmatpush1.bf16.msra.mxu0 %v7387_v47  ;;  %v8582_v41 = vpack.c.bf16 %v2810_v48, %v2810_v48  ;;  %v6990_v46 = vcombine.high %v2828_v53, %v2832_v37  ;;  %v6992_v47 = vcombine.high %v2829_v38, %v2833_v30  ;;  %v2880_v53 = vld [vmem:[#allocation5 + $0x1f0] sm:$0xff]  ;;  %v2877_v37 = vld [vmem:[#allocation5 + $0x1d8] sm:$0xff] }
 0x2be   :  { %5678 = vmatprep.subr.bf16.mxu1 %v7394_v50  ;;  %5842 = vmatprep.subr.bf16.mxu0 %v7396_v54  ;;  %v2840_v50 = vld [vmem:[#allocation5 + $0xb0] sm:$0xff]  ;;  %v2837_v54 = vld [vmem:[#allocation5 + $0x98] sm:$0xff]  ;;  %v7030_v48 = vcombine.high %v2868_v33, %v2872_v17  ;;  %v7029_v30 = vcombine.low %v2868_v33, %v2872_v17 }
 0x2bf   :  { %v6998_v60 = vcombine.high %v2836_v49, %v2840_v50  ;;  %v6997_v40 = vcombine.low %v2836_v49, %v2840_v50  ;;  %v6999_v19 = vcombine.low %v2837_v54, %v2841_v55  ;;  %v2881_v38 = vld [vmem:[#allocation5 + $0x1f8] sm:$0xff]  ;;  %v2888_v49 = vld [vmem:[#allocation5 + $0x230] sm:$0xff] }
 0x2c0   :  { %v2885_v50 = vld [vmem:[#allocation5 + $0x218] sm:$0xff]  ;;  %v2920_v33 = vld [vmem:[#allocation5 + $0x330] sm:$0xff] }
 0x2c1   :  { %5679 = vmatpush1.bf16.msra.mxu1 %v7393_v27  ;;  %5843 = vmatpush1.bf16.msra.mxu0 %v7395_v61  ;;  %v7000_v27 = vcombine.high %v2837_v54, %v2841_v55  ;;  %v2844_v61 = vld [vmem:[#allocation5 + $0xd0] sm:$0xff]  ;;  %v2889_v54 = vld [vmem:[#allocation5 + $0x238] sm:$0xff] }
 0x2c2   :  { %5680 = vmatprep.subr.bf16.mxu1 %v7402_v15  ;;  %5844 = vmatprep.subr.bf16.mxu0 %v7404_v3  ;;  %v2845_v15 = vld [vmem:[#allocation5 + $0xd8] sm:$0xff]  ;;  %v7006_v6 = vcombine.high %v2844_v61, %v2848_v62  ;;  %v7005_v16 = vcombine.low %v2844_v61, %v2848_v62  ;;  %v2896_v61 = vld [vmem:[#allocation5 + $0x270] sm:$0xff] }
 0x2c3   :  { %v2849_v3 = vld [vmem:[#allocation5 + $0xf8] sm:$0xff] }
 0x2c4   :  { %v7008_v8 = vcombine.high %v2845_v15, %v2849_v3  ;;  %v2893_v62 = vld [vmem:[#allocation5 + $0x258] sm:$0xff] }
 0x2c5   :  { %5681 = vmatpush1.bf16.msra.mxu1 %v7401_v9  ;;  %5845 = vmatpush1.bf16.msra.mxu0 %v7403_v12  ;;  %v2852_v9 = vld [vmem:[#allocation5 + $0x110] sm:$0xff]  ;;  %v2917_v17 = vld [vmem:[#allocation5 + $0x318] sm:$0xff] }
 0x2c6   :  { %5682 = vmatprep.subr.bf16.mxu1 %v7410_v18  ;;  %5846 = vmatprep.subr.bf16.mxu0 %v7412_v20  ;;  %v2856_v12 = vld [vmem:[#allocation5 + $0x130] sm:$0xff]  ;;  %v7007_v18 = vcombine.low %v2845_v15, %v2849_v3  ;;  %v2897_v15 = vld [vmem:[#allocation5 + $0x278] sm:$0xff] }
 0x2c7   :  { %v7014_v20 = vcombine.high %v2852_v9, %v2856_v12 }
 0x2c9   :  { %5683 = vmatpush1.bf16.msra.mxu1 %v7409_v13  ;;  %5847 = vmatpush1.bf16.msra.mxu0 %v7411_v1  ;;  %v2865_v13 = vld [vmem:[#allocation5 + $0x178] sm:$0xff]  ;;  %v7013_v1 = vcombine.low %v2852_v9, %v2856_v12  ;;  %v2904_v9 = vld [vmem:[#allocation5 + $0x2b0] sm:$0xff] }
 0x2ca   :  { %5684 = vmatprep.subr.bf16.mxu1 %v7418_v7  ;;  %5848 = vmatprep.subr.bf16.mxu0 %v7420_v31  ;;  %v7022_v31 = vcombine.high %v2860_v26, %v2864_v29  ;;  %v7024_v32 = vcombine.high %v2861_v0, %v2865_v13  ;;  %v2901_v12 = vld [vmem:[#allocation5 + $0x298] sm:$0xff] }
 0x2cd   :  { %5685 = vmatpush1.bf16.msra.mxu1 %v7417_v35  ;;  %5849 = vmatpush1.bf16.msra.mxu0 %v7419_v36  ;;  %v7021_v35 = vcombine.low %v2860_v26, %v2864_v29  ;;  %v7023_v36 = vcombine.low %v2861_v0, %v2865_v13  ;;  %v2912_v26 = vld [vmem:[#allocation5 + $0x2f0] sm:$0xff]  ;;  %v2909_v29 = vld [vmem:[#allocation5 + $0x2d8] sm:$0xff] }
 0x2ce   :  { %5875 = vmatprep.subr.bf16.mxu1 %v6982_v43  ;;  %6039 = vmatprep.subr.bf16.mxu0 %v6984_v44  ;;  %v7032_v43 = vcombine.high %v2869_v34, %v2873_v5  ;;  %v2876_v44 = vld [vmem:[#allocation5 + $0x1d0] sm:$0xff]  ;;  %v2913_v0 = vld [vmem:[#allocation5 + $0x2f8] sm:$0xff] }
 0x2cf   :  { %v7037_v55 = vcombine.low %v2876_v44, %v2880_v53 }
 0x2d0   :  { %5703 = vmatmul.mubr.bf16.vlgmr.msra.gmra.mrb[16].mxu1 %v8582_v41  ;;  %5867 = vmatmul.mubr.bf16.vlgmr.msra.gmra.mrb[8].mxu0 %v8582_v41 }
 0x2d1   :  { %5876 = vmatpush1.bf16.msra.mxu1 %v6981_v39  ;;  %5907 = vmatprep.mubr.bf16.mxu1 %v8512_v63  ;;  %v7031_v39 = vcombine.low %v2869_v34, %v2873_v5  ;;  %v2921_v34 = vld [vmem:[#allocation5 + $0x338] sm:$0xff] }
 0x2d2   :  { %6040 = vmatpush1.bf16.msra.mxu0 %v6983_v42  ;;  %6071 = vmatprep.mubr.bf16.mxu0 %v8512_v63  ;;  %v2853_v63 = vld [vmem:[#allocation5 + $0x118] sm:$0xff]  ;;  %v7038_v42 = vcombine.high %v2876_v44, %v2880_v53  ;;  %v2928_v44 = vld [vmem:[#allocation5 + $0x370] sm:$0xff] }
 0x2d3   :  { %5877 = vmatprep.subr.bf16.mxu1 %v6990_v46  ;;  %6041 = vmatprep.subr.bf16.mxu0 %v6992_v47  ;;  %v7016_v23 = vcombine.high %v2853_v63, %v2857_v14  ;;  %v7015_v7 = vcombine.low %v2853_v63, %v2857_v14  ;;  %v7040_v46 = vcombine.high %v2877_v37, %v2881_v38  ;;  %v2884_v47 = vld [vmem:[#allocation5 + $0x210] sm:$0xff]  ;;  %v2905_v63 = vld [vmem:[#allocation5 + $0x2b8] sm:$0xff] }
 0x2d4   :  { %v7045_v3 = vcombine.low %v2884_v47, %v2888_v49  ;;  %v2925_v53 = vld [vmem:[#allocation5 + $0x358] sm:$0xff] }
 0x2d5   :  { %5878 = vmatpush1.bf16.msra.mxu1 %v6989_v58  ;;  %v7039_v58 = vcombine.low %v2877_v37, %v2881_v38  ;;  %v2929_v37 = vld [vmem:[#allocation5 + $0x378] sm:$0xff] }
 0x2d6   :  { %6042 = vmatpush1.bf16.msra.mxu0 %v6991_v59  ;;  %5879 = vmatprep.subr.bf16.mxu1 %v6998_v60  ;;  %v7046_v59 = vcombine.high %v2884_v47, %v2888_v49  ;;  %v7048_v60 = vcombine.high %v2885_v50, %v2889_v54  ;;  %v2936_v47 = vld [vmem:[#allocation5 + $0x3b0] sm:$0xff]  ;;  %v2933_v49 = vld [vmem:[#allocation5 + $0x398] sm:$0xff] }
 0x2d7   :  { %6043 = vmatprep.subr.bf16.mxu0 %v7000_v27  ;;  %v2892_v27 = vld [vmem:[#allocation5 + $0x250] sm:$0xff] }
 0x2d8   :  { %v7053_v14 = vcombine.low %v2892_v27, %v2896_v61 }
 0x2d9   :  { %5880 = vmatpush1.bf16.msra.mxu1 %v6997_v40  ;;  %v7047_v40 = vcombine.low %v2885_v50, %v2889_v54  ;;  %v2937_v50 = vld [vmem:[#allocation5 + $0x3b8] sm:$0xff] }
 0x2da   :  { %6044 = vmatpush1.bf16.msra.mxu0 %v6999_v19  ;;  %5881 = vmatprep.subr.bf16.mxu1 %v7006_v6  ;;  %v7054_v19 = vcombine.high %v2892_v27, %v2896_v61  ;;  %v7056_v6 = vcombine.high %v2893_v62, %v2897_v15  ;;  %v2944_v27 = vld [vmem:[#allocation5 + $0x3f0] sm:$0xff]  ;;  %v2941_v61 = vld [vmem:[#allocation5 + $0x3d8] sm:$0xff] }
 0x2db   :  { %6045 = vmatprep.subr.bf16.mxu0 %v7008_v8  ;;  %v2900_v8 = vld [vmem:[#allocation5 + $0x290] sm:$0xff] }
 0x2dc   :  { %v7061_v13 = vcombine.low %v2900_v8, %v2904_v9 }
 0x2dd   :  { %5882 = vmatpush1.bf16.msra.mxu1 %v7005_v16  ;;  %v7055_v16 = vcombine.low %v2893_v62, %v2897_v15  ;;  %v2945_v62 = vld [vmem:[#allocation5 + $0x3f8] sm:$0xff] }
 0x2de   :  { %6046 = vmatpush1.bf16.msra.mxu0 %v7007_v18  ;;  %5883 = vmatprep.subr.bf16.mxu1 %v7014_v20  ;;  %v7062_v18 = vcombine.high %v2900_v8, %v2904_v9  ;;  %v7064_v20 = vcombine.high %v2901_v12, %v2905_v63  ;;  %v2952_v8 = vld [vmem:[#allocation5 + $0x430] sm:$0xff]  ;;  %v2949_v9 = vld [vmem:[#allocation5 + $0x418] sm:$0xff] }
 0x2df   :  { %6047 = vmatprep.subr.bf16.mxu0 %v7016_v23  ;;  %v2908_v23 = vld [vmem:[#allocation5 + $0x2d0] sm:$0xff] }
 0x2e0   :  { %v7069_v5 = vcombine.low %v2908_v23, %v2912_v26 }
 0x2e1   :  { %5884 = vmatpush1.bf16.msra.mxu1 %v7013_v1  ;;  %v7063_v1 = vcombine.low %v2901_v12, %v2905_v63  ;;  %v2953_v12 = vld [vmem:[#allocation5 + $0x438] sm:$0xff] }
 0x2e2   :  { %6048 = vmatpush1.bf16.msra.mxu0 %v7015_v7  ;;  %5885 = vmatprep.subr.bf16.mxu1 %v7022_v31  ;;  %v7070_v7 = vcombine.high %v2908_v23, %v2912_v26  ;;  %v7072_v31 = vcombine.high %v2909_v29, %v2913_v0  ;;  %v2960_v23 = vld [vmem:[#allocation5 + $0x470] sm:$0xff] }
 0x2e3   :  { %6049 = vmatprep.subr.bf16.mxu0 %v7024_v32  ;;  %v2916_v32 = vld [vmem:[#allocation5 + $0x310] sm:$0xff] }
 0x2e4   :  { %v7077_v38 = vcombine.low %v2916_v32, %v2920_v33 }
 0x2e5   :  { %5886 = vmatpush1.bf16.msra.mxu1 %v7021_v35  ;;  %v7071_v35 = vcombine.low %v2909_v29, %v2913_v0  ;;  %v2957_v29 = vld [vmem:[#allocation5 + $0x458] sm:$0xff] }
 0x2e6   :  { %6050 = vmatpush1.bf16.msra.mxu0 %v7023_v36  ;;  %5887 = vmatprep.subr.bf16.mxu1 %v7030_v48  ;;  %v7078_v36 = vcombine.high %v2916_v32, %v2920_v33  ;;  %v7080_v48 = vcombine.high %v2917_v17, %v2921_v34  ;;  %v2961_v0 = vld [vmem:[#allocation5 + $0x478] sm:$0xff] }
 0x2e7   :  { %6051 = vmatprep.subr.bf16.mxu0 %v7032_v43  ;;  %v2924_v43 = vld [vmem:[#allocation5 + $0x350] sm:$0xff]  ;;  %v7120_v32 = vcombine.high %v2957_v29, %v2961_v0  ;;  %v2965_v33 = vld [vmem:[#allocation5 + $0x498] sm:$0xff] }
 0x2e8   :  { %v7085_v54 = vcombine.low %v2924_v43, %v2928_v44 }
 0x2e9   :  { %5888 = vmatpush1.bf16.msra.mxu1 %v7029_v30  ;;  %v7079_v30 = vcombine.low %v2917_v17, %v2921_v34  ;;  %v2969_v17 = vld [vmem:[#allocation5 + $0x4b8] sm:$0xff] }
 0x2ea   :  { %6052 = vmatpush1.bf16.msra.mxu0 %v7031_v39  ;;  %5889 = vmatprep.subr.bf16.mxu1 %v7038_v42  ;;  %v7086_v39 = vcombine.high %v2924_v43, %v2928_v44  ;;  %v7088_v42 = vcombine.high %v2925_v53, %v2929_v37  ;;  %v2976_v43 = vld [vmem:[#allocation5 + $0x4f0] sm:$0xff]  ;;  %v2973_v44 = vld [vmem:[#allocation5 + $0x4d8] sm:$0xff] }
 0x2eb   :  { %6053 = vmatprep.subr.bf16.mxu0 %v7040_v46  ;;  %v2932_v46 = vld [vmem:[#allocation5 + $0x390] sm:$0xff] }
 0x2ec   :  { %v7093_v15 = vcombine.low %v2932_v46, %v2936_v47 }
 0x2ed   :  { %5890 = vmatpush1.bf16.msra.mxu1 %v7037_v55  ;;  %v7087_v55 = vcombine.low %v2925_v53, %v2929_v37  ;;  %v2977_v53 = vld [vmem:[#allocation5 + $0x4f8] sm:$0xff] }
 0x2ee   :  { %6054 = vmatpush1.bf16.msra.mxu0 %v7039_v58  ;;  %5891 = vmatprep.subr.bf16.mxu1 %v7046_v59  ;;  %v7094_v58 = vcombine.high %v2932_v46, %v2936_v47  ;;  %v7096_v59 = vcombine.high %v2933_v49, %v2937_v50  ;;  %v2981_v46 = vld [vmem:[#allocation5 + $0x518] sm:$0xff] }
 0x2ef   :  { %6055 = vmatprep.subr.bf16.mxu0 %v7048_v60  ;;  %v2940_v60 = vld [vmem:[#allocation5 + $0x3d0] sm:$0xff]  ;;  %v2985_v47 = vld [vmem:[#allocation5 + $0x538] sm:$0xff] }
 0x2f0   :  { %v7101_v63 = vcombine.low %v2940_v60, %v2944_v27 }
 0x2f1   :  { %5892 = vmatpush1.bf16.msra.mxu1 %v7045_v3  ;;  %v7095_v3 = vcombine.low %v2933_v49, %v2937_v50  ;;  %v7135_v49 = vcombine.low %v2973_v44, %v2977_v53 }
 0x2f2   :  { %6056 = vmatpush1.bf16.msra.mxu0 %v7047_v40  ;;  %5893 = vmatprep.subr.bf16.mxu1 %v7054_v19  ;;  %v7102_v40 = vcombine.high %v2940_v60, %v2944_v27  ;;  %v7104_v19 = vcombine.high %v2941_v61, %v2945_v62  ;;  %v2993_v60 = vld [vmem:[#allocation5 + $0x578] sm:$0xff] }
 0x2f3   :  { %6057 = vmatprep.subr.bf16.mxu0 %v7056_v6  ;;  %v2948_v6 = vld [vmem:[#allocation5 + $0x410] sm:$0xff] }
 0x2f4   :  { %v7109_v26 = vcombine.low %v2948_v6, %v2952_v8 }
 0x2f5   :  { %5894 = vmatpush1.bf16.msra.mxu1 %v7053_v14  ;;  %v7103_v14 = vcombine.low %v2941_v61, %v2945_v62  ;;  %v7143_v61 = vcombine.low %v2981_v46, %v2985_v47 }
 0x2f6   :  { %6058 = vmatpush1.bf16.msra.mxu0 %v7055_v16  ;;  %5895 = vmatprep.subr.bf16.mxu1 %v7062_v18  ;;  %v7110_v16 = vcombine.high %v2948_v6, %v2952_v8  ;;  %v7112_v18 = vcombine.high %v2949_v9, %v2953_v12  ;;  %v3001_v6 = vld [vmem:[#allocation5 + $0x5b8] sm:$0xff] }
 0x2f7   :  { %6059 = vmatprep.subr.bf16.mxu0 %v7064_v20  ;;  %v2956_v20 = vld [vmem:[#allocation5 + $0x450] sm:$0xff] }
 0x2f8   :  { %v7117_v34 = vcombine.low %v2956_v20, %v2960_v23 }
 0x2f9   :  { %5896 = vmatpush1.bf16.msra.mxu1 %v7061_v13  ;;  %v7111_v13 = vcombine.low %v2949_v9, %v2953_v12 }
 0x2fa   :  { %6060 = vmatpush1.bf16.msra.mxu0 %v7063_v1  ;;  %5897 = vmatprep.subr.bf16.mxu1 %v7070_v7  ;;  %v7118_v1 = vcombine.high %v2956_v20, %v2960_v23  ;;  %v2964_v7 = vld [vmem:[#allocation5 + $0x490] sm:$0xff]  ;;  %v3009_v20 = vld [vmem:[#allocation5 + $0x5f8] sm:$0xff] }
 0x2fb   :  { %6061 = vmatprep.subr.bf16.mxu0 %v7072_v31  ;;  %v2968_v31 = vld [vmem:[#allocation5 + $0x4b0] sm:$0xff] }
 0x2fc   :  { %v7125_v37 = vcombine.low %v2964_v7, %v2968_v31 }
 0x2fd   :  { %5898 = vmatpush1.bf16.msra.mxu1 %v7069_v5  ;;  %v7119_v5 = vcombine.low %v2957_v29, %v2961_v0 }
 0x2fe   :  { %6062 = vmatpush1.bf16.msra.mxu0 %v7071_v35  ;;  %5899 = vmatprep.subr.bf16.mxu1 %v7078_v36  ;;  %v7126_v35 = vcombine.high %v2964_v7, %v2968_v31  ;;  %v7128_v36 = vcombine.high %v2965_v33, %v2969_v17  ;;  %v3013_v7 = vld [vmem:[#allocation5 + $0x618] sm:$0xff] }
 0x2ff   :  { %6063 = vmatprep.subr.bf16.mxu0 %v7080_v48  ;;  %v2972_v48 = vld [vmem:[#allocation5 + $0x4d0] sm:$0xff]  ;;  %v3017_v31 = vld [vmem:[#allocation5 + $0x638] sm:$0xff] }
 0x301   :  { %5900 = vmatpush1.bf16.msra.mxu1 %v7077_v38  ;;  %v7134_v38 = vcombine.high %v2972_v48, %v2976_v43 }
 0x302   :  { %6064 = vmatpush1.bf16.msra.mxu0 %v7079_v30  ;;  %5901 = vmatprep.subr.bf16.mxu1 %v7086_v39  ;;  %v7136_v30 = vcombine.high %v2973_v44, %v2977_v53  ;;  %v2980_v39 = vld [vmem:[#allocation5 + $0x510] sm:$0xff]  ;;  %v7175_v44 = vcombine.low %v3013_v7, %v3017_v31 }
 0x303   :  { %6065 = vmatprep.subr.bf16.mxu0 %v7088_v42  ;;  %v2984_v42 = vld [vmem:[#allocation5 + $0x530] sm:$0xff] }
 0x304   :  { %v7142_v50 = vcombine.high %v2980_v39, %v2984_v42  ;;  %v7141_v27 = vcombine.low %v2980_v39, %v2984_v42  ;;  %v3033_v39 = vld [vmem:[#allocation5 + $0x6b8] sm:$0xff] }
 0x305   :  { %5902 = vmatpush1.bf16.msra.mxu1 %v7085_v54  ;;  %v7144_v54 = vcombine.high %v2981_v46, %v2985_v47 }
 0x306   :  { %6066 = vmatpush1.bf16.msra.mxu0 %v7087_v55  ;;  %5903 = vmatprep.subr.bf16.mxu1 %v7094_v58  ;;  %v2988_v55 = vld [vmem:[#allocation5 + $0x550] sm:$0xff] }
 0x307   :  { %6067 = vmatprep.subr.bf16.mxu0 %v7096_v59  ;;  %v2992_v58 = vld [vmem:[#allocation5 + $0x570] sm:$0xff]  ;;  %v2989_v59 = vld [vmem:[#allocation5 + $0x558] sm:$0xff] }
 0x308   :  { %v7150_v62 = vcombine.high %v2988_v55, %v2992_v58  ;;  %v7149_v8 = vcombine.low %v2988_v55, %v2992_v58  ;;  %v7151_v9 = vcombine.low %v2989_v59, %v2993_v60  ;;  %v3041_v55 = vld [vmem:[#allocation5 + $0x6f8] sm:$0xff] }
 0x309   :  { %5904 = vmatpush1.bf16.msra.mxu1 %v7093_v15  ;;  %v7152_v15 = vcombine.high %v2989_v59, %v2993_v60 }
 0x30a   :  { %6068 = vmatpush1.bf16.msra.mxu0 %v7095_v3  ;;  %5905 = vmatprep.subr.bf16.mxu1 %v7102_v40  ;;  %v2996_v3 = vld [vmem:[#allocation5 + $0x590] sm:$0xff] }
 0x30b   :  { %6069 = vmatprep.subr.bf16.mxu0 %v7104_v19  ;;  %v3000_v40 = vld [vmem:[#allocation5 + $0x5b0] sm:$0xff]  ;;  %v2997_v19 = vld [vmem:[#allocation5 + $0x598] sm:$0xff] }
 0x30c   :  { %v7158_v12 = vcombine.high %v2996_v3, %v3000_v40  ;;  %v7157_v23 = vcombine.low %v2996_v3, %v3000_v40  ;;  %v3049_v3 = vld [vmem:[#allocation5 + $0x738] sm:$0xff] }
 0x30d   :  { %5906 = vmatpush1.bf16.msra.mxu1 %v7101_v63  ;;  %v7160_v63 = vcombine.high %v2997_v19, %v3001_v6 }
 0x30e   :  { %6070 = vmatpush1.bf16.msra.mxu0 %v7103_v14  ;;  %5916 = vmatprep.subr.bf16.mxu1 %v7110_v16  ;;  %v3004_v14 = vld [vmem:[#allocation5 + $0x5d0] sm:$0xff] }
 0x30f   :  { %6080 = vmatprep.subr.bf16.mxu0 %v7112_v18  ;;  %v3008_v16 = vld [vmem:[#allocation5 + $0x5f0] sm:$0xff]  ;;  %v3005_v18 = vld [vmem:[#allocation5 + $0x5d8] sm:$0xff] }
 0x310   :  { %5908 = vmatmul.mubr.bf16.vlgmr.msra.gmra.mrb[20].mxu1 %v8514_v2  ;;  %v7166_v29 = vcombine.high %v3004_v14, %v3008_v16  ;;  %v7168_v0 = vcombine.high %v3005_v18, %v3009_v20 }
 0x311   :  { %6072 = vmatmul.mubr.bf16.vlgmr.msra.gmra.mrb[12].mxu0 %v8514_v2  ;;  %5917 = vmatpush1.bf16.msra.mxu1 %v7109_v26  ;;  %v7127_v2 = vcombine.low %v2965_v33, %v2969_v17  ;;  %v7159_v26 = vcombine.low %v2997_v19, %v3001_v6  ;;  %v7167_v33 = vcombine.low %v3005_v18, %v3009_v20 }
 0x312   :  { %5948 = vmatprep.mubr.bf16.mxu1 %v8516_v4  ;;  %6081 = vmatpush1.bf16.msra.mxu0 %v7111_v13  ;;  %v3012_v13 = vld [vmem:[#allocation5 + $0x610] sm:$0xff] }
 0x313   :  { %6112 = vmatprep.mubr.bf16.mxu0 %v8516_v4  ;;  %5918 = vmatprep.subr.bf16.mxu1 %v7118_v1  ;;  %v7133_v4 = vcombine.low %v2972_v48, %v2976_v43  ;;  %v3016_v1 = vld [vmem:[#allocation5 + $0x630] sm:$0xff]  ;;  %v3025_v48 = vld [vmem:[#allocation5 + $0x678] sm:$0xff] }
 0x314   :  { %6082 = vmatprep.subr.bf16.mxu0 %v7120_v32  ;;  %v7165_v32 = vcombine.low %v3004_v14, %v3008_v16  ;;  %v7174_v17 = vcombine.high %v3012_v13, %v3016_v1  ;;  %v7173_v43 = vcombine.low %v3012_v13, %v3016_v1  ;;  %v3057_v14 = vld [vmem:[#allocation5 + $0x778] sm:$0xff] }
 0x315   :  { %5919 = vmatpush1.bf16.msra.mxu1 %v7117_v34  ;;  %v7176_v34 = vcombine.high %v3013_v7, %v3017_v31  ;;  %v3065_v13 = vld [vmem:[#allocation5 + $0x7b8] sm:$0xff] }
 0x316   :  { %6083 = vmatpush1.bf16.msra.mxu0 %v7119_v5  ;;  %5920 = vmatprep.subr.bf16.mxu1 %v7126_v35  ;;  %v3020_v5 = vld [vmem:[#allocation5 + $0x650] sm:$0xff] }
 0x317   :  { %6084 = vmatprep.subr.bf16.mxu0 %v7128_v36  ;;  %v3024_v35 = vld [vmem:[#allocation5 + $0x670] sm:$0xff]  ;;  %v3021_v36 = vld [vmem:[#allocation5 + $0x658] sm:$0xff] }
 0x318   :  { %v7182_v53 = vcombine.high %v3020_v5, %v3024_v35  ;;  %v7181_v42 = vcombine.low %v3020_v5, %v3024_v35  ;;  %v7183_v46 = vcombine.low %v3021_v36, %v3025_v48  ;;  %v3073_v5 = vld [vmem:[#allocation5 + $0x7f8] sm:$0xff] }
 0x319   :  { %5921 = vmatpush1.bf16.msra.mxu1 %v7125_v37  ;;  %v7184_v37 = vcombine.high %v3021_v36, %v3025_v48 }
 0x31a   :  { %6085 = vmatpush1.bf16.msra.mxu0 %v7127_v2  ;;  %5922 = vmatprep.subr.bf16.mxu1 %v7134_v38  ;;  %v3028_v2 = vld [vmem:[#allocation5 + $0x690] sm:$0xff] }
 0x31b   :  { %6086 = vmatprep.subr.bf16.mxu0 %v7136_v30  ;;  %v3032_v38 = vld [vmem:[#allocation5 + $0x6b0] sm:$0xff]  ;;  %v3029_v30 = vld [vmem:[#allocation5 + $0x698] sm:$0xff] }
 0x31c   :  { %v7190_v47 = vcombine.high %v3028_v2, %v3032_v38  ;;  %v7189_v58 = vcombine.low %v3028_v2, %v3032_v38  ;;  %v7191_v59 = vcombine.low %v3029_v30, %v3033_v39  ;;  %v3081_v2 = vld [vmem:[#allocation5 + $0x838] sm:$0xff] }
 0x31d   :  { %5923 = vmatpush1.bf16.msra.mxu1 %v7133_v4  ;;  %v7192_v4 = vcombine.high %v3029_v30, %v3033_v39 }
 0x31e   :  { %6087 = vmatpush1.bf16.msra.mxu0 %v7135_v49  ;;  %5924 = vmatprep.subr.bf16.mxu1 %v7142_v50  ;;  %v3036_v49 = vld [vmem:[#allocation5 + $0x6d0] sm:$0xff] }
 0x31f   :  { %6088 = vmatprep.subr.bf16.mxu0 %v7144_v54  ;;  %v3040_v50 = vld [vmem:[#allocation5 + $0x6f0] sm:$0xff]  ;;  %v3037_v54 = vld [vmem:[#allocation5 + $0x6d8] sm:$0xff] }
 0x320   :  { %v7198_v60 = vcombine.high %v3036_v49, %v3040_v50  ;;  %v7197_v40 = vcombine.low %v3036_v49, %v3040_v50  ;;  %v7199_v19 = vcombine.low %v3037_v54, %v3041_v55  ;;  %v3085_v49 = vld [vmem:[#allocation5 + $0x858] sm:$0xff] }
 0x321   :  { %5925 = vmatpush1.bf16.msra.mxu1 %v7141_v27  ;;  %v7200_v27 = vcombine.high %v3037_v54, %v3041_v55  ;;  %v3089_v50 = vld [vmem:[#allocation5 + $0x878] sm:$0xff] }
 0x322   :  { %6089 = vmatpush1.bf16.msra.mxu0 %v7143_v61  ;;  %5926 = vmatprep.subr.bf16.mxu1 %v7150_v62  ;;  %v3044_v61 = vld [vmem:[#allocation5 + $0x710] sm:$0xff] }
 0x323   :  { %6090 = vmatprep.subr.bf16.mxu0 %v7152_v15  ;;  %v3048_v62 = vld [vmem:[#allocation5 + $0x730] sm:$0xff]  ;;  %v3045_v15 = vld [vmem:[#allocation5 + $0x718] sm:$0xff] }
 0x324   :  { %v7206_v6 = vcombine.high %v3044_v61, %v3048_v62  ;;  %v7205_v16 = vcombine.low %v3044_v61, %v3048_v62  ;;  %v7207_v18 = vcombine.low %v3045_v15, %v3049_v3  ;;  %v3097_v61 = vld [vmem:[#allocation5 + $0x8b8] sm:$0xff] }
 0x325   :  { %5927 = vmatpush1.bf16.msra.mxu1 %v7149_v8  ;;  %v7208_v8 = vcombine.high %v3045_v15, %v3049_v3  ;;  %v7247_v15 = vcombine.low %v3085_v49, %v3089_v50 }
 0x326   :  { %6091 = vmatpush1.bf16.msra.mxu0 %v7151_v9  ;;  %5928 = vmatprep.subr.bf16.mxu1 %v7158_v12  ;;  %v3052_v9 = vld [vmem:[#allocation5 + $0x750] sm:$0xff] }
 0x327   :  { %6092 = vmatprep.subr.bf16.mxu0 %v7160_v63  ;;  %v3056_v12 = vld [vmem:[#allocation5 + $0x770] sm:$0xff]  ;;  %v3053_v63 = vld [vmem:[#allocation5 + $0x758] sm:$0xff] }
 0x328   :  { %v7214_v20 = vcombine.high %v3052_v9, %v3056_v12  ;;  %v7213_v1 = vcombine.low %v3052_v9, %v3056_v12  ;;  %v7215_v7 = vcombine.low %v3053_v63, %v3057_v14  ;;  %v3105_v9 = vld [vmem:[#allocation5 + $0x8f8] sm:$0xff] }
 0x329   :  { %5929 = vmatpush1.bf16.msra.mxu1 %v7157_v23  ;;  %v7216_v23 = vcombine.high %v3053_v63, %v3057_v14 }
 0x32a   :  { %6093 = vmatpush1.bf16.msra.mxu0 %v7159_v26  ;;  %5930 = vmatprep.subr.bf16.mxu1 %v7166_v29  ;;  %v3060_v26 = vld [vmem:[#allocation5 + $0x790] sm:$0xff] }
 0x32b   :  { %6094 = vmatprep.subr.bf16.mxu0 %v7168_v0  ;;  %v3064_v29 = vld [vmem:[#allocation5 + $0x7b0] sm:$0xff]  ;;  %v3061_v0 = vld [vmem:[#allocation5 + $0x798] sm:$0xff] }
 0x32c   :  { %v7222_v31 = vcombine.high %v3060_v26, %v3064_v29  ;;  %v7221_v35 = vcombine.low %v3060_v26, %v3064_v29  ;;  %v7223_v36 = vcombine.low %v3061_v0, %v3065_v13 }
 0x32d   :  { %5931 = vmatpush1.bf16.msra.mxu1 %v7165_v32  ;;  %v7224_v32 = vcombine.high %v3061_v0, %v3065_v13  ;;  %v3116_v13 = vld [vmem:[#allocation5 + $0x950] sm:$0xff] }
 0x32e   :  { %6095 = vmatpush1.bf16.msra.mxu0 %v7167_v33  ;;  %5932 = vmatprep.subr.bf16.mxu1 %v7174_v17  ;;  %v3068_v33 = vld [vmem:[#allocation5 + $0x7d0] sm:$0xff] }
 0x32f   :  { %6096 = vmatprep.subr.bf16.mxu0 %v7176_v34  ;;  %v3072_v17 = vld [vmem:[#allocation5 + $0x7f0] sm:$0xff]  ;;  %v3069_v34 = vld [vmem:[#allocation5 + $0x7d8] sm:$0xff] }
 0x330   :  { %v7230_v48 = vcombine.high %v3068_v33, %v3072_v17  ;;  %v7229_v38 = vcombine.low %v3068_v33, %v3072_v17  ;;  %v7231_v30 = vcombine.low %v3069_v34, %v3073_v5 }
 0x331   :  { %5933 = vmatpush1.bf16.msra.mxu1 %v7173_v43  ;;  %v7232_v43 = vcombine.high %v3069_v34, %v3073_v5  ;;  %v3124_v5 = vld [vmem:[#allocation5 + $0x990] sm:$0xff] }
 0x332   :  { %6097 = vmatpush1.bf16.msra.mxu0 %v7175_v44  ;;  %5934 = vmatprep.subr.bf16.mxu1 %v7182_v53  ;;  %v3076_v44 = vld [vmem:[#allocation5 + $0x810] sm:$0xff] }
 0x333   :  { %6098 = vmatprep.subr.bf16.mxu0 %v7184_v37  ;;  %v3080_v53 = vld [vmem:[#allocation5 + $0x830] sm:$0xff]  ;;  %v3077_v37 = vld [vmem:[#allocation5 + $0x818] sm:$0xff] }
 0x334   :  { %v7238_v39 = vcombine.high %v3076_v44, %v3080_v53  ;;  %v7239_v54 = vcombine.low %v3077_v37, %v3081_v2 }
 0x335   :  { %5935 = vmatpush1.bf16.msra.mxu1 %v7181_v42  ;;  %v7240_v42 = vcombine.high %v3077_v37, %v3081_v2  ;;  %v3132_v2 = vld [vmem:[#allocation5 + $0x9d0] sm:$0xff] }
 0x336   :  { %6099 = vmatpush1.bf16.msra.mxu0 %v7183_v46  ;;  %5936 = vmatprep.subr.bf16.mxu1 %v7190_v47  ;;  %v3084_v46 = vld [vmem:[#allocation5 + $0x850] sm:$0xff] }
 0x337   :  { %6100 = vmatprep.subr.bf16.mxu0 %v7192_v4  ;;  %v3088_v47 = vld [vmem:[#allocation5 + $0x870] sm:$0xff]  ;;  %v7237_v4 = vcombine.low %v3076_v44, %v3080_v53 }
 0x338   :  { %v7246_v55 = vcombine.high %v3084_v46, %v3088_v47  ;;  %v7245_v62 = vcombine.low %v3084_v46, %v3088_v47 }
 0x339   :  { %5937 = vmatpush1.bf16.msra.mxu1 %v7189_v58  ;;  %v3092_v58 = vld [vmem:[#allocation5 + $0x890] sm:$0xff] }
 0x33a   :  { %6101 = vmatpush1.bf16.msra.mxu0 %v7191_v59  ;;  %5938 = vmatprep.subr.bf16.mxu1 %v7198_v60  ;;  %v3096_v59 = vld [vmem:[#allocation5 + $0x8b0] sm:$0xff]  ;;  %v7248_v60 = vcombine.high %v3085_v49, %v3089_v50 }
 0x33b   :  { %6102 = vmatprep.subr.bf16.mxu0 %v7200_v27  ;;  %v3093_v27 = vld [vmem:[#allocation5 + $0x898] sm:$0xff]  ;;  %v7254_v3 = vcombine.high %v3092_v58, %v3096_v59  ;;  %v7253_v12 = vcombine.low %v3092_v58, %v3096_v59  ;;  %v3140_v49 = vld [vmem:[#allocation5 + $0xa10] sm:$0xff] }
 0x33c   :  { %v3144_v50 = vld [vmem:[#allocation5 + $0xa30] sm:$0xff] }
 0x33d   :  { %5939 = vmatpush1.bf16.msra.mxu1 %v7197_v40  ;;  %v7256_v40 = vcombine.high %v3093_v27, %v3097_v61 }
 0x33e   :  { %6103 = vmatpush1.bf16.msra.mxu0 %v7199_v19  ;;  %5940 = vmatprep.subr.bf16.mxu1 %v7206_v6  ;;  %v3100_v19 = vld [vmem:[#allocation5 + $0x8d0] sm:$0xff] }
 0x33f   :  { %6104 = vmatprep.subr.bf16.mxu0 %v7208_v8  ;;  %v3104_v6 = vld [vmem:[#allocation5 + $0x8f0] sm:$0xff]  ;;  %v3101_v8 = vld [vmem:[#allocation5 + $0x8d8] sm:$0xff] }
 0x340   :  { %v7262_v63 = vcombine.high %v3100_v19, %v3104_v6  ;;  %v7264_v14 = vcombine.high %v3101_v8, %v3105_v9  ;;  %v7263_v26 = vcombine.low %v3101_v8, %v3105_v9  ;;  %v3156_v9 = vld [vmem:[#allocation5 + $0xa90] sm:$0xff] }
 0x341   :  { %5941 = vmatpush1.bf16.msra.mxu1 %v7205_v16  ;;  %v3108_v16 = vld [vmem:[#allocation5 + $0x910] sm:$0xff] }
 0x342   :  { %6105 = vmatpush1.bf16.msra.mxu0 %v7207_v18  ;;  %5942 = vmatprep.subr.bf16.mxu1 %v7214_v20  ;;  %v3112_v18 = vld [vmem:[#allocation5 + $0x930] sm:$0xff]  ;;  %v3109_v20 = vld [vmem:[#allocation5 + $0x918] sm:$0xff] }
 0x343   :  { %6106 = vmatprep.subr.bf16.mxu0 %v7216_v23  ;;  %v3113_v23 = vld [vmem:[#allocation5 + $0x938] sm:$0xff]  ;;  %v7270_v29 = vcombine.high %v3108_v16, %v3112_v18 }
 0x344   :  { %v7272_v0 = vcombine.high %v3109_v20, %v3113_v23  ;;  %v7271_v33 = vcombine.low %v3109_v20, %v3113_v23  ;;  %v3164_v23 = vld [vmem:[#allocation5 + $0xad0] sm:$0xff] }
 0x345   :  { %5943 = vmatpush1.bf16.msra.mxu1 %v7213_v1  ;;  %v3120_v1 = vld [vmem:[#allocation5 + $0x970] sm:$0xff] }
 0x346   :  { %6107 = vmatpush1.bf16.msra.mxu0 %v7215_v7  ;;  %5944 = vmatprep.subr.bf16.mxu1 %v7222_v31  ;;  %v3117_v7 = vld [vmem:[#allocation5 + $0x958] sm:$0xff]  ;;  %v7278_v17 = vcombine.high %v3116_v13, %v3120_v1 }
 0x347   :  { %6108 = vmatprep.subr.bf16.mxu0 %v7224_v32  ;;  %v3121_v31 = vld [vmem:[#allocation5 + $0x978] sm:$0xff]  ;;  %v7269_v32 = vcombine.low %v3108_v16, %v3112_v18 }
 0x348   :  { %v7280_v34 = vcombine.high %v3117_v7, %v3121_v31  ;;  %v7279_v44 = vcombine.low %v3117_v7, %v3121_v31  ;;  %v3172_v31 = vld [vmem:[#allocation5 + $0xb10] sm:$0xff] }
 0x349   :  { %5945 = vmatpush1.bf16.msra.mxu1 %v7221_v35  ;;  %v3128_v35 = vld [vmem:[#allocation5 + $0x9b0] sm:$0xff] }
 0x34a   :  { %6109 = vmatpush1.bf16.msra.mxu0 %v7223_v36  ;;  %5946 = vmatprep.subr.bf16.mxu1 %v7230_v48  ;;  %v3125_v36 = vld [vmem:[#allocation5 + $0x998] sm:$0xff]  ;;  %v7286_v53 = vcombine.high %v3124_v5, %v3128_v35 }
 0x34b   :  { %6110 = vmatprep.subr.bf16.mxu0 %v7232_v43  ;;  %v3129_v48 = vld [vmem:[#allocation5 + $0x9b8] sm:$0xff]  ;;  %v7277_v43 = vcombine.low %v3116_v13, %v3120_v1 }
 0x34c   :  { %v7288_v37 = vcombine.high %v3125_v36, %v3129_v48  ;;  %v7287_v46 = vcombine.low %v3125_v36, %v3129_v48  ;;  %v3180_v48 = vld [vmem:[#allocation5 + $0xb50] sm:$0xff] }
 0x34d   :  { %5947 = vmatpush1.bf16.msra.mxu1 %v7229_v38  ;;  %v3136_v38 = vld [vmem:[#allocation5 + $0x9f0] sm:$0xff] }
 0x34e   :  { %6111 = vmatpush1.bf16.msra.mxu0 %v7231_v30  ;;  %5957 = vmatprep.subr.bf16.mxu1 %v7238_v39  ;;  %v3133_v30 = vld [vmem:[#allocation5 + $0x9d8] sm:$0xff]  ;;  %v7294_v47 = vcombine.high %v3132_v2, %v3136_v38  ;;  %v7293_v58 = vcombine.low %v3132_v2, %v3136_v38 }
 0x34f   :  { %6121 = vmatprep.subr.bf16.mxu0 %v7240_v42  ;;  %v3137_v39 = vld [vmem:[#allocation5 + $0x9f8] sm:$0xff]  ;;  %v7285_v42 = vcombine.low %v3124_v5, %v3128_v35 }
 0x350   :  { %5949 = vmatmul.mubr.bf16.vlgmr.msra.gmra.mrb[20].mxu1 %v8542_v45  ;;  %v7295_v59 = vcombine.low %v3133_v30, %v3137_v39 }
 0x351   :  { %6113 = vmatmul.mubr.bf16.vlgmr.msra.gmra.mrb[12].mxu0 %v8542_v45  ;;  %5958 = vmatpush1.bf16.msra.mxu1 %v7237_v4  ;;  %v7255_v45 = vcombine.low %v3093_v27, %v3097_v61  ;;  %v7296_v4 = vcombine.high %v3133_v30, %v3137_v39  ;;  %v3148_v61 = vld [vmem:[#allocation5 + $0xa50] sm:$0xff] }
 0x352   :  { %5989 = vmatprep.mubr.bf16.mxu1 %v8563_v21  ;;  %6122 = vmatpush1.bf16.msra.mxu0 %v7239_v54  ;;  %v3141_v54 = vld [vmem:[#allocation5 + $0xa18] sm:$0xff]  ;;  %v3188_v39 = vld [vmem:[#allocation5 + $0xb90] sm:$0xff] }
 0x353   :  { %6153 = vmatprep.mubr.bf16.mxu0 %v8563_v21  ;;  %5959 = vmatprep.subr.bf16.mxu1 %v7246_v55  ;;  %v7261_v21 = vcombine.low %v3100_v19, %v3104_v6  ;;  %v3145_v55 = vld [vmem:[#allocation5 + $0xa38] sm:$0xff] }
 0x354   :  { %6123 = vmatprep.subr.bf16.mxu0 %v7248_v60  ;;  %v7302_v60 = vcombine.high %v3140_v49, %v3144_v50  ;;  %v7304_v27 = vcombine.high %v3141_v54, %v3145_v55  ;;  %v7303_v19 = vcombine.low %v3141_v54, %v3145_v55  ;;  %v3196_v55 = vld [vmem:[#allocation5 + $0xbd0] sm:$0xff] }
 0x355   :  { %5960 = vmatpush1.bf16.msra.mxu1 %v7245_v62  ;;  %v3152_v62 = vld [vmem:[#allocation5 + $0xa70] sm:$0xff] }
 0x356   :  { %6124 = vmatpush1.bf16.msra.mxu0 %v7247_v15  ;;  %5961 = vmatprep.subr.bf16.mxu1 %v7254_v3  ;;  %v3149_v15 = vld [vmem:[#allocation5 + $0xa58] sm:$0xff]  ;;  %v7310_v6 = vcombine.high %v3148_v61, %v3152_v62 }
 0x357   :  { %6125 = vmatprep.subr.bf16.mxu0 %v7256_v40  ;;  %v3153_v3 = vld [vmem:[#allocation5 + $0xa78] sm:$0xff]  ;;  %v7301_v40 = vcombine.low %v3140_v49, %v3144_v50 }
 0x358   :  { %v7312_v8 = vcombine.high %v3149_v15, %v3153_v3  ;;  %v7311_v16 = vcombine.low %v3149_v15, %v3153_v3  ;;  %v3204_v3 = vld [vmem:[#allocation5 + $0xc10] sm:$0xff] }
 0x359   :  { %5962 = vmatpush1.bf16.msra.mxu1 %v7253_v12  ;;  %v3160_v12 = vld [vmem:[#allocation5 + $0xab0] sm:$0xff] }
 0x35a   :  { %6126 = vmatpush1.bf16.msra.mxu0 %v7255_v45  ;;  %5963 = vmatprep.subr.bf16.mxu1 %v7262_v63  ;;  %v3157_v45 = vld [vmem:[#allocation5 + $0xa98] sm:$0xff]  ;;  %v7318_v18 = vcombine.high %v3156_v9, %v3160_v12 }
 0x35b   :  { %6127 = vmatprep.subr.bf16.mxu0 %v7264_v14  ;;  %v3161_v63 = vld [vmem:[#allocation5 + $0xab8] sm:$0xff]  ;;  %v7309_v14 = vcombine.low %v3148_v61, %v3152_v62 }
 0x35c   :  { %v7320_v20 = vcombine.high %v3157_v45, %v3161_v63  ;;  %v7319_v13 = vcombine.low %v3157_v45, %v3161_v63  ;;  %v3212_v63 = vld [vmem:[#allocation5 + $0xc50] sm:$0xff] }
 0x35d   :  { %5964 = vmatpush1.bf16.msra.mxu1 %v7261_v21  ;;  %v3168_v21 = vld [vmem:[#allocation5 + $0xaf0] sm:$0xff] }
 0x35e   :  { %6128 = vmatpush1.bf16.msra.mxu0 %v7263_v26  ;;  %5965 = vmatprep.subr.bf16.mxu1 %v7270_v29  ;;  %v3165_v26 = vld [vmem:[#allocation5 + $0xad8] sm:$0xff]  ;;  %v7326_v1 = vcombine.high %v3164_v23, %v3168_v21 }
 0x35f   :  { %6129 = vmatprep.subr.bf16.mxu0 %v7272_v0  ;;  %v3169_v29 = vld [vmem:[#allocation5 + $0xaf8] sm:$0xff]  ;;  %v7317_v0 = vcombine.low %v3156_v9, %v3160_v12 }
 0x360   :  { %v7328_v7 = vcombine.high %v3165_v26, %v3169_v29  ;;  %v7327_v5 = vcombine.low %v3165_v26, %v3169_v29  ;;  %v3220_v29 = vld [vmem:[#allocation5 + $0xc90] sm:$0xff] }
 0x361   :  { %5966 = vmatpush1.bf16.msra.mxu1 %v7269_v32  ;;  %v3176_v32 = vld [vmem:[#allocation5 + $0xb30] sm:$0xff] }
 0x362   :  { %6130 = vmatpush1.bf16.msra.mxu0 %v7271_v33  ;;  %5967 = vmatprep.subr.bf16.mxu1 %v7278_v17  ;;  %v3173_v33 = vld [vmem:[#allocation5 + $0xb18] sm:$0xff]  ;;  %v7334_v35 = vcombine.high %v3172_v31, %v3176_v32 }
 0x363   :  { %6131 = vmatprep.subr.bf16.mxu0 %v7280_v34  ;;  %v3177_v17 = vld [vmem:[#allocation5 + $0xb38] sm:$0xff]  ;;  %v7325_v34 = vcombine.low %v3164_v23, %v3168_v21 }
 0x364   :  { %v7336_v36 = vcombine.high %v3173_v33, %v3177_v17  ;;  %v7335_v2 = vcombine.low %v3173_v33, %v3177_v17  ;;  %v3228_v17 = vld [vmem:[#allocation5 + $0xcd0] sm:$0xff] }
 0x365   :  { %5968 = vmatpush1.bf16.msra.mxu1 %v7277_v43  ;;  %v3184_v43 = vld [vmem:[#allocation5 + $0xb70] sm:$0xff] }
 0x366   :  { %6132 = vmatpush1.bf16.msra.mxu0 %v7279_v44  ;;  %5969 = vmatprep.subr.bf16.mxu1 %v7286_v53  ;;  %v3181_v44 = vld [vmem:[#allocation5 + $0xb58] sm:$0xff]  ;;  %v7342_v38 = vcombine.high %v3180_v48, %v3184_v43 }
 0x367   :  { %6133 = vmatprep.subr.bf16.mxu0 %v7288_v37  ;;  %v3185_v53 = vld [vmem:[#allocation5 + $0xb78] sm:$0xff]  ;;  %v7333_v37 = vcombine.low %v3172_v31, %v3176_v32 }
 0x368   :  { %v7344_v30 = vcombine.high %v3181_v44, %v3185_v53  ;;  %v7343_v49 = vcombine.low %v3181_v44, %v3185_v53  ;;  %v3236_v44 = vld [vmem:[#allocation5 + $0xd10] sm:$0xff] }
 0x369   :  { %5970 = vmatpush1.bf16.msra.mxu1 %v7285_v42  ;;  %v3192_v42 = vld [vmem:[#allocation5 + $0xbb0] sm:$0xff] }
 0x36a   :  { %6134 = vmatpush1.bf16.msra.mxu0 %v7287_v46  ;;  %5971 = vmatprep.subr.bf16.mxu1 %v7294_v47  ;;  %v3189_v46 = vld [vmem:[#allocation5 + $0xb98] sm:$0xff]  ;;  %v7350_v50 = vcombine.high %v3188_v39, %v3192_v42  ;;  %v3240_v53 = vld [vmem:[#allocation5 + $0xd30] sm:$0xff] }
 0x36b   :  { %6135 = vmatprep.subr.bf16.mxu0 %v7296_v4  ;;  %v3193_v47 = vld [vmem:[#allocation5 + $0xbb8] sm:$0xff]  ;;  %v7341_v4 = vcombine.low %v3180_v48, %v3184_v43 }
 0x36c   :  { %v7352_v54 = vcombine.high %v3189_v46, %v3193_v47  ;;  %v7351_v61 = vcombine.low %v3189_v46, %v3193_v47  ;;  %v3248_v46 = vld [vmem:[#allocation5 + $0xd70] sm:$0xff]  ;;  %v3245_v47 = vld [vmem:[#allocation5 + $0xd58] sm:$0xff] }
 0x36d   :  { %5972 = vmatpush1.bf16.msra.mxu1 %v7293_v58  ;;  %v3200_v58 = vld [vmem:[#allocation5 + $0xbf0] sm:$0xff] }
 0x36e   :  { %6136 = vmatpush1.bf16.msra.mxu0 %v7295_v59  ;;  %5973 = vmatprep.subr.bf16.mxu1 %v7302_v60  ;;  %v3197_v59 = vld [vmem:[#allocation5 + $0xbd8] sm:$0xff]  ;;  %v7358_v62 = vcombine.high %v3196_v55, %v3200_v58 }
 0x36f   :  { %6137 = vmatprep.subr.bf16.mxu0 %v7304_v27  ;;  %v3201_v60 = vld [vmem:[#allocation5 + $0xbf8] sm:$0xff]  ;;  %v7349_v27 = vcombine.low %v3188_v39, %v3192_v42  ;;  %v7398_v39 = vcombine.high %v3236_v44, %v3240_v53  ;;  %v3244_v42 = vld [vmem:[#allocation5 + $0xd50] sm:$0xff] }
 0x370   :  { %v7360_v15 = vcombine.high %v3197_v59, %v3201_v60  ;;  %v7359_v9 = vcombine.low %v3197_v59, %v3201_v60  ;;  %v3252_v59 = vld [vmem:[#allocation5 + $0xd90] sm:$0xff] }
 0x371   :  { %5974 = vmatpush1.bf16.msra.mxu1 %v7301_v40  ;;  %v3208_v40 = vld [vmem:[#allocation5 + $0xc30] sm:$0xff] }
 0x372   :  { %6138 = vmatpush1.bf16.msra.mxu0 %v7303_v19  ;;  %5975 = vmatprep.subr.bf16.mxu1 %v7310_v6  ;;  %v3205_v19 = vld [vmem:[#allocation5 + $0xc18] sm:$0xff]  ;;  %v7366_v12 = vcombine.high %v3204_v3, %v3208_v40  ;;  %v3256_v60 = vld [vmem:[#allocation5 + $0xdb0] sm:$0xff] }
 0x373   :  { %6139 = vmatprep.subr.bf16.mxu0 %v7312_v8  ;;  %v3209_v6 = vld [vmem:[#allocation5 + $0xc38] sm:$0xff]  ;;  %v7357_v8 = vcombine.low %v3196_v55, %v3200_v58  ;;  %v7406_v55 = vcombine.high %v3244_v42, %v3248_v46 }
 0x374   :  { %v7368_v45 = vcombine.high %v3205_v19, %v3209_v6  ;;  %v7367_v23 = vcombine.low %v3205_v19, %v3209_v6  ;;  %v7405_v19 = vcombine.low %v3244_v42, %v3248_v46  ;;  %v8196_v42 = vld [vmem:[#allocation7 + $0x68] sm:$0xff]  }
 0x375   :  { %5976 = vmatpush1.bf16.msra.mxu1 %v7309_v14  ;;  %v3216_v14 = vld [vmem:[#allocation5 + $0xc70] sm:$0xff]  ;;  %v8197_v46 = vld [vmem:[#allocation7 + $0x28] sm:$0xff]  }
 0x376   :  { %6140 = vmatpush1.bf16.msra.mxu0 %v7311_v16  ;;  %5977 = vmatprep.subr.bf16.mxu1 %v7318_v18  ;;  %v3213_v16 = vld [vmem:[#allocation5 + $0xc58] sm:$0xff]  ;;  %v7374_v21 = vcombine.high %v3212_v63, %v3216_v14 }
 0x377   :  { %6141 = vmatprep.subr.bf16.mxu0 %v7320_v20  ;;  %v3217_v18 = vld [vmem:[#allocation5 + $0xc78] sm:$0xff]  ;;  %v7365_v20 = vcombine.low %v3204_v3, %v3208_v40 }
 0x378   :  { %v7376_v26 = vcombine.high %v3213_v16, %v3217_v18  ;;  %v7375_v31 = vcombine.low %v3213_v16, %v3217_v18 }
 0x379   :  { %5978 = vmatpush1.bf16.msra.mxu1 %v7317_v0  ;;  %v3224_v0 = vld [vmem:[#allocation5 + $0xcb0] sm:$0xff] }
 0x37a   :  { %6142 = vmatpush1.bf16.msra.mxu0 %v7319_v13  ;;  %5979 = vmatprep.subr.bf16.mxu1 %v7326_v1  ;;  %v3221_v13 = vld [vmem:[#allocation5 + $0xc98] sm:$0xff]  ;;  %v7382_v32 = vcombine.high %v3220_v29, %v3224_v0 }
 0x37b   :  { %6143 = vmatprep.subr.bf16.mxu0 %v7328_v7  ;;  %v3225_v1 = vld [vmem:[#allocation5 + $0xcb8] sm:$0xff]  ;;  %v7373_v7 = vcombine.low %v3212_v63, %v3216_v14 }
 0x37c   :  { %v7384_v33 = vcombine.high %v3221_v13, %v3225_v1 }
 0x37d   :  { %5980 = vmatpush1.bf16.msra.mxu1 %v7325_v34  ;;  %v3232_v34 = vld [vmem:[#allocation5 + $0xcf0] sm:$0xff] }
 0x37e   :  { %6144 = vmatpush1.bf16.msra.mxu0 %v7327_v5  ;;  %5981 = vmatprep.subr.bf16.mxu1 %v7334_v35  ;;  %v3229_v5 = vld [vmem:[#allocation5 + $0xcd8] sm:$0xff]  ;;  %v7390_v48 = vcombine.high %v3228_v17, %v3232_v34 }
 0x37f   :  { %6145 = vmatprep.subr.bf16.mxu0 %v7336_v36  ;;  %v3233_v35 = vld [vmem:[#allocation5 + $0xcf8] sm:$0xff]  ;;  %v7381_v36 = vcombine.low %v3220_v29, %v3224_v0  ;;  %v7413_v29 = vcombine.low %v3252_v59, %v3256_v60 }
 0x380   :  { %v7392_v43 = vcombine.high %v3229_v5, %v3233_v35 }
 0x381   :  { %5982 = vmatpush1.bf16.msra.mxu1 %v7333_v37  ;;  %v3237_v37 = vld [vmem:[#allocation5 + $0xd18] sm:$0xff] }
 0x382   :  { %6146 = vmatpush1.bf16.msra.mxu0 %v7335_v2  ;;  %5983 = vmatprep.subr.bf16.mxu1 %v7342_v38  ;;  %v3241_v2 = vld [vmem:[#allocation5 + $0xd38] sm:$0xff]  ;;  %v7389_v38 = vcombine.low %v3228_v17, %v3232_v34 }
 0x383   :  { %6147 = vmatprep.subr.bf16.mxu0 %v7344_v30  ;;  %v7391_v30 = vcombine.low %v3229_v5, %v3233_v35 }
 0x385   :  { %5984 = vmatpush1.bf16.msra.mxu1 %v7341_v4  ;;  %v3249_v4 = vld [vmem:[#allocation5 + $0xd78] sm:$0xff] }
 0x386   :  { %6148 = vmatpush1.bf16.msra.mxu0 %v7343_v49  ;;  %5985 = vmatprep.subr.bf16.mxu1 %v7350_v50  ;;  %v7397_v49 = vcombine.low %v3236_v44, %v3240_v53  ;;  %v8600_v50 = vld [vmem:[#allocation8 + $0x7] sm:$0xff]  ;;  %v7408_v58 = vcombine.high %v3245_v47, %v3249_v4  ;;  %v7407_v6 = vcombine.low %v3245_v47, %v3249_v4  ;;  %v8199_v47 = vld [vmem:[#allocation7 + $0x30] sm:$0xff]   ;;  %v8200_v4 = vld [vmem:[#allocation7 + $0x78] sm:$0xff]  }
 0x387   :  { %6149 = vmatprep.subr.bf16.mxu0 %v7352_v54  ;;  %v7399_v54 = vcombine.low %v3237_v37, %v3241_v2  ;;  %v3274_v3 = vrot.slane %v8600_v50, %v2768_v24  ;;  %v3282_v40 = vrot.slane %v8600_v50, %v2776_v28  ;;  %v3261_v24 = vld [vmem:[#allocation5 + $0xdd8] sm:$0xff]  ;;  %v8188_v44 = vld [vmem:[#allocation7 + $0x48] sm:$0xff]  }
 0x388   :  { %v8189_v53 = vld [vmem:[#allocation7 + $0x8] sm:$0xff]  }
 0x389   :  { %5986 = vmatpush1.bf16.msra.mxu1 %v7349_v27  ;;  %v3270_v27 = vrot.slane %v8600_v50, %v2764_v22  ;;  %v7414_v22 = vcombine.high %v3252_v59, %v3256_v60  ;;  %v3294_v59 = vrot.slane %v8600_v50, %v2788_v10  ;;  %v3290_v60 = vrot.slane %v8600_v50, %v2784_v56 }
 0x38a   :  { %6150 = vmatpush1.bf16.msra.mxu0 %v7351_v61  ;;  %5987 = vmatprep.subr.bf16.mxu1 %v7358_v62  ;;  %v3278_v61 = vrot.slane %v8600_v50, %v2772_v57  ;;  %v3253_v62 = vld [vmem:[#allocation5 + $0xd98] sm:$0xff] }
 0x38b   :  { %6151 = vmatprep.subr.bf16.mxu0 %v7360_v15  ;;  %v3257_v15 = vld [vmem:[#allocation5 + $0xdb8] sm:$0xff] }
 0x38c   :  { %v7416_v57 = vcombine.high %v3253_v62, %v3257_v15 }
 0x38d   :  { %5988 = vmatpush1.bf16.msra.mxu1 %v7357_v8 }
 0x38e   :  { %6152 = vmatpush1.bf16.msra.mxu0 %v7359_v9  ;;  %5998 = vmatprep.subr.bf16.mxu1 %v7366_v12  ;;  %v3260_v12 = vld [vmem:[#allocation5 + $0xdd0] sm:$0xff] }
 0x38f   :  { %6162 = vmatprep.subr.bf16.mxu0 %v7368_v45  ;;  %v3264_v45 = vld [vmem:[#allocation5 + $0xdf0] sm:$0xff] }
 0x390   :  { %5990 = vmatmul.mubr.bf16.vlgmr.msra.gmra.mrb[20].mxu1 %v8565_v25 }
 0x391   :  { %6154 = vmatmul.mubr.bf16.vlgmr.msra.gmra.mrb[12].mxu0 %v8565_v25  ;;  %5999 = vmatpush1.bf16.msra.mxu1 %v7365_v20  ;;  %v7383_v25 = vcombine.low %v3221_v13, %v3225_v1  ;;  %v3265_v20 = vld [vmem:[#allocation5 + $0xdf8] sm:$0xff] }
 0x392   :  { %6163 = vmatpush1.bf16.msra.mxu0 %v7367_v23  ;;  %6000 = vmatprep.subr.bf16.mxu1 %v7374_v21  ;;  %v7424_v34 = vcombine.high %v3261_v24, %v3265_v20 }
 0x393   :  { %6164 = vmatprep.subr.bf16.mxu0 %v7376_v26  ;;  %6030 = vmatprep.mubr.bf16.mxu1 %v8347_v51 }
 0x394   :  { %6194 = vmatprep.mubr.bf16.mxu0 %v8347_v51  ;;  %v7400_v51 = vcombine.high %v3237_v37, %v3241_v2  ;;  %v8190_v37 = vld [vmem:[#allocation7 + $0x50] sm:$0xff]  }
 0x395   :  { %6001 = vmatpush1.bf16.msra.mxu1 %v7373_v7  ;;  %v8191_v2 = vld [vmem:[#allocation7 + $0x10] sm:$0xff]  }
 0x396   :  { %6165 = vmatpush1.bf16.msra.mxu0 %v7375_v31  ;;  %6002 = vmatprep.subr.bf16.mxu1 %v7382_v32  ;;  %v7415_v31 = vcombine.low %v3253_v62, %v3257_v15  ;;  %v7422_v32 = vcombine.high %v3260_v12, %v3264_v45 }
 0x397   :  { %6166 = vmatprep.subr.bf16.mxu0 %v7384_v33 }
 0x399   :  { %6003 = vmatpush1.bf16.msra.mxu1 %v7381_v36  ;;  %v7421_v36 = vcombine.low %v3260_v12, %v3264_v45 }
 0x39a   :  { %6167 = vmatpush1.bf16.msra.mxu0 %v7383_v25  ;;  %6004 = vmatprep.subr.bf16.mxu1 %v7390_v48  ;;  %v7423_v25 = vcombine.low %v3261_v24, %v3265_v20  ;;  %v8186_v48 = vld [vmem:[#allocation7 + $0x40] sm:$0xff]   ;;  %v8203_v20 = vld [vmem:[#allocation7 + $0x88] sm:$0xff]  }
 0x39b   :  { %6168 = vmatprep.subr.bf16.mxu0 %v7392_v43  ;;  %v8187_v43 = vld [vmem:[#allocation7] sm:$0xff]  }
 0x39d   :  { %6005 = vmatpush1.bf16.msra.mxu1 %v7389_v38  ;;  %v8192_v38 = vld [vmem:[#allocation7 + $0x58] sm:$0xff]  }
 0x39e   :  { %6169 = vmatpush1.bf16.msra.mxu0 %v7391_v30  ;;  %6006 = vmatprep.subr.bf16.mxu1 %v7398_v39  ;;  %v8193_v30 = vld [vmem:[#allocation7 + $0x18] sm:$0xff]   ;;  %v8194_v39 = vld [vmem:[#allocation7 + $0x60] sm:$0xff]  }
 0x39f   :  { %6170 = vmatprep.subr.bf16.mxu0 %v7400_v51  ;;  %v8195_v51 = vld [vmem:[#allocation7 + $0x20] sm:$0xff]  }
 0x3a1   :  { %6007 = vmatpush1.bf16.msra.mxu1 %v7397_v49  ;;  %v8201_v49 = vld [vmem:[#allocation7 + $0x38] sm:$0xff]  }
 0x3a2   :  { %6171 = vmatpush1.bf16.msra.mxu0 %v7399_v54  ;;  %6008 = vmatprep.subr.bf16.mxu1 %v7406_v55  ;;  %v8348_v54 = vmov 0.0   ;;  %v3297_v55 = vsub.s32 7, %v8494_v11 }
 0x3a3   :  { %v5704_v8 = vpop.f32.mrb[16].mxu1  ;;  %v5868_v9 = vpop.f32.mrb[8].mxu0  ;;  %6172 = vmatprep.subr.bf16.mxu0 %v7408_v58  ;;  %v3286_v58 = vrot.slane %v8600_v50, %v2780_v52 }
 0x3a4   :  { %v7606_v63 = vadd.f32 %v5704_v8, %v3270_v27  ;;  %v7608_v14 = vadd.f32 %v5868_v9, %v3278_v61  ;;  %v5706_v16 = vpop.f32.mrb[17].mxu1  ;;  %v5870_v18 = vpop.f32.mrb[9].mxu0  ;;  %v3298_v27 = vrot.slane %v8600_v50, %v3297_v55 }
 0x3a5   :  { %v7607_v23 = vadd.f32 %v5706_v16, %v3274_v3  ;;  %v7609_v21 = vadd.f32 %v5870_v18, %v3282_v40  ;;  %v5708_v28 = vpop.f32.mrb[18].mxu1  ;;  %v5872_v26 = vpop.f32.mrb[10].mxu0  ;;  %6009 = vmatpush1.bf16.msra.mxu1 %v7405_v19  ;;  %v8202_v18 = vld [vmem:[#allocation7 + $0x80] sm:$0xff]  }
 0x3a6   :  { %v6203_v0 = vmax.f32 %v7606_v63, 0.0  ;;  %v6205_v13 = vmax.f32 %v7608_v14, 0.0  ;;  %6173 = vmatpush1.bf16.msra.mxu0 %v7407_v6  ;;  %v5709_v1 = vpop.f32.mrb[19].mxu1  ;;  %v5873_v7 = vpop.f32.mrb[11].mxu0  ;;  %6010 = vmatprep.subr.bf16.mxu1 %v7414_v22  ;;  %v8206_v28 = vld [vmem:[#allocation7 + $0xa0] sm:$0xff]   ;;  %v8207_v26 = vld [vmem:[#allocation7 + $0xa8] sm:$0xff]  }
 0x3a7   :  { %v6204_v33 = vmax.f32 %v7607_v23, 0.0  ;;  %v6206_v17 = vmax.f32 %v7609_v21, 0.0  ;;  %6174 = vmatprep.subr.bf16.mxu0 %v7416_v57  ;;  %v8204_v23 = vld [vmem:[#allocation7 + $0x90] sm:$0xff]   ;;  %v8205_v21 = vld [vmem:[#allocation7 + $0x98] sm:$0xff]   ;;  %v7425_v1 = vld [vmem:[#allocation8 + $0xf] ss:$0 sm:$0xff] }
 0x3a8   :  { %v8614_v5 = vmax.f32 %v6203_v0, %v6205_v13  ;;  %v8209_v0 = vld [vmem:[#allocation7 + $0xb8] sm:$0xff]  }
 0x3a9   :  { %v8616_v35 = vmax.f32 %v6204_v33, %v6206_v17  ;;  %6011 = vmatpush1.bf16.msra.mxu1 %v7413_v29  ;;  %v8208_v29 = vld [vmem:[#allocation7 + $0xb0] sm:$0xff]  }
 0x3aa   :  { %6175 = vmatpush1.bf16.msra.mxu0 %v7415_v31  ;;  %6012 = vmatprep.subr.bf16.mxu1 %v7422_v32 }
 0x3ab   :  { %6176 = vmatprep.subr.bf16.mxu0 %v7424_v34 }
 0x3ad   :  { %6013 = vmatpush1.bf16.msra.mxu1 %v7421_v36  ;;  %v8211_v36 = vld [vmem:[#allocation7 + $0xc8] sm:$0xff]  }
 0x3ae   :  { %6177 = vmatpush1.bf16.msra.mxu0 %v7423_v25  ;;  %7526 = vmatprep.subr.bf16.mxu1 %v8186_v48  ;;  %v8212_v25 = vld [vmem:[#allocation7 + $0xd0] sm:$0xff]   ;;  %v8213_v48 = vld [vmem:[#allocation7 + $0xd8] sm:$0xff]  }
 0x3b0   :  { %6031 = vmatmul.mubr.bf16.vlgmr.msra.gmra.mrb[20].mxu1 %v8582_v41 }
 0x3b1   :  { %6195 = vmatmul.mubr.bf16.vlgmr.msra.gmra.mrb[12].mxu0 %v8582_v41  ;;  %7527 = vmatpush3.bf16.msra.mxu1 %v8187_v43  ;;  %v8198_v41 = vld [vmem:[#allocation7 + $0x70] sm:$0xff]   ;;  %v8214_v43 = vld [vmem:[#allocation7 + $0xe0] sm:$0xff]  }
 0x3b2   :  { %7528 = vmatprep.subr.bf16.mxu1 %v8188_v44  ;;  %v8215_v44 = vld [vmem:[#allocation7 + $0xe8] sm:$0xff]  }
 0x3b5   :  { %7529 = vmatpush3.bf16.msra.mxu1 %v8189_v53  ;;  %v8216_v53 = vld [vmem:[#allocation7 + $0xf0] sm:$0xff]  }
 0x3b6   :  { %7530 = vmatprep.subr.bf16.mxu1 %v8190_v37  ;;  %v8217_v37 = vld [vmem:[#allocation7 + $0xf8] sm:$0xff]  }
 0x3b9   :  { %7531 = vmatpush3.bf16.msra.mxu1 %v8191_v2  ;;  %v7442_v2 = vld [vmem:[#allocation8 + $0x10] ss:$0 sm:$0xff] }
 0x3ba   :  { %7532 = vmatprep.subr.bf16.mxu1 %v8192_v38 }
 0x3bd   :  { %7533 = vmatpush3.bf16.msra.mxu1 %v8193_v30 }
 0x3be   :  { %7534 = vmatprep.subr.bf16.mxu1 %v8194_v39 }
 0x3c1   :  { %7535 = vmatpush3.bf16.msra.mxu1 %v8195_v51 }
 0x3c2   :  { %7536 = vmatprep.subr.bf16.mxu1 %v8196_v42 }
 0x3c5   :  { %7537 = vmatpush3.bf16.msra.mxu1 %v8197_v46 }
 0x3c6   :  { %7538 = vmatprep.subr.bf16.mxu1 %v8198_v41 }
 0x3c9   :  { %7539 = vmatpush3.bf16.msra.mxu1 %v8199_v47  ;;  %v7451_v47 = vld [vmem:[#allocation8 + $0x11] ss:$0 sm:$0xff] }
 0x3ca   :  { %7540 = vmatprep.subr.bf16.mxu1 %v8200_v4 }
 0x3cd   :  { %7541 = vmatpush3.bf16.msra.mxu1 %v8201_v49 }
 0x3ce   :  { %7566 = vmatprep.subr.bf16.mxu1 %v8348_v54 }
 0x483   :  { %v6032_v61 = vpop.f32.mrb[20].mxu1 }
 0x484   :  { %v7610_v62 = vadd.f32 %v6032_v61, %v3286_v58  ;;  %v6196_v15 = vpop.f32.mrb[12].mxu0  ;;  %v6034_v3 = vpop.f32.mrb[21].mxu1 }
 0x485   :  { %v7612_v40 = vadd.f32 %v6196_v15, %v3294_v59  ;;  %v7611_v19 = vadd.f32 %v6034_v3, %v3290_v60  ;;  %v6198_v6 = vpop.f32.mrb[13].mxu0  ;;  %v6036_v22 = vpop.f32.mrb[22].mxu1 }
 0x486   :  { %v6207_v8 = vmax.f32 %v7610_v62, 0.0  ;;  %v7613_v52 = vadd.f32 %v6198_v6, %v3298_v27  ;;  %v6200_v9 = vpop.f32.mrb[14].mxu0  ;;  %v6037_v57 = vpop.f32.mrb[23].mxu1 }
 0x487   :  { %v6209_v12 = vmax.f32 %v7612_v40, 0.0  ;;  %v6208_v10 = vmax.f32 %v7611_v19, 0.0  ;;  %v6201_v45 = vpop.f32.mrb[15].mxu0 }
 0x488   :  { %v6210_v11 = vmax.f32 %v7613_v52, 0.0 }
 0x489   :  { %v6213_v63 = vmax.f32 %v6207_v8, %v6209_v12 }
 0x48a   :  { %v6214_v56 = vmax.f32 %v6208_v10, %v6210_v11 }
 0x48b   :  { %v6215_v50 = vmax.f32 %v8614_v5, %v6213_v63  ;;  %v8210_v5 = vld [vmem:[#allocation7 + $0xc0] sm:$0xff]  }
 0x48c   :  { %v6216_v14 = vmax.f32 %v8616_v35, %v6214_v56 }
 0x48d   :  { %v6217_v24 = vpack.c.bf16 %v6215_v50, %v6215_v50 }
 0x48e   :  { %v6218_v16 = vpack.c.bf16 %v6216_v14, %v6216_v14 }
 0x490   :  { %6385 = vmatprep.mubr.bf16.mxu1 %v6218_v16 }
 0x491   :  { %6386 = vmatmul.mubr.bf16.vlgmr.msra.gmra.mrb[24].mxu1 %v6217_v24 }
 0x492   :  { %7567 = vmatpush3.bf16.msra.mxu1 %v8202_v18  ;;  %7582 = vmatprep.mubr.msk.bf16.mxu1 %vm8349_vm0, %v8348_v54 }
 0x493   :  { %7568 = vmatprep.subr.bf16.mxu1 %v8348_v54 }
 0x496   :  { %7569 = vmatpush3.bf16.msra.mxu1 %v8203_v20 }
 0x497   :  { %7570 = vmatprep.subr.bf16.mxu1 %v8348_v54 }
 0x49a   :  { %7571 = vmatpush3.bf16.msra.mxu1 %v8204_v23 }
 0x49b   :  { %7572 = vmatprep.subr.bf16.mxu1 %v8348_v54 }
 0x49e   :  { %7573 = vmatpush3.bf16.msra.mxu1 %v8205_v21 }
 0x49f   :  { %7574 = vmatprep.subr.bf16.mxu1 %v8348_v54 }
 0x4a2   :  { %7575 = vmatpush3.bf16.msra.mxu1 %v8206_v28 }
 0x4a3   :  { %7576 = vmatprep.subr.bf16.mxu1 %v8348_v54 }
 0x4a6   :  { %7577 = vmatpush3.bf16.msra.mxu1 %v8207_v26 }
 0x4a7   :  { %7578 = vmatprep.subr.bf16.mxu1 %v8348_v54 }
 0x4aa   :  { %7579 = vmatpush3.bf16.msra.mxu1 %v8208_v29 }
 0x4ab   :  { %7580 = vmatprep.subr.bf16.mxu1 %v8348_v54 }
 0x4ae   :  { %7581 = vmatpush3.bf16.msra.mxu1 %v8209_v0 }
 0x4af   :  { %7586 = vmatprep.subr.bf16.mxu1 %v8348_v54 }
 0x564   :  { %v7542_v13 = vpop.f32.mrb[24].mxu1 }
 0x565   :  { %v7543_v7 = vpop.f32.mrb[25].mxu1 }
 0x566   :  { %v7544_v31 = vadd.f32 %v7543_v7, %v7542_v13  ;;  %v7545_v32 = vpop.f32.mrb[26].mxu1 }
 0x567   :  { %v7546_v33 = vpop.f32.mrb[27].mxu1 }
 0x568   :  { %v6388_v17 = vadd.f32 %v7544_v31, %v7425_v1 }
 0x56a   :  { %v6393_v34 = vmax.f32 %v6388_v17, 0.0 }
 0x56c   :  { %v6394_v35 = vpack.c.bf16 %v6393_v34, %v6393_v34 }
 0x56e   :  { %7583 = vmatmul.mubr.bf16.vlgmr.msra.gmra.mrb[28].mxu1 %v6394_v35 }
 0x56f   :  { %7587 = vmatpush3.bf16.msra.mxu1 %v8210_v5  ;;  %7602 = vmatprep.mubr.msk.bf16.mxu1 %vm8349_vm0, %v8348_v54 }
 0x570   :  { %7588 = vmatprep.subr.bf16.mxu1 %v8348_v54 }
 0x573   :  { %7589 = vmatpush3.bf16.msra.mxu1 %v8211_v36 }
 0x574   :  { %7590 = vmatprep.subr.bf16.mxu1 %v8348_v54 }
 0x577   :  { %7591 = vmatpush3.bf16.msra.mxu1 %v8212_v25 }
 0x578   :  { %7592 = vmatprep.subr.bf16.mxu1 %v8348_v54 }
 0x57b   :  { %7593 = vmatpush3.bf16.msra.mxu1 %v8213_v48 }
 0x57c   :  { %7594 = vmatprep.subr.bf16.mxu1 %v8348_v54 }
 0x57f   :  { %7595 = vmatpush3.bf16.msra.mxu1 %v8214_v43 }
 0x580   :  { %7596 = vmatprep.subr.bf16.mxu1 %v8348_v54 }
 0x583   :  { %7597 = vmatpush3.bf16.msra.mxu1 %v8215_v44 }
 0x584   :  { %7598 = vmatprep.subr.bf16.mxu1 %v8348_v54 }
 0x587   :  { %7599 = vmatpush3.bf16.msra.mxu1 %v8216_v53 }
 0x588   :  { %7600 = vmatprep.subr.bf16.mxu1 %v8348_v54 }
 0x58b   :  { %7601 = vmatpush3.bf16.msra.mxu1 %v8217_v37 }
 0x641   :  { %v6499_v38 = vpop.f32.mrb[28].mxu1 }
 0x642   :  { %v6500_v30 = vadd.f32 %v7442_v2, %v6499_v38  ;;  %v7584_v39 = vpop.f32.mrb[29].mxu1 }
 0x643   :  { %v6502_v51 = vpop.f32.mrb[30].mxu1 }
 0x644   :  { %v6505_v42 = vmax.f32 %v6500_v30, 0.0  ;;  %v7585_v46 = vpop.f32.mrb[31].mxu1 }
 0x646   :  { %v6506_v41 = vpack.c.bf16 %v6505_v42, %v6505_v42 }
 0x648   :  { %7603 = vmatmul.mubr.bf16.vlgmr.msra.gmra.mrb[32].mxu1 %v6506_v41 }
 0x71b   :  { %v6611_v4 = vpop.f32.mrb[32].mxu1 }
 0x71c   :  { %v6612_v49 = vadd.f32 %v7451_v47, %v6611_v4  ;;  %v7604_v55 = vpop.f32.mrb[33].mxu1 }
 0x71d   :  { %v6614_v58 = vpop.f32.mrb[34].mxu1 }
 0x71e   :  { %6617 = vst [vmem:[#allocation10] sm:$0x3] %v6612_v49  ;;  %v7605_v54 = vpop.f32.mrb[35].mxu1 }
 0x71f   :  { %8318 = shalt.err (!%p8315_p8)
}
 0x720   :  { %s8319_s27 = scalar_lea.hbm %s8670_s5, 32 }
 0x721   :  { %p8320_p9 = scmp.ne.s32.totalorder %s8670_s5, %s8319_s27  ;;  %p8323_p10 = scmp.lt.u32.totalorder %s8319_s27, %s8670_s5 }
 0x723   :  { %p8325_p11 = pnand %p8323_p10, %p8320_p9 }
 0x725   :  { %8328 = shalt.err (!%p8325_p11)
}
 0x726   :  { %6627 = dma.vmem_to_hbm [thread:$0]  %s6625_s23, 32, %s8670_s5, [#allocation4]  }
 0x727   :  { %8335 = dma.done.wait [#allocation4], 32  }
 0x728   :  { %8336 = vsyncadd [#allocation4], 4294967264 }
 0x729   :  { %6631 = vsyncpa [#allocation3], 1 }
 0x72a   :  { %6632 = vsyncpa [#allocation6], 1 }
 0x72b   :  { %6633 = vsyncpa [#allocation9], 1 }
 0x72c   :  { %6634 = vsyncpa [#allocation4], 1 }

</bundles_post_ra>
